<compile_context>
chip_gen: v5e
topology: v5e:2x2
jax: 0.10.0
libtpu: 0.0.40
codegen_flags: <defaults>
</compile_context>

<pallas_src>
import functools

import jax
import jax.numpy as jnp
from jax.experimental import pallas as pl
from jax.experimental.pallas import tpu as pltpu

# ----------------------------------------------------------------------------- cfg
CFG_STRING = """
[net]
height=16
width=16
channels=3

[convolutional]
batch_normalize=1
filters=8
size=3
stride=1
pad=1
activation=leaky

[convolutional]
batch_normalize=1
filters=8
size=3
stride=1
pad=1
activation=leaky

[convolutional]
batch_normalize=1
filters=16
size=3
stride=2
pad=1
activation=leaky

[convolutional]
batch_normalize=1
filters=16
size=1
stride=1
pad=1
activation=leaky

[shortcut]
from=-2
activation=linear

[convolutional]
batch_normalize=1
filters=32
size=3
stride=2
pad=1
activation=leaky

[convolutional]
size=1
stride=1
pad=1
filters=27
activation=linear

[yolo]
mask=0,1,2
anchors=10,13,16,30,33,23,30,61,62,45,59,119
classes=4
num=6

[route]
layers=-4

[convolutional]
batch_normalize=1
filters=16
size=1
stride=1
pad=1
activation=leaky

[upsample]
stride=2

[route]
layers=-1,1

[convolutional]
size=3
stride=1
pad=1
filters=27
activation=linear

[yolo]
mask=3,4,5
anchors=10,13,16,30,33,23,30,61,62,45,59,119
classes=4
num=6
"""


def parse_cfg_string(s):
    lines = [ln.strip() for ln in s.split("\n")]
    lines = [ln for ln in lines if len(ln) > 0 and not ln.startswith("#")]
    blocks, block = [], {}
    for line in lines:
        if line.startswith("["):
            if block:
                blocks.append(block)
                block = {}
            block["type"] = line[1:-1].strip()
        else:
            k, v = line.split("=")
            block[k.strip()] = v.strip()
    blocks.append(block)
    return blocks


# ------------------------------------------------------------------------- helpers
def _round_up(x, m):
    return (x + m - 1) // m * m


# M-tile size for the conv matmuls.  512 per the v6e feedback (per-step pipeline
# overhead dominates smaller tiles); at these toy shapes every conv fits in one
# or a few tiles.  TODO(synk): add a K reduction grid axis before scaling the
# tile footprint toward real 416px inputs on v7x (64 MiB VMEM).
_TM_MAX = 512

# "parallel" so v7x megacore can shard M tiles; explicit VMEM budget keeps the
# double-buffered tiles well inside v7x's 64 MiB (and v5e/v6e 128 MiB) VMEM.
_CP_PAR1 = pltpu.CompilerParams(
    dimension_semantics=("parallel",),
    vmem_limit_bytes=32 * 1024 * 1024,
)


# ----------------------------------------------------------------------- Pallas kernels
def _make_conv_kernel(leaky):
    """Fused conv-as-matmul + per-channel affine (+ optional LeakyReLU).

    bf16 MXU inputs, f32 accumulation; the affine carries either the folded
    eval-mode BatchNorm (scale = gamma*rsqrt(var+eps), shift = beta - mean*scale)
    or (scale=1, shift=bias) for non-BN convs.  Output is one lane-dense
    (TM, 128) tile stored in bfloat16 (math stays f32 for v5e).
    """

    def kernel(p_ref, w_ref, scale_ref, shift_ref, y_ref):
        y = jnp.dot(p_ref[...], w_ref[...], preferred_element_type=jnp.float32)
        y = y * scale_ref[...] + shift_ref[...]
        if leaky:
            y = jnp.where(y > 0, y, 0.1 * y)
        y_ref[...] = y.astype(y_ref.dtype)

    return kernel


def _make_yolo_decode_kernel(tr, g, stride, anchors, bp):
    """Lane-dense YOLO decode on a flattened (rows, 128) slab.

    Each element's flat index encodes (box, param) with param = flat % bp and
    box = ((b*A + a)*G + gy)*G + gx.  The grid offsets (add) and the
    stride / anchor (mul) terms are generated in-kernel from iota + exact-f32
    div/mod and the static anchor constants (no extra HBM input streams), and
    sigmoid is derived from the single exp pass via an approx reciprocal.
    Padded tail elements decode to finite garbage and are sliced off outside.
    """
    a_num = len(anchors)
    aw = [float(an[0]) for an in anchors]   # (anchor_w/stride) * stride == anchor_w
    ah = [float(an[1]) for an in anchors]
    gf, ggf, bpf, af = float(g), float(g * g), float(bp), float(a_num)
    stride_f = float(stride)

    def kernel(p_ref, o_ref):
        p = p_ref[...].astype(jnp.float32)
        base = pl.program_id(0) * (tr * 128)
        row = jax.lax.broadcasted_iota(jnp.int32, p.shape, 0)
        lane = jax.lax.broadcasted_iota(jnp.int32, p.shape, 1)
        flat = (base + row * 128 + lane).astype(jnp.float32)
        # div/mod in f32: all values << 2**24, exact-integer quotients are exact.
        box = jnp.floor(flat / bpf)
        param = flat - box * bpf
        gx = box - jnp.floor(box / gf) * gf
        boxg = jnp.floor(box / gf)
        gy = boxg - jnp.floor(boxg / gf) * gf
        aidx = jnp.floor(box / ggf)
        aidx = aidx - jnp.floor(aidx / af) * af
        aw_sel = jnp.full(p.shape, aw[0], jnp.float32)
        ah_sel = jnp.full(p.shape, ah[0], jnp.float32)
        for k in range(1, a_num):
            aw_sel = jnp.where(aidx == float(k), aw[k], aw_sel)
            ah_sel = jnp.where(aidx == float(k), ah[k], ah_sel)
        add = jnp.where(param == 0.0, gx, jnp.where(param == 1.0, gy, 0.0))
        mul = jnp.where(param < 2.0, stride_f,
                        jnp.where(param == 2.0, aw_sel,
                                  jnp.where(param == 3.0, ah_sel, 1.0)))
        is_wh = (param == 2.0) | (param == 3.0)
        e = jnp.exp(p)                                   # single EUP pass
        sig = e * pl.reciprocal(1.0 + e, approx=True)    # sigmoid from the same exp
        o_ref[...] = (jnp.where(is_wh, e, sig) + add) * mul

    return kernel


# ----------------------------------------------------------------------- layer wrappers
def _im2col(x_nhwc, k, stride, pad):
    """Extract (kh, kw, cin)-ordered patches. Pure data movement (glue).

    TODO(synk): fuse this into the conv kernel via a (kh,kw) reduction grid axis
    to avoid materializing the k*k-duplicated patch matrix in HBM.
    """
    n, h, w, c = x_nhwc.shape
    xp = jnp.pad(x_nhwc, ((0, 0), (pad, pad), (pad, pad), (0, 0)))
    h_out = (h + 2 * pad - k) // stride + 1
    w_out = (w + 2 * pad - k) // stride + 1
    cols = []
    for kh in range(k):
        for kw in range(k):
            sl = xp[:, kh:kh + (h_out - 1) * stride + 1:stride,
                    kw:kw + (w_out - 1) * stride + 1:stride, :]
            cols.append(sl)
    patches = jnp.concatenate(cols, axis=-1)          # (N, Ho, Wo, k*k*C)
    return patches.reshape(n * h_out * w_out, k * k * c), h_out, w_out


def conv_layer(x_nhwc, p):
    n = x_nhwc.shape[0]
    patches, h_out, w_out = _im2col(x_nhwc, p["k"], p["stride"], p["pad"])
    m, kdim = patches.shape
    kp, fp = p["w_pad"].shape          # K padded to 16, F padded to 128 (lane-dense)
    f = p["filters"]

    tm = _TM_MAX if m >= _TM_MAX else _round_up(m, 16)   # 16 keeps bf16 tiles aligned
    mp = _round_up(m, tm)
    grid_m = mp // tm

    # bf16 matmul inputs (MXU-native on all generations); f32 accumulate in-kernel.
    patches_p = jnp.pad(patches, ((0, mp - m), (0, kp - kdim))).astype(jnp.bfloat16)

    p_spec = pl.BlockSpec((tm, kp), lambda i: (i, 0))
    w_spec = pl.BlockSpec((kp, fp), lambda i: (0, 0))      # resident weight tile
    vec_spec = pl.BlockSpec((1, fp), lambda i: (0, 0))     # per-channel scale / shift
    y_spec = pl.BlockSpec((tm, fp), lambda i: (i, 0))      # lane-dense output tile

    out_pad = pl.pallas_call(
        _make_conv_kernel(p["leaky"]),
        out_shape=jax.ShapeDtypeStruct((mp, fp), jnp.bfloat16),
        grid=(grid_m,),
        in_specs=[p_spec, w_spec, vec_spec, vec_spec],
        out_specs=y_spec,
        compiler_params=_CP_PAR1,
    )(patches_p, p["w_pad"], p["scale"][None], p["shift"][None])

    return out_pad[:m, :f].reshape(n, h_out, w_out, f)


def yolo_layer(x_nhwc, anchors, input_dim, num_classes):
    b, g, _, c = x_nhwc.shape
    a = len(anchors)
    bp = 5 + num_classes
    assert c == a * bp
    stride = input_dim // g

    # NHWC channel index == NCHW channel index (= anchor*bp + param), so:
    # (B,G,G,A*bp) -> (B,G,G,A,bp) -> (B,A,G,G,bp), matching torch's view+permute.
    pred = x_nhwc.reshape(b, g, g, a, bp).transpose(0, 3, 1, 2, 4)
    r = b * a * g * g
    total = r * bp

    # Flatten to a lane-dense (rows, 128) slab so every decode store is a full
    # unmasked vst; per-element add/mul terms are generated inside the kernel.
    rows = pl.cdiv(total, 128)
    tr = 256 if rows >= 256 else _round_up(rows, 16)
    rows_p = _round_up(rows, tr)
    flat_p = jnp.pad(pred.reshape(-1), (0, rows_p * 128 - total)).reshape(rows_p, 128)

    blk_spec = pl.BlockSpec((tr, 128), lambda i: (i, 0))
    out = pl.pallas_call(
        _make_yolo_decode_kernel(tr, g, stride, anchors, bp),
        out_shape=jax.ShapeDtypeStruct((rows_p, 128), jnp.float32),
        grid=(rows_p // tr,),
        in_specs=[blk_spec],
        out_specs=blk_spec,
        compiler_params=_CP_PAR1,
    )(flat_p)
    return out.reshape(-1)[:total].reshape(b, a * g * g, bp)


# --------------------------------------------------------------------- parameter setup
def create_params(blocks, key):
    """Deterministic synthetic parameters mirroring create_modules().

    Eval-mode BatchNorm (running stats) is folded into a per-channel
    (scale, shift) pair so BN convs share the single fused conv kernel.
    """
    net_info = blocks[0]
    prev_filters = int(net_info.get("channels", 3))
    output_filters = []
    params = []
    for i, block in enumerate(blocks[1:]):
        p = None
        filters = prev_filters
        t = block["type"]
        if t == "convolutional":
            filters = int(block["filters"])
            k = int(block["size"])
            stride = int(block["stride"])
            padding = int(block["pad"])
            bn = int(block.get("batch_normalize", 0))
            pad = (k - 1) // 2 if padding else 0
            key, k1, k2, k3, k4, k5 = jax.random.split(key, 6)
            kdim = k * k * prev_filters
            kp = _round_up(kdim, 16)           # sublane-friendly contraction dim
            fp = _round_up(filters, 128)       # lane-dense output dim (pad, slice later)
            # torch weight layout (F, Cin, kh, kw) -> matmul layout (kh*kw*Cin, F)
            w = jax.random.normal(k1, (filters, prev_filters, k, k), jnp.float32) * 0.05
            w_mat = jnp.transpose(w, (2, 3, 1, 0)).reshape(kdim, filters)
            w_pad = jnp.pad(w_mat, ((0, kp - kdim), (0, fp - filters))).astype(jnp.bfloat16)
            if bn:
                gamma_v = 1.0 + 0.1 * jax.random.normal(k2, (filters,), jnp.float32)
                beta_v = 0.1 * jax.random.normal(k3, (filters,), jnp.float32)
                run_mean = 0.1 * jax.random.normal(k4, (filters,), jnp.float32)
                run_var = 1.0 + 0.1 * jnp.abs(jax.random.normal(k5, (filters,), jnp.float32))
                scale_v = gamma_v * jax.lax.rsqrt(run_var + 1e-5)   # eval-mode BN fold
                shift_v = beta_v - run_mean * scale_v
            else:
                scale_v = jnp.ones((filters,), jnp.float32)
                shift_v = 0.1 * jax.random.normal(k3, (filters,), jnp.float32)  # conv bias
            scale = jnp.pad(scale_v, (0, fp - filters))
            shift = jnp.pad(shift_v, (0, fp - filters))
            p = dict(w_pad=w_pad, scale=scale, shift=shift, k=k, stride=stride, pad=pad,
                     leaky=(block["activation"] == "leaky"), filters=filters)
        elif t == "route":
            layers = [int(v) for v in block["layers"].split(",")]
            start = layers[0]
            end = layers[1] if len(layers) > 1 else 0
            if start < 0:
                start = i + start
            if end < 0:
                end = i + end
            filters = output_filters[start] if end == 0 else output_filters[start] + output_filters[end]
        elif t == "yolo":
            mask = [int(m) for m in block["mask"].split(",")]
            anchors = [int(a) for a in block["anchors"].split(",")]
            anchors = [(anchors[n], anchors[n + 1]) for n in range(0, len(anchors), 2)]
            anchors = [anchors[m] for m in mask]
            p = dict(anchors=anchors)
        # 'upsample' / 'shortcut': no parameters, filters unchanged
        params.append(p)
        prev_filters = filters
        output_filters.append(filters)
    return net_info, params


# --------------------------------------------------------------------------- forward
def darknet_forward(blocks, params, x_nchw):
    """Inference path (targets=None) of Darknet.forward. Returns detections."""
    net_info = blocks[0]
    body = blocks[1:]
    # NCHW -> NHWC, bf16 activations end-to-end (in-kernel math stays f32).
    x = jnp.transpose(x_nchw, (0, 2, 3, 1)).astype(jnp.bfloat16)
    outputs = {}
    detections = None
    for i, block in enumerate(body):
        t = block["type"]
        if t == "convolutional":
            x = conv_layer(x, params[i])
        elif t == "upsample":
            s = int(block["stride"])
            # nearest-neighbor upsample: pure data replication (glue).
            # TODO(synk): fold into the next conv's index_map (src_row = out_row // s).
            x = jnp.repeat(jnp.repeat(x, s, axis=1), s, axis=2)
        elif t == "route":
            layers = [int(v) for v in block["layers"].split(",")]
            start = layers[0]
            end = layers[1] if len(layers) > 1 else 0
            if start < 0:
                start = i + start
            if end < 0:
                end = i + end
            if end == 0:
                x = outputs[start]
            else:
                # torch.cat(dim=1) over channels == NHWC axis -1
                x = jnp.concatenate([outputs[start], outputs[end]], axis=-1)
        elif t == "shortcut":
            frm = int(block["from"])
            # Tiny residual add: plain JAX so XLA fuses it (a dedicated Pallas
            # call here is pure launch/HBM-round-trip overhead).
            x = outputs[i - 1] + outputs[i + frm]
        elif t == "yolo":
            input_dim = int(net_info["height"])
            num_classes = int(block["classes"])
            x = yolo_layer(x, params[i]["anchors"], input_dim, num_classes)
            detections = x if detections is None else jnp.concatenate([detections, x], axis=1)
        outputs[i] = x
    return detections


# ------------------------------------------------------------------------------ main
if __name__ == "__main__":
    blocks = parse_cfg_string(CFG_STRING)
    key = jax.random.PRNGKey(0)
    key, pkey, xkey = jax.random.split(key, 3)
    net_info, params = create_params(blocks, pkey)

    batch, in_ch = 2, int(net_info["channels"])
    hw = int(net_info["height"])
    x = jax.random.normal(xkey, (batch, in_ch, hw, hw), jnp.float32)  # NCHW like torch

    fwd = functools.partial(darknet_forward, blocks, params)
    detections = jax.jit(fwd)(x)
    detections = jax.block_until_ready(detections)

    # two yolo heads: 3 anchors * (4*4 + 16*16) cells = 816 boxes, 5 + 4 classes = 9
    assert detections.shape == (batch, 816, 9), detections.shape
    assert bool(jnp.all(jnp.isfinite(detections)))
    print("KERNEL_OK")
</pallas_src>

<mosaic_0001>
module attributes {stable_mosaic.version = 11 : i64} {
  func.func @kernel(%arg0: i32, %arg1: memref<512x32xbf16, #tpu.memory_space<vmem>>, %arg2: memref<32x128xbf16, #tpu.memory_space<vmem>>, %arg3: memref<1x128xf32, #tpu.memory_space<vmem>>, %arg4: memref<1x128xf32, #tpu.memory_space<vmem>>, %arg5: memref<512x128xbf16, #tpu.memory_space<vmem>>) attributes {dimension_semantics = [#tpu.dimension_semantics<parallel>], iteration_bounds = array<i64: 1>, scalar_prefetch = 0 : i64, scratch_operands = 0 : i64, tpu.core_type = #tpu.core_type<tc>, window_params = [{transform_indices = @transform_0, window_bounds = array<i64: 512, 32>}, {pipeline_mode = #tpu.pipeline_mode<synchronous>, transform_indices = @transform_1, window_bounds = array<i64: 32, 128>}, {pipeline_mode = #tpu.pipeline_mode<synchronous>, transform_indices = @transform_2, window_bounds = array<i64: 1, 128>}, {pipeline_mode = #tpu.pipeline_mode<synchronous>, transform_indices = @transform_3, window_bounds = array<i64: 1, 128>}, {transform_indices = @transform_4, window_bounds = array<i64: 512, 128>}]} {
    %c0 = arith.constant 0 : index
    %c0_0 = arith.constant 0 : index
    %0 = vector.load %arg1[%c0, %c0_0] : memref<512x32xbf16, #tpu.memory_space<vmem>>, vector<512x32xbf16>
    %c0_1 = arith.constant 0 : index
    %c0_2 = arith.constant 0 : index
    %1 = vector.load %arg2[%c0_1, %c0_2] : memref<32x128xbf16, #tpu.memory_space<vmem>>, vector<32x128xbf16>
    %cst = arith.constant dense<0.000000e+00> : vector<512x128xf32>
    %2 = tpu.matmul %0, %1, %cst {dimension_numbers = #tpu.dot_dimension_numbers<[1], [0], [0], [1], [0, 0, 1, 1], [], []>} : vector<512x32xbf16>, vector<32x128xbf16>, vector<512x128xf32> -> vector<512x128xf32>
    %c0_3 = arith.constant 0 : index
    %c0_4 = arith.constant 0 : index
    %3 = vector.load %arg3[%c0_3, %c0_4] : memref<1x128xf32, #tpu.memory_space<vmem>>, vector<1x128xf32>
    %4 = vector.broadcast %3 : vector<1x128xf32> to vector<512x128xf32>
    %5 = arith.mulf %2, %4 : vector<512x128xf32>
    %c0_5 = arith.constant 0 : index
    %c0_6 = arith.constant 0 : index
    %6 = vector.load %arg4[%c0_5, %c0_6] : memref<1x128xf32, #tpu.memory_space<vmem>>, vector<1x128xf32>
    %7 = vector.broadcast %6 : vector<1x128xf32> to vector<512x128xf32>
    %8 = arith.addf %5, %7 : vector<512x128xf32>
    %cst_7 = arith.constant 0.000000e+00 : f32
    %9 = vector.broadcast %cst_7 : f32 to vector<512x128xf32>
    %10 = arith.cmpf ogt, %8, %9 : vector<512x128xf32>
    %cst_8 = arith.constant 1.000000e-01 : f32
    %11 = vector.broadcast %cst_8 : f32 to vector<512x128xf32>
    %12 = arith.mulf %11, %8 : vector<512x128xf32>
    %13 = arith.select %10, %8, %12 : vector<512x128xi1>, vector<512x128xf32>
    %14 = arith.truncf %13 : vector<512x128xf32> to vector<512x128xbf16>
    %c0_9 = arith.constant 0 : index
    %c0_10 = arith.constant 0 : index
    %15 = vector.load %arg5[%c0_9, %c0_10] : memref<512x128xbf16, #tpu.memory_space<vmem>>, vector<512x128xbf16>
    tpu.vector_store %arg5[%c0_9, %c0_10], %14 {strides = array<i32>} : memref<512x128xbf16, #tpu.memory_space<vmem>>, vector<512x128xbf16>,
    return
  }
  func.func @transform_0(%arg0: i32) -> (i32, i32) {
    %c0_i32 = arith.constant 0 : i32
    %c0_i32_0 = arith.constant 0 : i32
    return %arg0, %c0_i32 : i32, i32
  }
  func.func @transform_1(%arg0: i32) -> (i32, i32) {
    %c0_i32 = arith.constant 0 : i32
    %c0_i32_0 = arith.constant 0 : i32
    %c0_i32_1 = arith.constant 0 : i32
    return %c0_i32, %c0_i32_0 : i32, i32
  }
  func.func @transform_2(%arg0: i32) -> (i32, i32) {
    %c0_i32 = arith.constant 0 : i32
    %c0_i32_0 = arith.constant 0 : i32
    %c0_i32_1 = arith.constant 0 : i32
    return %c0_i32, %c0_i32_0 : i32, i32
  }
  func.func @transform_3(%arg0: i32) -> (i32, i32) {
    %c0_i32 = arith.constant 0 : i32
    %c0_i32_0 = arith.constant 0 : i32
    %c0_i32_1 = arith.constant 0 : i32
    return %c0_i32, %c0_i32_0 : i32, i32
  }
  func.func @transform_4(%arg0: i32) -> (i32, i32) {
    %c0_i32 = arith.constant 0 : i32
    %c0_i32_0 = arith.constant 0 : i32
    return %arg0, %c0_i32 : i32, i32
  }
}

module attributes {stable_mosaic.version = 11 : i64} {
  func.func @kernel(%arg0: i32, %arg1: memref<512x80xbf16, #tpu.memory_space<vmem>>, %arg2: memref<80x128xbf16, #tpu.memory_space<vmem>>, %arg3: memref<1x128xf32, #tpu.memory_space<vmem>>, %arg4: memref<1x128xf32, #tpu.memory_space<vmem>>, %arg5: memref<512x128xbf16, #tpu.memory_space<vmem>>) attributes {dimension_semantics = [#tpu.dimension_semantics<parallel>], iteration_bounds = array<i64: 1>, scalar_prefetch = 0 : i64, scratch_operands = 0 : i64, tpu.core_type = #tpu.core_type<tc>, window_params = [{transform_indices = @transform_0, window_bounds = array<i64: 512, 80>}, {pipeline_mode = #tpu.pipeline_mode<synchronous>, transform_indices = @transform_1, window_bounds = array<i64: 80, 128>}, {pipeline_mode = #tpu.pipeline_mode<synchronous>, transform_indices = @transform_2, window_bounds = array<i64: 1, 128>}, {pipeline_mode = #tpu.pipeline_mode<synchronous>, transform_indices = @transform_3, window_bounds = array<i64: 1, 128>}, {transform_indices = @transform_4, window_bounds = array<i64: 512, 128>}]} {
    %c0 = arith.constant 0 : index
    %c0_0 = arith.constant 0 : index
    %0 = vector.load %arg1[%c0, %c0_0] : memref<512x80xbf16, #tpu.memory_space<vmem>>, vector<512x80xbf16>
    %c0_1 = arith.constant 0 : index
    %c0_2 = arith.constant 0 : index
    %1 = vector.load %arg2[%c0_1, %c0_2] : memref<80x128xbf16, #tpu.memory_space<vmem>>, vector<80x128xbf16>
    %cst = arith.constant dense<0.000000e+00> : vector<512x128xf32>
    %2 = tpu.matmul %0, %1, %cst {dimension_numbers = #tpu.dot_dimension_numbers<[1], [0], [0], [1], [0, 0, 1, 1], [], []>} : vector<512x80xbf16>, vector<80x128xbf16>, vector<512x128xf32> -> vector<512x128xf32>
    %c0_3 = arith.constant 0 : index
    %c0_4 = arith.constant 0 : index
    %3 = vector.load %arg3[%c0_3, %c0_4] : memref<1x128xf32, #tpu.memory_space<vmem>>, vector<1x128xf32>
    %4 = vector.broadcast %3 : vector<1x128xf32> to vector<512x128xf32>
    %5 = arith.mulf %2, %4 : vector<512x128xf32>
    %c0_5 = arith.constant 0 : index
    %c0_6 = arith.constant 0 : index
    %6 = vector.load %arg4[%c0_5, %c0_6] : memref<1x128xf32, #tpu.memory_space<vmem>>, vector<1x128xf32>
    %7 = vector.broadcast %6 : vector<1x128xf32> to vector<512x128xf32>
    %8 = arith.addf %5, %7 : vector<512x128xf32>
    %cst_7 = arith.constant 0.000000e+00 : f32
    %9 = vector.broadcast %cst_7 : f32 to vector<512x128xf32>
    %10 = arith.cmpf ogt, %8, %9 : vector<512x128xf32>
    %cst_8 = arith.constant 1.000000e-01 : f32
    %11 = vector.broadcast %cst_8 : f32 to vector<512x128xf32>
    %12 = arith.mulf %11, %8 : vector<512x128xf32>
    %13 = arith.select %10, %8, %12 : vector<512x128xi1>, vector<512x128xf32>
    %14 = arith.truncf %13 : vector<512x128xf32> to vector<512x128xbf16>
    %c0_9 = arith.constant 0 : index
    %c0_10 = arith.constant 0 : index
    %15 = vector.load %arg5[%c0_9, %c0_10] : memref<512x128xbf16, #tpu.memory_space<vmem>>, vector<512x128xbf16>
    tpu.vector_store %arg5[%c0_9, %c0_10], %14 {strides = array<i32>} : memref<512x128xbf16, #tpu.memory_space<vmem>>, vector<512x128xbf16>,
    return
  }
  func.func @transform_0(%arg0: i32) -> (i32, i32) {
    %c0_i32 = arith.constant 0 : i32
    %c0_i32_0 = arith.constant 0 : i32
    return %arg0, %c0_i32 : i32, i32
  }
  func.func @transform_1(%arg0: i32) -> (i32, i32) {
    %c0_i32 = arith.constant 0 : i32
    %c0_i32_0 = arith.constant 0 : i32
    %c0_i32_1 = arith.constant 0 : i32
    return %c0_i32, %c0_i32_0 : i32, i32
  }
  func.func @transform_2(%arg0: i32) -> (i32, i32) {
    %c0_i32 = arith.constant 0 : i32
    %c0_i32_0 = arith.constant 0 : i32
    %c0_i32_1 = arith.constant 0 : i32
    return %c0_i32, %c0_i32_0 : i32, i32
  }
  func.func @transform_3(%arg0: i32) -> (i32, i32) {
    %c0_i32 = arith.constant 0 : i32
    %c0_i32_0 = arith.constant 0 : i32
    %c0_i32_1 = arith.constant 0 : i32
    return %c0_i32, %c0_i32_0 : i32, i32
  }
  func.func @transform_4(%arg0: i32) -> (i32, i32) {
    %c0_i32 = arith.constant 0 : i32
    %c0_i32_0 = arith.constant 0 : i32
    return %arg0, %c0_i32 : i32, i32
  }
}

module attributes {stable_mosaic.version = 11 : i64} {
  func.func @kernel(%arg0: i32, %arg1: memref<128x80xbf16, #tpu.memory_space<vmem>>, %arg2: memref<80x128xbf16, #tpu.memory_space<vmem>>, %arg3: memref<1x128xf32, #tpu.memory_space<vmem>>, %arg4: memref<1x128xf32, #tpu.memory_space<vmem>>, %arg5: memref<128x128xbf16, #tpu.memory_space<vmem>>) attributes {dimension_semantics = [#tpu.dimension_semantics<parallel>], iteration_bounds = array<i64: 1>, scalar_prefetch = 0 : i64, scratch_operands = 0 : i64, tpu.core_type = #tpu.core_type<tc>, window_params = [{transform_indices = @transform_0, window_bounds = array<i64: 128, 80>}, {pipeline_mode = #tpu.pipeline_mode<synchronous>, transform_indices = @transform_1, window_bounds = array<i64: 80, 128>}, {pipeline_mode = #tpu.pipeline_mode<synchronous>, transform_indices = @transform_2, window_bounds = array<i64: 1, 128>}, {pipeline_mode = #tpu.pipeline_mode<synchronous>, transform_indices = @transform_3, window_bounds = array<i64: 1, 128>}, {transform_indices = @transform_4, window_bounds = array<i64: 128, 128>}]} {
    %c0 = arith.constant 0 : index
    %c0_0 = arith.constant 0 : index
    %0 = vector.load %arg1[%c0, %c0_0] : memref<128x80xbf16, #tpu.memory_space<vmem>>, vector<128x80xbf16>
    %c0_1 = arith.constant 0 : index
    %c0_2 = arith.constant 0 : index
    %1 = vector.load %arg2[%c0_1, %c0_2] : memref<80x128xbf16, #tpu.memory_space<vmem>>, vector<80x128xbf16>
    %cst = arith.constant dense<0.000000e+00> : vector<128x128xf32>
    %2 = tpu.matmul %0, %1, %cst {dimension_numbers = #tpu.dot_dimension_numbers<[1], [0], [0], [1], [0, 0, 1, 1], [], []>} : vector<128x80xbf16>, vector<80x128xbf16>, vector<128x128xf32> -> vector<128x128xf32>
    %c0_3 = arith.constant 0 : index
    %c0_4 = arith.constant 0 : index
    %3 = vector.load %arg3[%c0_3, %c0_4] : memref<1x128xf32, #tpu.memory_space<vmem>>, vector<1x128xf32>
    %4 = vector.broadcast %3 : vector<1x128xf32> to vector<128x128xf32>
    %5 = arith.mulf %2, %4 : vector<128x128xf32>
    %c0_5 = arith.constant 0 : index
    %c0_6 = arith.constant 0 : index
    %6 = vector.load %arg4[%c0_5, %c0_6] : memref<1x128xf32, #tpu.memory_space<vmem>>, vector<1x128xf32>
    %7 = vector.broadcast %6 : vector<1x128xf32> to vector<128x128xf32>
    %8 = arith.addf %5, %7 : vector<128x128xf32>
    %cst_7 = arith.constant 0.000000e+00 : f32
    %9 = vector.broadcast %cst_7 : f32 to vector<128x128xf32>
    %10 = arith.cmpf ogt, %8, %9 : vector<128x128xf32>
    %cst_8 = arith.constant 1.000000e-01 : f32
    %11 = vector.broadcast %cst_8 : f32 to vector<128x128xf32>
    %12 = arith.mulf %11, %8 : vector<128x128xf32>
    %13 = arith.select %10, %8, %12 : vector<128x128xi1>, vector<128x128xf32>
    %14 = arith.truncf %13 : vector<128x128xf32> to vector<128x128xbf16>
    %c0_9 = arith.constant 0 : index
    %c0_10 = arith.constant 0 : index
    %15 = vector.load %arg5[%c0_9, %c0_10] : memref<128x128xbf16, #tpu.memory_space<vmem>>, vector<128x128xbf16>
    tpu.vector_store %arg5[%c0_9, %c0_10], %14 {strides = array<i32>} : memref<128x128xbf16, #tpu.memory_space<vmem>>, vector<128x128xbf16>,
    return
  }
  func.func @transform_0(%arg0: i32) -> (i32, i32) {
    %c0_i32 = arith.constant 0 : i32
    %c0_i32_0 = arith.constant 0 : i32
    return %arg0, %c0_i32 : i32, i32
  }
  func.func @transform_1(%arg0: i32) -> (i32, i32) {
    %c0_i32 = arith.constant 0 : i32
    %c0_i32_0 = arith.constant 0 : i32
    %c0_i32_1 = arith.constant 0 : i32
    return %c0_i32, %c0_i32_0 : i32, i32
  }
  func.func @transform_2(%arg0: i32) -> (i32, i32) {
    %c0_i32 = arith.constant 0 : i32
    %c0_i32_0 = arith.constant 0 : i32
    %c0_i32_1 = arith.constant 0 : i32
    return %c0_i32, %c0_i32_0 : i32, i32
  }
  func.func @transform_3(%arg0: i32) -> (i32, i32) {
    %c0_i32 = arith.constant 0 : i32
    %c0_i32_0 = arith.constant 0 : i32
    %c0_i32_1 = arith.constant 0 : i32
    return %c0_i32, %c0_i32_0 : i32, i32
  }
  func.func @transform_4(%arg0: i32) -> (i32, i32) {
    %c0_i32 = arith.constant 0 : i32
    %c0_i32_0 = arith.constant 0 : i32
    return %arg0, %c0_i32 : i32, i32
  }
}

module attributes {stable_mosaic.version = 11 : i64} {
  func.func @kernel(%arg0: i32, %arg1: memref<128x16xbf16, #tpu.memory_space<vmem>>, %arg2: memref<16x128xbf16, #tpu.memory_space<vmem>>, %arg3: memref<1x128xf32, #tpu.memory_space<vmem>>, %arg4: memref<1x128xf32, #tpu.memory_space<vmem>>, %arg5: memref<128x128xbf16, #tpu.memory_space<vmem>>) attributes {dimension_semantics = [#tpu.dimension_semantics<parallel>], iteration_bounds = array<i64: 1>, scalar_prefetch = 0 : i64, scratch_operands = 0 : i64, tpu.core_type = #tpu.core_type<tc>, window_params = [{transform_indices = @transform_0, window_bounds = array<i64: 128, 16>}, {pipeline_mode = #tpu.pipeline_mode<synchronous>, transform_indices = @transform_1, window_bounds = array<i64: 16, 128>}, {pipeline_mode = #tpu.pipeline_mode<synchronous>, transform_indices = @transform_2, window_bounds = array<i64: 1, 128>}, {pipeline_mode = #tpu.pipeline_mode<synchronous>, transform_indices = @transform_3, window_bounds = array<i64: 1, 128>}, {transform_indices = @transform_4, window_bounds = array<i64: 128, 128>}]} {
    %c0 = arith.constant 0 : index
    %c0_0 = arith.constant 0 : index
    %0 = vector.load %arg1[%c0, %c0_0] : memref<128x16xbf16, #tpu.memory_space<vmem>>, vector<128x16xbf16>
    %c0_1 = arith.constant 0 : index
    %c0_2 = arith.constant 0 : index
    %1 = vector.load %arg2[%c0_1, %c0_2] : memref<16x128xbf16, #tpu.memory_space<vmem>>, vector<16x128xbf16>
    %cst = arith.constant dense<0.000000e+00> : vector<128x128xf32>
    %2 = tpu.matmul %0, %1, %cst {dimension_numbers = #tpu.dot_dimension_numbers<[1], [0], [0], [1], [0, 0, 1, 1], [], []>} : vector<128x16xbf16>, vector<16x128xbf16>, vector<128x128xf32> -> vector<128x128xf32>
    %c0_3 = arith.constant 0 : index
    %c0_4 = arith.constant 0 : index
    %3 = vector.load %arg3[%c0_3, %c0_4] : memref<1x128xf32, #tpu.memory_space<vmem>>, vector<1x128xf32>
    %4 = vector.broadcast %3 : vector<1x128xf32> to vector<128x128xf32>
    %5 = arith.mulf %2, %4 : vector<128x128xf32>
    %c0_5 = arith.constant 0 : index
    %c0_6 = arith.constant 0 : index
    %6 = vector.load %arg4[%c0_5, %c0_6] : memref<1x128xf32, #tpu.memory_space<vmem>>, vector<1x128xf32>
    %7 = vector.broadcast %6 : vector<1x128xf32> to vector<128x128xf32>
    %8 = arith.addf %5, %7 : vector<128x128xf32>
    %cst_7 = arith.constant 0.000000e+00 : f32
    %9 = vector.broadcast %cst_7 : f32 to vector<128x128xf32>
    %10 = arith.cmpf ogt, %8, %9 : vector<128x128xf32>
    %cst_8 = arith.constant 1.000000e-01 : f32
    %11 = vector.broadcast %cst_8 : f32 to vector<128x128xf32>
    %12 = arith.mulf %11, %8 : vector<128x128xf32>
    %13 = arith.select %10, %8, %12 : vector<128x128xi1>, vector<128x128xf32>
    %14 = arith.truncf %13 : vector<128x128xf32> to vector<128x128xbf16>
    %c0_9 = arith.constant 0 : index
    %c0_10 = arith.constant 0 : index
    %15 = vector.load %arg5[%c0_9, %c0_10] : memref<128x128xbf16, #tpu.memory_space<vmem>>, vector<128x128xbf16>
    tpu.vector_store %arg5[%c0_9, %c0_10], %14 {strides = array<i32>} : memref<128x128xbf16, #tpu.memory_space<vmem>>, vector<128x128xbf16>,
    return
  }
  func.func @transform_0(%arg0: i32) -> (i32, i32) {
    %c0_i32 = arith.constant 0 : i32
    %c0_i32_0 = arith.constant 0 : i32
    return %arg0, %c0_i32 : i32, i32
  }
  func.func @transform_1(%arg0: i32) -> (i32, i32) {
    %c0_i32 = arith.constant 0 : i32
    %c0_i32_0 = arith.constant 0 : i32
    %c0_i32_1 = arith.constant 0 : i32
    return %c0_i32, %c0_i32_0 : i32, i32
  }
  func.func @transform_2(%arg0: i32) -> (i32, i32) {
    %c0_i32 = arith.constant 0 : i32
    %c0_i32_0 = arith.constant 0 : i32
    %c0_i32_1 = arith.constant 0 : i32
    return %c0_i32, %c0_i32_0 : i32, i32
  }
  func.func @transform_3(%arg0: i32) -> (i32, i32) {
    %c0_i32 = arith.constant 0 : i32
    %c0_i32_0 = arith.constant 0 : i32
    %c0_i32_1 = arith.constant 0 : i32
    return %c0_i32, %c0_i32_0 : i32, i32
  }
  func.func @transform_4(%arg0: i32) -> (i32, i32) {
    %c0_i32 = arith.constant 0 : i32
    %c0_i32_0 = arith.constant 0 : i32
    return %arg0, %c0_i32 : i32, i32
  }
}

module attributes {stable_mosaic.version = 11 : i64} {
  func.func @kernel(%arg0: i32, %arg1: memref<32x144xbf16, #tpu.memory_space<vmem>>, %arg2: memref<144x128xbf16, #tpu.memory_space<vmem>>, %arg3: memref<1x128xf32, #tpu.memory_space<vmem>>, %arg4: memref<1x128xf32, #tpu.memory_space<vmem>>, %arg5: memref<32x128xbf16, #tpu.memory_space<vmem>>) attributes {dimension_semantics = [#tpu.dimension_semantics<parallel>], iteration_bounds = array<i64: 1>, scalar_prefetch = 0 : i64, scratch_operands = 0 : i64, tpu.core_type = #tpu.core_type<tc>, window_params = [{transform_indices = @transform_0, window_bounds = array<i64: 32, 144>}, {pipeline_mode = #tpu.pipeline_mode<synchronous>, transform_indices = @transform_1, window_bounds = array<i64: 144, 128>}, {pipeline_mode = #tpu.pipeline_mode<synchronous>, transform_indices = @transform_2, window_bounds = array<i64: 1, 128>}, {pipeline_mode = #tpu.pipeline_mode<synchronous>, transform_indices = @transform_3, window_bounds = array<i64: 1, 128>}, {transform_indices = @transform_4, window_bounds = array<i64: 32, 128>}]} {
    %c0 = arith.constant 0 : index
    %c0_0 = arith.constant 0 : index
    %0 = vector.load %arg1[%c0, %c0_0] : memref<32x144xbf16, #tpu.memory_space<vmem>>, vector<32x144xbf16>
    %c0_1 = arith.constant 0 : index
    %c0_2 = arith.constant 0 : index
    %1 = vector.load %arg2[%c0_1, %c0_2] : memref<144x128xbf16, #tpu.memory_space<vmem>>, vector<144x128xbf16>
    %cst = arith.constant dense<0.000000e+00> : vector<32x128xf32>
    %2 = tpu.matmul %0, %1, %cst {dimension_numbers = #tpu.dot_dimension_numbers<[1], [0], [0], [1], [0, 0, 1, 1], [], []>} : vector<32x144xbf16>, vector<144x128xbf16>, vector<32x128xf32> -> vector<32x128xf32>
    %c0_3 = arith.constant 0 : index
    %c0_4 = arith.constant 0 : index
    %3 = vector.load %arg3[%c0_3, %c0_4] : memref<1x128xf32, #tpu.memory_space<vmem>>, vector<1x128xf32>
    %4 = vector.broadcast %3 : vector<1x128xf32> to vector<32x128xf32>
    %5 = arith.mulf %2, %4 : vector<32x128xf32>
    %c0_5 = arith.constant 0 : index
    %c0_6 = arith.constant 0 : index
    %6 = vector.load %arg4[%c0_5, %c0_6] : memref<1x128xf32, #tpu.memory_space<vmem>>, vector<1x128xf32>
    %7 = vector.broadcast %6 : vector<1x128xf32> to vector<32x128xf32>
    %8 = arith.addf %5, %7 : vector<32x128xf32>
    %cst_7 = arith.constant 0.000000e+00 : f32
    %9 = vector.broadcast %cst_7 : f32 to vector<32x128xf32>
    %10 = arith.cmpf ogt, %8, %9 : vector<32x128xf32>
    %cst_8 = arith.constant 1.000000e-01 : f32
    %11 = vector.broadcast %cst_8 : f32 to vector<32x128xf32>
    %12 = arith.mulf %11, %8 : vector<32x128xf32>
    %13 = arith.select %10, %8, %12 : vector<32x128xi1>, vector<32x128xf32>
    %14 = arith.truncf %13 : vector<32x128xf32> to vector<32x128xbf16>
    %c0_9 = arith.constant 0 : index
    %c0_10 = arith.constant 0 : index
    %15 = vector.load %arg5[%c0_9, %c0_10] : memref<32x128xbf16, #tpu.memory_space<vmem>>, vector<32x128xbf16>
    tpu.vector_store %arg5[%c0_9, %c0_10], %14 {strides = array<i32>} : memref<32x128xbf16, #tpu.memory_space<vmem>>, vector<32x128xbf16>,
    return
  }
  func.func @transform_0(%arg0: i32) -> (i32, i32) {
    %c0_i32 = arith.constant 0 : i32
    %c0_i32_0 = arith.constant 0 : i32
    return %arg0, %c0_i32 : i32, i32
  }
  func.func @transform_1(%arg0: i32) -> (i32, i32) {
    %c0_i32 = arith.constant 0 : i32
    %c0_i32_0 = arith.constant 0 : i32
    %c0_i32_1 = arith.constant 0 : i32
    return %c0_i32, %c0_i32_0 : i32, i32
  }
  func.func @transform_2(%arg0: i32) -> (i32, i32) {
    %c0_i32 = arith.constant 0 : i32
    %c0_i32_0 = arith.constant 0 : i32
    %c0_i32_1 = arith.constant 0 : i32
    return %c0_i32, %c0_i32_0 : i32, i32
  }
  func.func @transform_3(%arg0: i32) -> (i32, i32) {
    %c0_i32 = arith.constant 0 : i32
    %c0_i32_0 = arith.constant 0 : i32
    %c0_i32_1 = arith.constant 0 : i32
    return %c0_i32, %c0_i32_0 : i32, i32
  }
  func.func @transform_4(%arg0: i32) -> (i32, i32) {
    %c0_i32 = arith.constant 0 : i32
    %c0_i32_0 = arith.constant 0 : i32
    return %arg0, %c0_i32 : i32, i32
  }
}

module attributes {stable_mosaic.version = 11 : i64} {
  func.func @kernel(%arg0: i32, %arg1: memref<32x32xbf16, #tpu.memory_space<vmem>>, %arg2: memref<32x128xbf16, #tpu.memory_space<vmem>>, %arg3: memref<1x128xf32, #tpu.memory_space<vmem>>, %arg4: memref<1x128xf32, #tpu.memory_space<vmem>>, %arg5: memref<32x128xbf16, #tpu.memory_space<vmem>>) attributes {dimension_semantics = [#tpu.dimension_semantics<parallel>], iteration_bounds = array<i64: 1>, scalar_prefetch = 0 : i64, scratch_operands = 0 : i64, tpu.core_type = #tpu.core_type<tc>, window_params = [{transform_indices = @transform_0, window_bounds = array<i64: 32, 32>}, {pipeline_mode = #tpu.pipeline_mode<synchronous>, transform_indices = @transform_1, window_bounds = array<i64: 32, 128>}, {pipeline_mode = #tpu.pipeline_mode<synchronous>, transform_indices = @transform_2, window_bounds = array<i64: 1, 128>}, {pipeline_mode = #tpu.pipeline_mode<synchronous>, transform_indices = @transform_3, window_bounds = array<i64: 1, 128>}, {transform_indices = @transform_4, window_bounds = array<i64: 32, 128>}]} {
    %c0 = arith.constant 0 : index
    %c0_0 = arith.constant 0 : index
    %0 = vector.load %arg1[%c0, %c0_0] : memref<32x32xbf16, #tpu.memory_space<vmem>>, vector<32x32xbf16>
    %c0_1 = arith.constant 0 : index
    %c0_2 = arith.constant 0 : index
    %1 = vector.load %arg2[%c0_1, %c0_2] : memref<32x128xbf16, #tpu.memory_space<vmem>>, vector<32x128xbf16>
    %cst = arith.constant dense<0.000000e+00> : vector<32x128xf32>
    %2 = tpu.matmul %0, %1, %cst {dimension_numbers = #tpu.dot_dimension_numbers<[1], [0], [0], [1], [0, 0, 1, 1], [], []>} : vector<32x32xbf16>, vector<32x128xbf16>, vector<32x128xf32> -> vector<32x128xf32>
    %c0_3 = arith.constant 0 : index
    %c0_4 = arith.constant 0 : index
    %3 = vector.load %arg3[%c0_3, %c0_4] : memref<1x128xf32, #tpu.memory_space<vmem>>, vector<1x128xf32>
    %4 = vector.broadcast %3 : vector<1x128xf32> to vector<32x128xf32>
    %5 = arith.mulf %2, %4 : vector<32x128xf32>
    %c0_5 = arith.constant 0 : index
    %c0_6 = arith.constant 0 : index
    %6 = vector.load %arg4[%c0_5, %c0_6] : memref<1x128xf32, #tpu.memory_space<vmem>>, vector<1x128xf32>
    %7 = vector.broadcast %6 : vector<1x128xf32> to vector<32x128xf32>
    %8 = arith.addf %5, %7 : vector<32x128xf32>
    %9 = arith.truncf %8 : vector<32x128xf32> to vector<32x128xbf16>
    %c0_7 = arith.constant 0 : index
    %c0_8 = arith.constant 0 : index
    %10 = vector.load %arg5[%c0_7, %c0_8] : memref<32x128xbf16, #tpu.memory_space<vmem>>, vector<32x128xbf16>
    tpu.vector_store %arg5[%c0_7, %c0_8], %9 {strides = array<i32>} : memref<32x128xbf16, #tpu.memory_space<vmem>>, vector<32x128xbf16>,
    return
  }
  func.func @transform_0(%arg0: i32) -> (i32, i32) {
    %c0_i32 = arith.constant 0 : i32
    %c0_i32_0 = arith.constant 0 : i32
    return %arg0, %c0_i32 : i32, i32
  }
  func.func @transform_1(%arg0: i32) -> (i32, i32) {
    %c0_i32 = arith.constant 0 : i32
    %c0_i32_0 = arith.constant 0 : i32
    %c0_i32_1 = arith.constant 0 : i32
    return %c0_i32, %c0_i32_0 : i32, i32
  }
  func.func @transform_2(%arg0: i32) -> (i32, i32) {
    %c0_i32 = arith.constant 0 : i32
    %c0_i32_0 = arith.constant 0 : i32
    %c0_i32_1 = arith.constant 0 : i32
    return %c0_i32, %c0_i32_0 : i32, i32
  }
  func.func @transform_3(%arg0: i32) -> (i32, i32) {
    %c0_i32 = arith.constant 0 : i32
    %c0_i32_0 = arith.constant 0 : i32
    %c0_i32_1 = arith.constant 0 : i32
    return %c0_i32, %c0_i32_0 : i32, i32
  }
  func.func @transform_4(%arg0: i32) -> (i32, i32) {
    %c0_i32 = arith.constant 0 : i32
    %c0_i32_0 = arith.constant 0 : i32
    return %arg0, %c0_i32 : i32, i32
  }
}

module attributes {stable_mosaic.version = 11 : i64} {
  func.func @kernel(%arg0: i32, %arg1: memref<16x128xbf16, #tpu.memory_space<vmem>>, %arg2: memref<16x128xf32, #tpu.memory_space<vmem>>) attributes {dimension_semantics = [#tpu.dimension_semantics<parallel>], iteration_bounds = array<i64: 1>, scalar_prefetch = 0 : i64, scratch_operands = 0 : i64, tpu.core_type = #tpu.core_type<tc>, window_params = [{transform_indices = @transform_0, window_bounds = array<i64: 16, 128>}, {transform_indices = @transform_1, window_bounds = array<i64: 16, 128>}]} {
    %c0 = arith.constant 0 : index
    %c0_0 = arith.constant 0 : index
    %0 = vector.load %arg1[%c0, %c0_0] : memref<16x128xbf16, #tpu.memory_space<vmem>>, vector<16x128xbf16>
    %1 = arith.extf %0 : vector<16x128xbf16> to vector<16x128xf32>
    %c2048_i32 = arith.constant 2048 : i32
    %2 = arith.muli %arg0, %c2048_i32 : i32
    %3 = tpu.iota {dimensions = array<i32: 0>} : vector<16x128xi32>
    %4 = tpu.iota {dimensions = array<i32: 1>} : vector<16x128xi32>
    %c128_i32 = arith.constant 128 : i32
    %5 = vector.broadcast %c128_i32 : i32 to vector<16x128xi32>
    %6 = arith.muli %3, %5 : vector<16x128xi32>
    %7 = vector.broadcast %2 : i32 to vector<16x128xi32>
    %8 = arith.addi %7, %6 : vector<16x128xi32>
    %9 = arith.addi %8, %4 : vector<16x128xi32>
    %10 = arith.sitofp %9 : vector<16x128xi32> to vector<16x128xf32>
    %cst = arith.constant 9.000000e+00 : f32
    %11 = vector.broadcast %cst : f32 to vector<16x128xf32>
    %12 = arith.divf %10, %11 : vector<16x128xf32>
    %13 = math.floor %12 : vector<16x128xf32>
    %cst_1 = arith.constant 9.000000e+00 : f32
    %14 = vector.broadcast %cst_1 : f32 to vector<16x128xf32>
    %15 = arith.mulf %13, %14 : vector<16x128xf32>
    %16 = arith.subf %10, %15 : vector<16x128xf32>
    %cst_2 = arith.constant 4.000000e+00 : f32
    %17 = vector.broadcast %cst_2 : f32 to vector<16x128xf32>
    %18 = arith.divf %13, %17 : vector<16x128xf32>
    %19 = math.floor %18 : vector<16x128xf32>
    %cst_3 = arith.constant 4.000000e+00 : f32
    %20 = vector.broadcast %cst_3 : f32 to vector<16x128xf32>
    %21 = arith.mulf %19, %20 : vector<16x128xf32>
    %22 = arith.subf %13, %21 : vector<16x128xf32>
    %cst_4 = arith.constant 4.000000e+00 : f32
    %23 = vector.broadcast %cst_4 : f32 to vector<16x128xf32>
    %24 = arith.divf %13, %23 : vector<16x128xf32>
    %25 = math.floor %24 : vector<16x128xf32>
    %cst_5 = arith.constant 4.000000e+00 : f32
    %26 = vector.broadcast %cst_5 : f32 to vector<16x128xf32>
    %27 = arith.divf %25, %26 : vector<16x128xf32>
    %28 = math.floor %27 : vector<16x128xf32>
    %cst_6 = arith.constant 4.000000e+00 : f32
    %29 = vector.broadcast %cst_6 : f32 to vector<16x128xf32>
    %30 = arith.mulf %28, %29 : vector<16x128xf32>
    %31 = arith.subf %25, %30 : vector<16x128xf32>
    %cst_7 = arith.constant 1.600000e+01 : f32
    %32 = vector.broadcast %cst_7 : f32 to vector<16x128xf32>
    %33 = arith.divf %13, %32 : vector<16x128xf32>
    %34 = math.floor %33 : vector<16x128xf32>
    %cst_8 = arith.constant 3.000000e+00 : f32
    %35 = vector.broadcast %cst_8 : f32 to vector<16x128xf32>
    %36 = arith.divf %34, %35 : vector<16x128xf32>
    %37 = math.floor %36 : vector<16x128xf32>
    %cst_9 = arith.constant 3.000000e+00 : f32
    %38 = vector.broadcast %cst_9 : f32 to vector<16x128xf32>
    %39 = arith.mulf %37, %38 : vector<16x128xf32>
    %40 = arith.subf %34, %39 : vector<16x128xf32>
    %cst_10 = arith.constant 1.000000e+01 : f32
    %41 = vector.broadcast %cst_10 : f32 to vector<16x128xf32>
    %cst_11 = arith.constant 1.300000e+01 : f32
    %42 = vector.broadcast %cst_11 : f32 to vector<16x128xf32>
    %cst_12 = arith.constant 1.000000e+00 : f32
    %43 = vector.broadcast %cst_12 : f32 to vector<16x128xf32>
    %44 = arith.cmpf oeq, %40, %43 : vector<16x128xf32>
    %cst_13 = arith.constant 1.600000e+01 : f32
    %45 = vector.broadcast %cst_13 : f32 to vector<16x128xf32>
    %46 = arith.select %44, %45, %41 : vector<16x128xi1>, vector<16x128xf32>
    %cst_14 = arith.constant 1.000000e+00 : f32
    %47 = vector.broadcast %cst_14 : f32 to vector<16x128xf32>
    %48 = arith.cmpf oeq, %40, %47 : vector<16x128xf32>
    %cst_15 = arith.constant 3.000000e+01 : f32
    %49 = vector.broadcast %cst_15 : f32 to vector<16x128xf32>
    %50 = arith.select %48, %49, %42 : vector<16x128xi1>, vector<16x128xf32>
    %cst_16 = arith.constant 2.000000e+00 : f32
    %51 = vector.broadcast %cst_16 : f32 to vector<16x128xf32>
    %52 = arith.cmpf oeq, %40, %51 : vector<16x128xf32>
    %cst_17 = arith.constant 3.300000e+01 : f32
    %53 = vector.broadcast %cst_17 : f32 to vector<16x128xf32>
    %54 = arith.select %52, %53, %46 : vector<16x128xi1>, vector<16x128xf32>
    %cst_18 = arith.constant 2.000000e+00 : f32
    %55 = vector.broadcast %cst_18 : f32 to vector<16x128xf32>
    %56 = arith.cmpf oeq, %40, %55 : vector<16x128xf32>
    %cst_19 = arith.constant 2.300000e+01 : f32
    %57 = vector.broadcast %cst_19 : f32 to vector<16x128xf32>
    %58 = arith.select %56, %57, %50 : vector<16x128xi1>, vector<16x128xf32>
    %cst_20 = arith.constant 0.000000e+00 : f32
    %59 = vector.broadcast %cst_20 : f32 to vector<16x128xf32>
    %60 = arith.cmpf oeq, %16, %59 : vector<16x128xf32>
    %cst_21 = arith.constant 1.000000e+00 : f32
    %61 = vector.broadcast %cst_21 : f32 to vector<16x128xf32>
    %62 = arith.cmpf oeq, %16, %61 : vector<16x128xf32>
    %cst_22 = arith.constant 0.000000e+00 : f32
    %63 = vector.broadcast %cst_22 : f32 to vector<16x128xf32>
    %64 = arith.select %62, %31, %63 : vector<16x128xi1>, vector<16x128xf32>
    %65 = arith.select %60, %22, %64 : vector<16x128xi1>, vector<16x128xf32>
    %cst_23 = arith.constant 2.000000e+00 : f32
    %66 = vector.broadcast %cst_23 : f32 to vector<16x128xf32>
    %67 = arith.cmpf olt, %16, %66 : vector<16x128xf32>
    %cst_24 = arith.constant 2.000000e+00 : f32
    %68 = vector.broadcast %cst_24 : f32 to vector<16x128xf32>
    %69 = arith.cmpf oeq, %16, %68 : vector<16x128xf32>
    %cst_25 = arith.constant 3.000000e+00 : f32
    %70 = vector.broadcast %cst_25 : f32 to vector<16x128xf32>
    %71 = arith.cmpf oeq, %16, %70 : vector<16x128xf32>
    %cst_26 = arith.constant 1.000000e+00 : f32
    %72 = vector.broadcast %cst_26 : f32 to vector<16x128xf32>
    %73 = arith.select %71, %58, %72 : vector<16x128xi1>, vector<16x128xf32>
    %74 = arith.select %69, %54, %73 : vector<16x128xi1>, vector<16x128xf32>
    %cst_27 = arith.constant 4.000000e+00 : f32
    %75 = vector.broadcast %cst_27 : f32 to vector<16x128xf32>
    %76 = arith.select %67, %75, %74 : vector<16x128xi1>, vector<16x128xf32>
    %cst_28 = arith.constant 2.000000e+00 : f32
    %77 = vector.broadcast %cst_28 : f32 to vector<16x128xf32>
    %78 = arith.cmpf oeq, %16, %77 : vector<16x128xf32>
    %cst_29 = arith.constant 3.000000e+00 : f32
    %79 = vector.broadcast %cst_29 : f32 to vector<16x128xf32>
    %80 = arith.cmpf oeq, %16, %79 : vector<16x128xf32>
    %81 = arith.ori %78, %80 : vector<16x128xi1>
    %82 = math.exp %1 : vector<16x128xf32>
    %cst_30 = arith.constant 1.000000e+00 : f32
    %83 = vector.broadcast %cst_30 : f32 to vector<16x128xf32>
    %84 = arith.addf %83, %82 : vector<16x128xf32>
    %85 = tpu.reciprocal %84 {approx = true} : vector<16x128xf32> -> vector<16x128xf32>
    %86 = arith.mulf %82, %85 : vector<16x128xf32>
    %87 = arith.select %81, %82, %86 : vector<16x128xi1>, vector<16x128xf32>
    %88 = arith.addf %87, %65 : vector<16x128xf32>
    %89 = arith.mulf %88, %76 : vector<16x128xf32>
    %c0_31 = arith.constant 0 : index
    %c0_32 = arith.constant 0 : index
    %90 = vector.load %arg2[%c0_31, %c0_32] : memref<16x128xf32, #tpu.memory_space<vmem>>, vector<16x128xf32>
    tpu.vector_store %arg2[%c0_31, %c0_32], %89 {strides = array<i32>} : memref<16x128xf32, #tpu.memory_space<vmem>>, vector<16x128xf32>,
    return
  }
  func.func @transform_0(%arg0: i32) -> (i32, i32) {
    %c0_i32 = arith.constant 0 : i32
    %c0_i32_0 = arith.constant 0 : i32
    return %arg0, %c0_i32 : i32, i32
  }
  func.func @transform_1(%arg0: i32) -> (i32, i32) {
    %c0_i32 = arith.constant 0 : i32
    %c0_i32_0 = arith.constant 0 : i32
    return %arg0, %c0_i32 : i32, i32
  }
}

module attributes {stable_mosaic.version = 11 : i64} {
  func.func @kernel(%arg0: i32, %arg1: memref<512x224xbf16, #tpu.memory_space<vmem>>, %arg2: memref<224x128xbf16, #tpu.memory_space<vmem>>, %arg3: memref<1x128xf32, #tpu.memory_space<vmem>>, %arg4: memref<1x128xf32, #tpu.memory_space<vmem>>, %arg5: memref<512x128xbf16, #tpu.memory_space<vmem>>) attributes {dimension_semantics = [#tpu.dimension_semantics<parallel>], iteration_bounds = array<i64: 1>, scalar_prefetch = 0 : i64, scratch_operands = 0 : i64, tpu.core_type = #tpu.core_type<tc>, window_params = [{transform_indices = @transform_0, window_bounds = array<i64: 512, 224>}, {pipeline_mode = #tpu.pipeline_mode<synchronous>, transform_indices = @transform_1, window_bounds = array<i64: 224, 128>}, {pipeline_mode = #tpu.pipeline_mode<synchronous>, transform_indices = @transform_2, window_bounds = array<i64: 1, 128>}, {pipeline_mode = #tpu.pipeline_mode<synchronous>, transform_indices = @transform_3, window_bounds = array<i64: 1, 128>}, {transform_indices = @transform_4, window_bounds = array<i64: 512, 128>}]} {
    %c0 = arith.constant 0 : index
    %c0_0 = arith.constant 0 : index
    %0 = vector.load %arg1[%c0, %c0_0] : memref<512x224xbf16, #tpu.memory_space<vmem>>, vector<512x224xbf16>
    %c0_1 = arith.constant 0 : index
    %c0_2 = arith.constant 0 : index
    %1 = vector.load %arg2[%c0_1, %c0_2] : memref<224x128xbf16, #tpu.memory_space<vmem>>, vector<224x128xbf16>
    %cst = arith.constant dense<0.000000e+00> : vector<512x128xf32>
    %2 = tpu.matmul %0, %1, %cst {dimension_numbers = #tpu.dot_dimension_numbers<[1], [0], [0], [1], [0, 0, 1, 1], [], []>} : vector<512x224xbf16>, vector<224x128xbf16>, vector<512x128xf32> -> vector<512x128xf32>
    %c0_3 = arith.constant 0 : index
    %c0_4 = arith.constant 0 : index
    %3 = vector.load %arg3[%c0_3, %c0_4] : memref<1x128xf32, #tpu.memory_space<vmem>>, vector<1x128xf32>
    %4 = vector.broadcast %3 : vector<1x128xf32> to vector<512x128xf32>
    %5 = arith.mulf %2, %4 : vector<512x128xf32>
    %c0_5 = arith.constant 0 : index
    %c0_6 = arith.constant 0 : index
    %6 = vector.load %arg4[%c0_5, %c0_6] : memref<1x128xf32, #tpu.memory_space<vmem>>, vector<1x128xf32>
    %7 = vector.broadcast %6 : vector<1x128xf32> to vector<512x128xf32>
    %8 = arith.addf %5, %7 : vector<512x128xf32>
    %9 = arith.truncf %8 : vector<512x128xf32> to vector<512x128xbf16>
    %c0_7 = arith.constant 0 : index
    %c0_8 = arith.constant 0 : index
    %10 = vector.load %arg5[%c0_7, %c0_8] : memref<512x128xbf16, #tpu.memory_space<vmem>>, vector<512x128xbf16>
    tpu.vector_store %arg5[%c0_7, %c0_8], %9 {strides = array<i32>} : memref<512x128xbf16, #tpu.memory_space<vmem>>, vector<512x128xbf16>,
    return
  }
  func.func @transform_0(%arg0: i32) -> (i32, i32) {
    %c0_i32 = arith.constant 0 : i32
    %c0_i32_0 = arith.constant 0 : i32
    return %arg0, %c0_i32 : i32, i32
  }
  func.func @transform_1(%arg0: i32) -> (i32, i32) {
    %c0_i32 = arith.constant 0 : i32
    %c0_i32_0 = arith.constant 0 : i32
    %c0_i32_1 = arith.constant 0 : i32
    return %c0_i32, %c0_i32_0 : i32, i32
  }
  func.func @transform_2(%arg0: i32) -> (i32, i32) {
    %c0_i32 = arith.constant 0 : i32
    %c0_i32_0 = arith.constant 0 : i32
    %c0_i32_1 = arith.constant 0 : i32
    return %c0_i32, %c0_i32_0 : i32, i32
  }
  func.func @transform_3(%arg0: i32) -> (i32, i32) {
    %c0_i32 = arith.constant 0 : i32
    %c0_i32_0 = arith.constant 0 : i32
    %c0_i32_1 = arith.constant 0 : i32
    return %c0_i32, %c0_i32_0 : i32, i32
  }
  func.func @transform_4(%arg0: i32) -> (i32, i32) {
    %c0_i32 = arith.constant 0 : i32
    %c0_i32_0 = arith.constant 0 : i32
    return %arg0, %c0_i32 : i32, i32
  }
}

module attributes {stable_mosaic.version = 11 : i64} {
  func.func @kernel(%arg0: i32, %arg1: memref<112x128xbf16, #tpu.memory_space<vmem>>, %arg2: memref<112x128xf32, #tpu.memory_space<vmem>>) attributes {dimension_semantics = [#tpu.dimension_semantics<parallel>], iteration_bounds = array<i64: 1>, scalar_prefetch = 0 : i64, scratch_operands = 0 : i64, tpu.core_type = #tpu.core_type<tc>, window_params = [{transform_indices = @transform_0, window_bounds = array<i64: 112, 128>}, {transform_indices = @transform_1, window_bounds = array<i64: 112, 128>}]} {
    %c0 = arith.constant 0 : index
    %c0_0 = arith.constant 0 : index
    %0 = vector.load %arg1[%c0, %c0_0] : memref<112x128xbf16, #tpu.memory_space<vmem>>, vector<112x128xbf16>
    %1 = arith.extf %0 : vector<112x128xbf16> to vector<112x128xf32>
    %c14336_i32 = arith.constant 14336 : i32
    %2 = arith.muli %arg0, %c14336_i32 : i32
    %3 = tpu.iota {dimensions = array<i32: 0>} : vector<112x128xi32>
    %4 = tpu.iota {dimensions = array<i32: 1>} : vector<112x128xi32>
    %c128_i32 = arith.constant 128 : i32
    %5 = vector.broadcast %c128_i32 : i32 to vector<112x128xi32>
    %6 = arith.muli %3, %5 : vector<112x128xi32>
    %7 = vector.broadcast %2 : i32 to vector<112x128xi32>
    %8 = arith.addi %7, %6 : vector<112x128xi32>
    %9 = arith.addi %8, %4 : vector<112x128xi32>
    %10 = arith.sitofp %9 : vector<112x128xi32> to vector<112x128xf32>
    %cst = arith.constant 9.000000e+00 : f32
    %11 = vector.broadcast %cst : f32 to vector<112x128xf32>
    %12 = arith.divf %10, %11 : vector<112x128xf32>
    %13 = math.floor %12 : vector<112x128xf32>
    %cst_1 = arith.constant 9.000000e+00 : f32
    %14 = vector.broadcast %cst_1 : f32 to vector<112x128xf32>
    %15 = arith.mulf %13, %14 : vector<112x128xf32>
    %16 = arith.subf %10, %15 : vector<112x128xf32>
    %cst_2 = arith.constant 1.600000e+01 : f32
    %17 = vector.broadcast %cst_2 : f32 to vector<112x128xf32>
    %18 = arith.divf %13, %17 : vector<112x128xf32>
    %19 = math.floor %18 : vector<112x128xf32>
    %cst_3 = arith.constant 1.600000e+01 : f32
    %20 = vector.broadcast %cst_3 : f32 to vector<112x128xf32>
    %21 = arith.mulf %19, %20 : vector<112x128xf32>
    %22 = arith.subf %13, %21 : vector<112x128xf32>
    %cst_4 = arith.constant 1.600000e+01 : f32
    %23 = vector.broadcast %cst_4 : f32 to vector<112x128xf32>
    %24 = arith.divf %13, %23 : vector<112x128xf32>
    %25 = math.floor %24 : vector<112x128xf32>
    %cst_5 = arith.constant 1.600000e+01 : f32
    %26 = vector.broadcast %cst_5 : f32 to vector<112x128xf32>
    %27 = arith.divf %25, %26 : vector<112x128xf32>
    %28 = math.floor %27 : vector<112x128xf32>
    %cst_6 = arith.constant 1.600000e+01 : f32
    %29 = vector.broadcast %cst_6 : f32 to vector<112x128xf32>
    %30 = arith.mulf %28, %29 : vector<112x128xf32>
    %31 = arith.subf %25, %30 : vector<112x128xf32>
    %cst_7 = arith.constant 2.560000e+02 : f32
    %32 = vector.broadcast %cst_7 : f32 to vector<112x128xf32>
    %33 = arith.divf %13, %32 : vector<112x128xf32>
    %34 = math.floor %33 : vector<112x128xf32>
    %cst_8 = arith.constant 3.000000e+00 : f32
    %35 = vector.broadcast %cst_8 : f32 to vector<112x128xf32>
    %36 = arith.divf %34, %35 : vector<112x128xf32>
    %37 = math.floor %36 : vector<112x128xf32>
    %cst_9 = arith.constant 3.000000e+00 : f32
    %38 = vector.broadcast %cst_9 : f32 to vector<112x128xf32>
    %39 = arith.mulf %37, %38 : vector<112x128xf32>
    %40 = arith.subf %34, %39 : vector<112x128xf32>
    %cst_10 = arith.constant 3.000000e+01 : f32
    %41 = vector.broadcast %cst_10 : f32 to vector<112x128xf32>
    %cst_11 = arith.constant 6.100000e+01 : f32
    %42 = vector.broadcast %cst_11 : f32 to vector<112x128xf32>
    %cst_12 = arith.constant 1.000000e+00 : f32
    %43 = vector.broadcast %cst_12 : f32 to vector<112x128xf32>
    %44 = arith.cmpf oeq, %40, %43 : vector<112x128xf32>
    %cst_13 = arith.constant 6.200000e+01 : f32
    %45 = vector.broadcast %cst_13 : f32 to vector<112x128xf32>
    %46 = arith.select %44, %45, %41 : vector<112x128xi1>, vector<112x128xf32>
    %cst_14 = arith.constant 1.000000e+00 : f32
    %47 = vector.broadcast %cst_14 : f32 to vector<112x128xf32>
    %48 = arith.cmpf oeq, %40, %47 : vector<112x128xf32>
    %cst_15 = arith.constant 4.500000e+01 : f32
    %49 = vector.broadcast %cst_15 : f32 to vector<112x128xf32>
    %50 = arith.select %48, %49, %42 : vector<112x128xi1>, vector<112x128xf32>
    %cst_16 = arith.constant 2.000000e+00 : f32
    %51 = vector.broadcast %cst_16 : f32 to vector<112x128xf32>
    %52 = arith.cmpf oeq, %40, %51 : vector<112x128xf32>
    %cst_17 = arith.constant 5.900000e+01 : f32
    %53 = vector.broadcast %cst_17 : f32 to vector<112x128xf32>
    %54 = arith.select %52, %53, %46 : vector<112x128xi1>, vector<112x128xf32>
    %cst_18 = arith.constant 2.000000e+00 : f32
    %55 = vector.broadcast %cst_18 : f32 to vector<112x128xf32>
    %56 = arith.cmpf oeq, %40, %55 : vector<112x128xf32>
    %cst_19 = arith.constant 1.190000e+02 : f32
    %57 = vector.broadcast %cst_19 : f32 to vector<112x128xf32>
    %58 = arith.select %56, %57, %50 : vector<112x128xi1>, vector<112x128xf32>
    %cst_20 = arith.constant 0.000000e+00 : f32
    %59 = vector.broadcast %cst_20 : f32 to vector<112x128xf32>
    %60 = arith.cmpf oeq, %16, %59 : vector<112x128xf32>
    %cst_21 = arith.constant 1.000000e+00 : f32
    %61 = vector.broadcast %cst_21 : f32 to vector<112x128xf32>
    %62 = arith.cmpf oeq, %16, %61 : vector<112x128xf32>
    %cst_22 = arith.constant 0.000000e+00 : f32
    %63 = vector.broadcast %cst_22 : f32 to vector<112x128xf32>
    %64 = arith.select %62, %31, %63 : vector<112x128xi1>, vector<112x128xf32>
    %65 = arith.select %60, %22, %64 : vector<112x128xi1>, vector<112x128xf32>
    %cst_23 = arith.constant 2.000000e+00 : f32
    %66 = vector.broadcast %cst_23 : f32 to vector<112x128xf32>
    %67 = arith.cmpf olt, %16, %66 : vector<112x128xf32>
    %cst_24 = arith.constant 2.000000e+00 : f32
    %68 = vector.broadcast %cst_24 : f32 to vector<112x128xf32>
    %69 = arith.cmpf oeq, %16, %68 : vector<112x128xf32>
    %cst_25 = arith.constant 3.000000e+00 : f32
    %70 = vector.broadcast %cst_25 : f32 to vector<112x128xf32>
    %71 = arith.cmpf oeq, %16, %70 : vector<112x128xf32>
    %cst_26 = arith.constant 1.000000e+00 : f32
    %72 = vector.broadcast %cst_26 : f32 to vector<112x128xf32>
    %73 = arith.select %71, %58, %72 : vector<112x128xi1>, vector<112x128xf32>
    %74 = arith.select %69, %54, %73 : vector<112x128xi1>, vector<112x128xf32>
    %cst_27 = arith.constant 1.000000e+00 : f32
    %75 = vector.broadcast %cst_27 : f32 to vector<112x128xf32>
    %76 = arith.select %67, %75, %74 : vector<112x128xi1>, vector<112x128xf32>
    %cst_28 = arith.constant 2.000000e+00 : f32
    %77 = vector.broadcast %cst_28 : f32 to vector<112x128xf32>
    %78 = arith.cmpf oeq, %16, %77 : vector<112x128xf32>
    %cst_29 = arith.constant 3.000000e+00 : f32
    %79 = vector.broadcast %cst_29 : f32 to vector<112x128xf32>
    %80 = arith.cmpf oeq, %16, %79 : vector<112x128xf32>
    %81 = arith.ori %78, %80 : vector<112x128xi1>
    %82 = math.exp %1 : vector<112x128xf32>
    %cst_30 = arith.constant 1.000000e+00 : f32
    %83 = vector.broadcast %cst_30 : f32 to vector<112x128xf32>
    %84 = arith.addf %83, %82 : vector<112x128xf32>
    %85 = tpu.reciprocal %84 {approx = true} : vector<112x128xf32> -> vector<112x128xf32>
    %86 = arith.mulf %82, %85 : vector<112x128xf32>
    %87 = arith.select %81, %82, %86 : vector<112x128xi1>, vector<112x128xf32>
    %88 = arith.addf %87, %65 : vector<112x128xf32>
    %89 = arith.mulf %88, %76 : vector<112x128xf32>
    %c0_31 = arith.constant 0 : index
    %c0_32 = arith.constant 0 : index
    %90 = vector.load %arg2[%c0_31, %c0_32] : memref<112x128xf32, #tpu.memory_space<vmem>>, vector<112x128xf32>
    tpu.vector_store %arg2[%c0_31, %c0_32], %89 {strides = array<i32>} : memref<112x128xf32, #tpu.memory_space<vmem>>, vector<112x128xf32>,
    return
  }
  func.func @transform_0(%arg0: i32) -> (i32, i32) {
    %c0_i32 = arith.constant 0 : i32
    %c0_i32_0 = arith.constant 0 : i32
    return %arg0, %c0_i32 : i32, i32
  }
  func.func @transform_1(%arg0: i32) -> (i32, i32) {
    %c0_i32 = arith.constant 0 : i32
    %c0_i32_0 = arith.constant 0 : i32
    return %arg0, %c0_i32 : i32, i32
  }
}

</mosaic_0001>

<bundles_post_ra>
// kernel: darknet_forward.10
= control target key start
LH: loop header
LB: loop body
LE: loop exit
PB: predicated region body
PF: predicated region fallthrough
CT: control target
= control target key end

     0   :  { %vm258_vm0 = vcmask 261120   ;;  %s1778_s1 = inlined_call_operand.vmem [shape: bf16[32,128], index: 1, kind: input, shape index: {}]   ;;  %s1779_s0 = inlined_call_operand.vmem [shape: bf16[512,32], index: 0, kind: input, shape index: {}]   ;;  %s1780_s2 = inlined_call_operand.vmem [shape: f32[1,128], index: 2, kind: input, shape index: {}]   ;;  %s1781_s3 = inlined_call_operand.vmem [shape: f32[1,128], index: 3, kind: input, shape index: {}]   ;;  %s1782_s4 = inlined_call_operand.vmem [shape: bf16[512,128], index: 4, kind: output, shape index: {}]  }
   0x1   :  { %v1185_v0 = vld [vmem:[%s1778_s1 + $0x8] sm:$0xff]  ;;  %v1184_v1 = vld [vmem:[%s1778_s1] sm:$0xff]  ;;  %v1154_v10 = vld [vmem:[%s1779_s0 + $0x10] sm:$0xff] }
   0x2   :  { %361 = vmatpush.bf16.msra.mxu0 %v1185_v0  ;;  %1377 = vmatpush.bf16.msra.mxu1 %v1185_v0  ;;  %v1152_v2 = vld [vmem:[%s1779_s0] sm:$0xff]  ;;  %v1153_v6 = vld [vmem:[%s1779_s0 + $0x8] sm:$0xff]  ;;  %v1162_v11 = vld [vmem:[%s1779_s0 + $0x50] sm:$0xff] }
   0x3   :  { %1378 = vmatpush.bf16.msra.mxu2 %v1185_v0  ;;  %1379 = vmatpush.bf16.msra.mxu3 %v1185_v0  ;;  %v1160_v3 = vld [vmem:[%s1779_s0 + $0x40] sm:$0xff]  ;;  %v1161_v7 = vld [vmem:[%s1779_s0 + $0x48] sm:$0xff]  ;;  %v1170_v12 = vld [vmem:[%s1779_s0 + $0x90] sm:$0xff] }
   0x4   :  { %v1168_v4 = vld [vmem:[%s1779_s0 + $0x80] sm:$0xff]  ;;  %v1169_v8 = vld [vmem:[%s1779_s0 + $0x88] sm:$0xff]  ;;  %v1178_v13 = vld [vmem:[%s1779_s0 + $0xd0] sm:$0xff] }
   0x5   :  { %v1176_v5 = vld [vmem:[%s1779_s0 + $0xc0] sm:$0xff]  ;;  %v1177_v9 = vld [vmem:[%s1779_s0 + $0xc8] sm:$0xff]  ;;  %v1155_v14 = vld [vmem:[%s1779_s0 + $0x18] sm:$0xff] }
   0x6   :  { %362 = vmatpush.bf16.msra.mxu0 %v1184_v1  ;;  %1380 = vmatpush.bf16.msra.mxu1 %v1184_v1  ;;  %v1163_v15 = vld [vmem:[%s1779_s0 + $0x58] sm:$0xff]  ;;  %v1156_v18 = vld [vmem:[%s1779_s0 + $0x20] sm:$0xff]  ;;  %v1157_v22 = vld [vmem:[%s1779_s0 + $0x28] sm:$0xff] }
   0x7   :  { %1381 = vmatpush.bf16.msra.mxu2 %v1184_v1  ;;  %1382 = vmatpush.bf16.msra.mxu3 %v1184_v1  ;;  %v1171_v16 = vld [vmem:[%s1779_s0 + $0x98] sm:$0xff]  ;;  %v1164_v19 = vld [vmem:[%s1779_s0 + $0x60] sm:$0xff]  ;;  %v1165_v23 = vld [vmem:[%s1779_s0 + $0x68] sm:$0xff] }
   0x8   :  { %v1179_v17 = vld [vmem:[%s1779_s0 + $0xd8] sm:$0xff]  ;;  %v1172_v20 = vld [vmem:[%s1779_s0 + $0xa0] sm:$0xff]  ;;  %v1173_v24 = vld [vmem:[%s1779_s0 + $0xa8] sm:$0xff] }
   0x9   :  { %1120 = vmatmul.msk.bf16.vlgmr.msra.gmra.mxu0 %vm258_vm0, %v1152_v2  ;;  %1128 = vmatmul.msk.bf16.vlgmr.msra.gmra.mxu1 %vm258_vm0, %v1160_v3  ;;  %v1180_v21 = vld [vmem:[%s1779_s0 + $0xe0] sm:$0xff]  ;;  %v1181_v25 = vld [vmem:[%s1779_s0 + $0xe8] sm:$0xff]  ;;  %v1158_v26 = vld [vmem:[%s1779_s0 + $0x30] sm:$0xff] }
   0xa   :  { %1136 = vmatmul.msk.bf16.vlgmr.msra.gmra.mxu2 %vm258_vm0, %v1168_v4  ;;  %1144 = vmatmul.msk.bf16.vlgmr.msra.gmra.mxu3 %vm258_vm0, %v1176_v5  ;;  %v1166_v27 = vld [vmem:[%s1779_s0 + $0x70] sm:$0xff]  ;;  %v1159_v30 = vld [vmem:[%s1779_s0 + $0x38] sm:$0xff]  ;;  %v1547_v34 = vld [vmem:[%s1780_s2] ss:$0 sm:$0xff] }
   0xb   :  { %v1174_v28 = vld [vmem:[%s1779_s0 + $0xb0] sm:$0xff]  ;;  %v1167_v31 = vld [vmem:[%s1779_s0 + $0x78] sm:$0xff]  ;;  %v1553_v38 = vld [vmem:[%s1781_s3] ss:$0 sm:$0xff] }
   0xc   :  { %v1182_v29 = vld [vmem:[%s1779_s0 + $0xf0] sm:$0xff]  ;;  %v1175_v32 = vld [vmem:[%s1779_s0 + $0xb8] sm:$0xff] }
   0xd   :  { %v1183_v33 = vld [vmem:[%s1779_s0 + $0xf8] sm:$0xff] }
  0x19   :  { %1121 = vmatmul.msk.bf16.gmra.mxu0 %vm258_vm0, %v1153_v6  ;;  %1129 = vmatmul.msk.bf16.gmra.mxu1 %vm258_vm0, %v1161_v7 }
  0x1a   :  { %1137 = vmatmul.msk.bf16.gmra.mxu2 %vm258_vm0, %v1169_v8  ;;  %1145 = vmatmul.msk.bf16.gmra.mxu3 %vm258_vm0, %v1177_v9 }
  0x29   :  { %1122 = vmatmul.msk.bf16.gmra.mxu0 %vm258_vm0, %v1154_v10  ;;  %1130 = vmatmul.msk.bf16.gmra.mxu1 %vm258_vm0, %v1162_v11 }
  0x2a   :  { %1138 = vmatmul.msk.bf16.gmra.mxu2 %vm258_vm0, %v1170_v12  ;;  %1146 = vmatmul.msk.bf16.gmra.mxu3 %vm258_vm0, %v1178_v13 }
  0x39   :  { %1123 = vmatmul.msk.bf16.gmra.mxu0 %vm258_vm0, %v1155_v14  ;;  %1131 = vmatmul.msk.bf16.gmra.mxu1 %vm258_vm0, %v1163_v15 }
  0x3a   :  { %1139 = vmatmul.msk.bf16.gmra.mxu2 %vm258_vm0, %v1171_v16  ;;  %1147 = vmatmul.msk.bf16.gmra.mxu3 %vm258_vm0, %v1179_v17 }
  0x49   :  { %1124 = vmatmul.msk.bf16.gmra.mxu0 %vm258_vm0, %v1156_v18  ;;  %1132 = vmatmul.msk.bf16.gmra.mxu1 %vm258_vm0, %v1164_v19 }
  0x4a   :  { %1140 = vmatmul.msk.bf16.gmra.mxu2 %vm258_vm0, %v1172_v20  ;;  %1148 = vmatmul.msk.bf16.gmra.mxu3 %vm258_vm0, %v1180_v21 }
  0x59   :  { %1125 = vmatmul.msk.bf16.gmra.mxu0 %vm258_vm0, %v1157_v22  ;;  %1133 = vmatmul.msk.bf16.gmra.mxu1 %vm258_vm0, %v1165_v23 }
  0x5a   :  { %1141 = vmatmul.msk.bf16.gmra.mxu2 %vm258_vm0, %v1173_v24  ;;  %1149 = vmatmul.msk.bf16.gmra.mxu3 %vm258_vm0, %v1181_v25 }
  0x69   :  { %1126 = vmatmul.msk.bf16.gmra.mxu0 %vm258_vm0, %v1158_v26  ;;  %1134 = vmatmul.msk.bf16.gmra.mxu1 %vm258_vm0, %v1166_v27 }
  0x6a   :  { %1142 = vmatmul.msk.bf16.gmra.mxu2 %vm258_vm0, %v1174_v28  ;;  %1150 = vmatmul.msk.bf16.gmra.mxu3 %vm258_vm0, %v1182_v29 }
  0x79   :  { %1127 = vmatmul.msk.bf16.gmra.mxu0 %vm258_vm0, %v1159_v30  ;;  %1135 = vmatmul.msk.bf16.gmra.mxu1 %vm258_vm0, %v1167_v31 }
  0x7a   :  { %1143 = vmatmul.msk.bf16.gmra.mxu2 %vm258_vm0, %v1175_v32  ;;  %1151 = vmatmul.msk.bf16.gmra.mxu3 %vm258_vm0, %v1183_v33 }
  0x86   :  { %v364_v35 = vpop.f32.mrf.mxu0  ;;  %v404_v36 = vpop.f32.mrf.mxu1 }
  0x87   :  { %v528_v37 = vmul.f32 %v1547_v34, %v364_v35  ;;  %v544_v39 = vmul.f32 %v1547_v34, %v404_v36 }
  0x89   :  { %v596_v40 = vadd.f32 %v1553_v38, %v528_v37  ;;  %v612_v41 = vadd.f32 %v1553_v38, %v544_v39 }
  0x8b   :  { %v724_v50 = vmul.f32 0.1, %v596_v40  ;;  %v740_v51 = vmul.f32 0.1, %v612_v41  ;;  %vm660_vm1 = vcmp.gt.f32.partialorder %v596_v40, 0.0  ;;  %vm676_vm2 = vcmp.gt.f32.partialorder %v612_v41, 0.0 }
  0x8d   :  { %v444_v42 = vpop.f32.mrf.mxu2  ;;  %v484_v43 = vpop.f32.mrf.mxu3  ;;  %v788_v58 = vsel %vm660_vm1, %v596_v40, %v724_v50  ;;  %v804_v59 = vsel %vm676_vm2, %v612_v41, %v740_v51 }
  0x8e   :  { %v366_v44 = vpop.f32.mrf.mxu0  ;;  %v406_v45 = vpop.f32.mrf.mxu1  ;;  %v560_v48 = vmul.f32 %v1547_v34, %v444_v42  ;;  %v576_v49 = vmul.f32 %v1547_v34, %v484_v43 }
  0x8f   :  { %v529_v46 = vmul.f32 %v1547_v34, %v366_v44  ;;  %v545_v47 = vmul.f32 %v1547_v34, %v406_v45 }
  0x90   :  { %v628_v56 = vadd.f32 %v1553_v38, %v560_v48  ;;  %v644_v57 = vadd.f32 %v1553_v38, %v576_v49 }
  0x91   :  { %v597_v52 = vadd.f32 %v1553_v38, %v529_v46  ;;  %v613_v53 = vadd.f32 %v1553_v38, %v545_v47 }
  0x92   :  { %v756_v6 = vmul.f32 0.1, %v628_v56  ;;  %v772_v7 = vmul.f32 0.1, %v644_v57  ;;  %vm692_vm5 = vcmp.gt.f32.partialorder %v628_v56, 0.0  ;;  %vm708_vm6 = vcmp.gt.f32.partialorder %v644_v57, 0.0 }
  0x93   :  { %vm661_vm3 = vcmp.gt.f32.partialorder %v597_v52, 0.0  ;;  %v725_v54 = vmul.f32 0.1, %v597_v52  ;;  %vm677_vm4 = vcmp.gt.f32.partialorder %v613_v53, 0.0  ;;  %v741_v55 = vmul.f32 0.1, %v613_v53 }
  0x94   :  { %v820_v14 = vsel %vm692_vm5, %v628_v56, %v756_v6  ;;  %v836_v15 = vsel %vm708_vm6, %v644_v57, %v772_v7 }
  0x95   :  { %v789_v60 = vsel %vm661_vm3, %v597_v52, %v725_v54  ;;  %v805_v61 = vsel %vm677_vm4, %v613_v53, %v741_v55  ;;  %v446_v62 = vpop.f32.mrf.mxu2  ;;  %v486_v63 = vpop.f32.mrf.mxu3 }
  0x96   :  { %v1189_v0 = vpack.c.bf16 %v789_v60, %v788_v58  ;;  %v1229_v1 = vpack.c.bf16 %v805_v61, %v804_v59  ;;  %v561_v2 = vmul.f32 %v1547_v34, %v446_v62  ;;  %v577_v3 = vmul.f32 %v1547_v34, %v486_v63  ;;  %v369_v4 = vpop.f32.mrf.mxu0  ;;  %v409_v5 = vpop.f32.mrf.mxu1 }
  0x97   :  { %v530_v10 = vmul.f32 %v1547_v34, %v369_v4  ;;  %v546_v11 = vmul.f32 %v1547_v34, %v409_v5 }
  0x98   :  { %1190 = vst [vmem:[%s1782_s4] sm:$0xff] %v1189_v0   ;;  %v629_v8 = vadd.f32 %v1553_v38, %v561_v2  ;;  %v645_v9 = vadd.f32 %v1553_v38, %v577_v3 }
  0x99   :  { %1353 = vst [vmem:[%s1782_s4 + $0x40] sm:$0xff] %v1229_v1   ;;  %v598_v20 = vadd.f32 %v1553_v38, %v530_v10  ;;  %v614_v21 = vadd.f32 %v1553_v38, %v546_v11 }
  0x9a   :  { %vm693_vm7 = vcmp.gt.f32.partialorder %v629_v8, 0.0  ;;  %v757_v12 = vmul.f32 0.1, %v629_v8  ;;  %vm709_vm8 = vcmp.gt.f32.partialorder %v645_v9, 0.0  ;;  %v773_v13 = vmul.f32 0.1, %v645_v9 }
  0x9b   :  { %v726_v30 = vmul.f32 0.1, %v598_v20  ;;  %v742_v31 = vmul.f32 0.1, %v614_v21  ;;  %vm662_vm9 = vcmp.gt.f32.partialorder %v598_v20, 0.0  ;;  %vm678_vm10 = vcmp.gt.f32.partialorder %v614_v21, 0.0 }
  0x9c   :  { %v821_v16 = vsel %vm693_vm7, %v629_v8, %v757_v12  ;;  %v837_v17 = vsel %vm709_vm8, %v645_v9, %v773_v13 }
  0x9d   :  { %v1269_v18 = vpack.c.bf16 %v821_v16, %v820_v14  ;;  %v1309_v19 = vpack.c.bf16 %v837_v17, %v836_v15  ;;  %v449_v22 = vpop.f32.mrf.mxu2  ;;  %v489_v23 = vpop.f32.mrf.mxu3  ;;  %v790_v40 = vsel %vm662_vm9, %v598_v20, %v726_v30  ;;  %v806_v41 = vsel %vm678_vm10, %v614_v21, %v742_v31 }
  0x9e   :  { %v371_v24 = vpop.f32.mrf.mxu0  ;;  %v411_v25 = vpop.f32.mrf.mxu1  ;;  %v562_v28 = vmul.f32 %v1547_v34, %v449_v22  ;;  %v578_v29 = vmul.f32 %v1547_v34, %v489_v23 }
  0x9f   :  { %1361 = vst [vmem:[%s1782_s4 + $0x80] sm:$0xff] %v1269_v18   ;;  %v531_v26 = vmul.f32 %v1547_v34, %v371_v24  ;;  %v547_v27 = vmul.f32 %v1547_v34, %v411_v25 }
  0xa0   :  { %1369 = vst [vmem:[%s1782_s4 + $0xc0] sm:$0xff] %v1309_v19   ;;  %v630_v37 = vadd.f32 %v1553_v38, %v562_v28  ;;  %v646_v39 = vadd.f32 %v1553_v38, %v578_v29 }
  0xa1   :  { %v599_v32 = vadd.f32 %v1553_v38, %v531_v26  ;;  %v615_v33 = vadd.f32 %v1553_v38, %v547_v27 }
  0xa2   :  { %v758_v52 = vmul.f32 0.1, %v630_v37  ;;  %v774_v53 = vmul.f32 0.1, %v646_v39  ;;  %vm694_vm13 = vcmp.gt.f32.partialorder %v630_v37, 0.0  ;;  %vm710_vm14 = vcmp.gt.f32.partialorder %v646_v39, 0.0 }
  0xa3   :  { %vm663_vm11 = vcmp.gt.f32.partialorder %v599_v32, 0.0  ;;  %v727_v35 = vmul.f32 0.1, %v599_v32  ;;  %vm679_vm12 = vcmp.gt.f32.partialorder %v615_v33, 0.0  ;;  %v743_v36 = vmul.f32 0.1, %v615_v33 }
  0xa4   :  { %v822_v60 = vsel %vm694_vm13, %v630_v37, %v758_v52  ;;  %v838_v61 = vsel %vm710_vm14, %v646_v39, %v774_v53 }
  0xa5   :  { %v791_v42 = vsel %vm663_vm11, %v599_v32, %v727_v35  ;;  %v807_v43 = vsel %vm679_vm12, %v615_v33, %v743_v36  ;;  %v451_v44 = vpop.f32.mrf.mxu2  ;;  %v491_v45 = vpop.f32.mrf.mxu3 }
  0xa6   :  { %v1194_v46 = vpack.c.bf16 %v791_v42, %v790_v40  ;;  %v1234_v47 = vpack.c.bf16 %v807_v43, %v806_v41  ;;  %v563_v48 = vmul.f32 %v1547_v34, %v451_v44  ;;  %v579_v49 = vmul.f32 %v1547_v34, %v491_v45  ;;  %v374_v50 = vpop.f32.mrf.mxu0  ;;  %v414_v51 = vpop.f32.mrf.mxu1 }
  0xa7   :  { %v532_v56 = vmul.f32 %v1547_v34, %v374_v50  ;;  %v548_v57 = vmul.f32 %v1547_v34, %v414_v51 }
  0xa8   :  { %1346 = vst [vmem:[%s1782_s4 + $0x8] sm:$0xff] %v1194_v46   ;;  %v631_v54 = vadd.f32 %v1553_v38, %v563_v48  ;;  %v647_v55 = vadd.f32 %v1553_v38, %v579_v49 }
  0xa9   :  { %1354 = vst [vmem:[%s1782_s4 + $0x48] sm:$0xff] %v1234_v47   ;;  %v600_v2 = vadd.f32 %v1553_v38, %v532_v56  ;;  %v616_v3 = vadd.f32 %v1553_v38, %v548_v57 }
  0xaa   :  { %vm695_vm15 = vcmp.gt.f32.partialorder %v631_v54, 0.0  ;;  %v759_v58 = vmul.f32 0.1, %v631_v54  ;;  %vm711_vm0 = vcmp.gt.f32.partialorder %v647_v55, 0.0  ;;  %v775_v59 = vmul.f32 0.1, %v647_v55 }
  0xab   :  { %v728_v12 = vmul.f32 0.1, %v600_v2  ;;  %v744_v13 = vmul.f32 0.1, %v616_v3  ;;  %vm664_vm1 = vcmp.gt.f32.partialorder %v600_v2, 0.0  ;;  %vm680_vm2 = vcmp.gt.f32.partialorder %v616_v3, 0.0 }
  0xac   :  { %v823_v62 = vsel %vm695_vm15, %v631_v54, %v759_v58  ;;  %v839_v63 = vsel %vm711_vm0, %v647_v55, %v775_v59 }
  0xad   :  { %v1274_v0 = vpack.c.bf16 %v823_v62, %v822_v60  ;;  %v1314_v1 = vpack.c.bf16 %v839_v63, %v838_v61  ;;  %v454_v4 = vpop.f32.mrf.mxu2  ;;  %v494_v5 = vpop.f32.mrf.mxu3  ;;  %v792_v20 = vsel %vm664_vm1, %v600_v2, %v728_v12  ;;  %v808_v21 = vsel %vm680_vm2, %v616_v3, %v744_v13 }
  0xae   :  { %v376_v6 = vpop.f32.mrf.mxu0  ;;  %v416_v7 = vpop.f32.mrf.mxu1  ;;  %v564_v10 = vmul.f32 %v1547_v34, %v454_v4  ;;  %v580_v11 = vmul.f32 %v1547_v34, %v494_v5 }
  0xaf   :  { %1362 = vst [vmem:[%s1782_s4 + $0x88] sm:$0xff] %v1274_v0   ;;  %v533_v8 = vmul.f32 %v1547_v34, %v376_v6  ;;  %v549_v9 = vmul.f32 %v1547_v34, %v416_v7 }
  0xb0   :  { %1370 = vst [vmem:[%s1782_s4 + $0xc8] sm:$0xff] %v1314_v1   ;;  %v632_v18 = vadd.f32 %v1553_v38, %v564_v10  ;;  %v648_v19 = vadd.f32 %v1553_v38, %v580_v11 }
  0xb1   :  { %v601_v14 = vadd.f32 %v1553_v38, %v533_v8  ;;  %v617_v15 = vadd.f32 %v1553_v38, %v549_v9 }
  0xb2   :  { %v760_v32 = vmul.f32 0.1, %v632_v18  ;;  %v776_v33 = vmul.f32 0.1, %v648_v19  ;;  %vm696_vm5 = vcmp.gt.f32.partialorder %v632_v18, 0.0  ;;  %vm712_vm6 = vcmp.gt.f32.partialorder %v648_v19, 0.0 }
  0xb3   :  { %vm665_vm3 = vcmp.gt.f32.partialorder %v601_v14, 0.0  ;;  %v729_v16 = vmul.f32 0.1, %v601_v14  ;;  %vm681_vm4 = vcmp.gt.f32.partialorder %v617_v15, 0.0  ;;  %v745_v17 = vmul.f32 0.1, %v617_v15 }
  0xb4   :  { %v824_v42 = vsel %vm696_vm5, %v632_v18, %v760_v32  ;;  %v840_v43 = vsel %vm712_vm6, %v648_v19, %v776_v33 }
  0xb5   :  { %v793_v22 = vsel %vm665_vm3, %v601_v14, %v729_v16  ;;  %v809_v23 = vsel %vm681_vm4, %v617_v15, %v745_v17  ;;  %v456_v24 = vpop.f32.mrf.mxu2  ;;  %v496_v25 = vpop.f32.mrf.mxu3 }
  0xb6   :  { %v1199_v26 = vpack.c.bf16 %v793_v22, %v792_v20  ;;  %v1239_v27 = vpack.c.bf16 %v809_v23, %v808_v21  ;;  %v565_v28 = vmul.f32 %v1547_v34, %v456_v24  ;;  %v581_v29 = vmul.f32 %v1547_v34, %v496_v25  ;;  %v379_v30 = vpop.f32.mrf.mxu0  ;;  %v419_v31 = vpop.f32.mrf.mxu1 }
  0xb7   :  { %v534_v37 = vmul.f32 %v1547_v34, %v379_v30  ;;  %v550_v39 = vmul.f32 %v1547_v34, %v419_v31 }
  0xb8   :  { %1347 = vst [vmem:[%s1782_s4 + $0x10] sm:$0xff] %v1199_v26   ;;  %v633_v35 = vadd.f32 %v1553_v38, %v565_v28  ;;  %v649_v36 = vadd.f32 %v1553_v38, %v581_v29 }
  0xb9   :  { %1355 = vst [vmem:[%s1782_s4 + $0x50] sm:$0xff] %v1239_v27   ;;  %v602_v48 = vadd.f32 %v1553_v38, %v534_v37  ;;  %v618_v49 = vadd.f32 %v1553_v38, %v550_v39 }
  0xba   :  { %vm697_vm7 = vcmp.gt.f32.partialorder %v633_v35, 0.0  ;;  %v761_v40 = vmul.f32 0.1, %v633_v35  ;;  %vm713_vm8 = vcmp.gt.f32.partialorder %v649_v36, 0.0  ;;  %v777_v41 = vmul.f32 0.1, %v649_v36 }
  0xbb   :  { %v730_v58 = vmul.f32 0.1, %v602_v48  ;;  %v746_v59 = vmul.f32 0.1, %v618_v49  ;;  %vm666_vm9 = vcmp.gt.f32.partialorder %v602_v48, 0.0  ;;  %vm682_vm10 = vcmp.gt.f32.partialorder %v618_v49, 0.0 }
  0xbc   :  { %v825_v44 = vsel %vm697_vm7, %v633_v35, %v761_v40  ;;  %v841_v45 = vsel %vm713_vm8, %v649_v36, %v777_v41 }
  0xbd   :  { %v1279_v46 = vpack.c.bf16 %v825_v44, %v824_v42  ;;  %v1319_v47 = vpack.c.bf16 %v841_v45, %v840_v43  ;;  %v459_v50 = vpop.f32.mrf.mxu2  ;;  %v499_v51 = vpop.f32.mrf.mxu3  ;;  %v794_v2 = vsel %vm666_vm9, %v602_v48, %v730_v58  ;;  %v810_v3 = vsel %vm682_vm10, %v618_v49, %v746_v59 }
  0xbe   :  { %v381_v52 = vpop.f32.mrf.mxu0  ;;  %v421_v53 = vpop.f32.mrf.mxu1  ;;  %v566_v56 = vmul.f32 %v1547_v34, %v459_v50  ;;  %v582_v57 = vmul.f32 %v1547_v34, %v499_v51 }
  0xbf   :  { %1363 = vst [vmem:[%s1782_s4 + $0x90] sm:$0xff] %v1279_v46   ;;  %v535_v54 = vmul.f32 %v1547_v34, %v381_v52  ;;  %v551_v55 = vmul.f32 %v1547_v34, %v421_v53 }
  0xc0   :  { %1371 = vst [vmem:[%s1782_s4 + $0xd0] sm:$0xff] %v1319_v47   ;;  %v634_v0 = vadd.f32 %v1553_v38, %v566_v56  ;;  %v650_v1 = vadd.f32 %v1553_v38, %v582_v57 }
  0xc1   :  { %v603_v60 = vadd.f32 %v1553_v38, %v535_v54  ;;  %v619_v61 = vadd.f32 %v1553_v38, %v551_v55 }
  0xc2   :  { %v762_v14 = vmul.f32 0.1, %v634_v0  ;;  %v778_v15 = vmul.f32 0.1, %v650_v1  ;;  %vm698_vm13 = vcmp.gt.f32.partialorder %v634_v0, 0.0  ;;  %vm714_vm14 = vcmp.gt.f32.partialorder %v650_v1, 0.0 }
  0xc3   :  { %vm667_vm11 = vcmp.gt.f32.partialorder %v603_v60, 0.0  ;;  %v731_v62 = vmul.f32 0.1, %v603_v60  ;;  %vm683_vm12 = vcmp.gt.f32.partialorder %v619_v61, 0.0  ;;  %v747_v63 = vmul.f32 0.1, %v619_v61 }
  0xc4   :  { %v826_v22 = vsel %vm698_vm13, %v634_v0, %v762_v14  ;;  %v842_v23 = vsel %vm714_vm14, %v650_v1, %v778_v15 }
  0xc5   :  { %v795_v4 = vsel %vm667_vm11, %v603_v60, %v731_v62  ;;  %v811_v5 = vsel %vm683_vm12, %v619_v61, %v747_v63  ;;  %v461_v6 = vpop.f32.mrf.mxu2  ;;  %v501_v7 = vpop.f32.mrf.mxu3 }
  0xc6   :  { %v1204_v8 = vpack.c.bf16 %v795_v4, %v794_v2  ;;  %v1244_v9 = vpack.c.bf16 %v811_v5, %v810_v3  ;;  %v567_v10 = vmul.f32 %v1547_v34, %v461_v6  ;;  %v583_v11 = vmul.f32 %v1547_v34, %v501_v7  ;;  %v384_v12 = vpop.f32.mrf.mxu0  ;;  %v424_v13 = vpop.f32.mrf.mxu1 }
  0xc7   :  { %v536_v18 = vmul.f32 %v1547_v34, %v384_v12  ;;  %v552_v19 = vmul.f32 %v1547_v34, %v424_v13 }
  0xc8   :  { %1348 = vst [vmem:[%s1782_s4 + $0x18] sm:$0xff] %v1204_v8   ;;  %v635_v16 = vadd.f32 %v1553_v38, %v567_v10  ;;  %v651_v17 = vadd.f32 %v1553_v38, %v583_v11 }
  0xc9   :  { %1356 = vst [vmem:[%s1782_s4 + $0x58] sm:$0xff] %v1244_v9   ;;  %v604_v28 = vadd.f32 %v1553_v38, %v536_v18  ;;  %v620_v29 = vadd.f32 %v1553_v38, %v552_v19 }
  0xca   :  { %vm699_vm15 = vcmp.gt.f32.partialorder %v635_v16, 0.0  ;;  %v763_v20 = vmul.f32 0.1, %v635_v16  ;;  %vm715_vm0 = vcmp.gt.f32.partialorder %v651_v17, 0.0  ;;  %v779_v21 = vmul.f32 0.1, %v651_v17 }
  0xcb   :  { %v732_v40 = vmul.f32 0.1, %v604_v28  ;;  %v748_v41 = vmul.f32 0.1, %v620_v29  ;;  %vm668_vm1 = vcmp.gt.f32.partialorder %v604_v28, 0.0  ;;  %vm684_vm2 = vcmp.gt.f32.partialorder %v620_v29, 0.0 }
  0xcc   :  { %v827_v24 = vsel %vm699_vm15, %v635_v16, %v763_v20  ;;  %v843_v25 = vsel %vm715_vm0, %v651_v17, %v779_v21 }
  0xcd   :  { %v1284_v26 = vpack.c.bf16 %v827_v24, %v826_v22  ;;  %v1324_v27 = vpack.c.bf16 %v843_v25, %v842_v23  ;;  %v464_v30 = vpop.f32.mrf.mxu2  ;;  %v504_v31 = vpop.f32.mrf.mxu3  ;;  %v796_v48 = vsel %vm668_vm1, %v604_v28, %v732_v40  ;;  %v812_v49 = vsel %vm684_vm2, %v620_v29, %v748_v41 }
  0xce   :  { %v386_v32 = vpop.f32.mrf.mxu0  ;;  %v426_v33 = vpop.f32.mrf.mxu1  ;;  %v568_v37 = vmul.f32 %v1547_v34, %v464_v30  ;;  %v584_v39 = vmul.f32 %v1547_v34, %v504_v31 }
  0xcf   :  { %1364 = vst [vmem:[%s1782_s4 + $0x98] sm:$0xff] %v1284_v26   ;;  %v537_v35 = vmul.f32 %v1547_v34, %v386_v32  ;;  %v553_v36 = vmul.f32 %v1547_v34, %v426_v33 }
  0xd0   :  { %1372 = vst [vmem:[%s1782_s4 + $0xd8] sm:$0xff] %v1324_v27   ;;  %v636_v46 = vadd.f32 %v1553_v38, %v568_v37  ;;  %v652_v47 = vadd.f32 %v1553_v38, %v584_v39 }
  0xd1   :  { %v605_v42 = vadd.f32 %v1553_v38, %v537_v35  ;;  %v621_v43 = vadd.f32 %v1553_v38, %v553_v36 }
  0xd2   :  { %v764_v60 = vmul.f32 0.1, %v636_v46  ;;  %v780_v61 = vmul.f32 0.1, %v652_v47  ;;  %vm700_vm5 = vcmp.gt.f32.partialorder %v636_v46, 0.0  ;;  %vm716_vm6 = vcmp.gt.f32.partialorder %v652_v47, 0.0 }
  0xd3   :  { %vm669_vm3 = vcmp.gt.f32.partialorder %v605_v42, 0.0  ;;  %v733_v44 = vmul.f32 0.1, %v605_v42  ;;  %vm685_vm4 = vcmp.gt.f32.partialorder %v621_v43, 0.0  ;;  %v749_v45 = vmul.f32 0.1, %v621_v43 }
  0xd4   :  { %v828_v4 = vsel %vm700_vm5, %v636_v46, %v764_v60  ;;  %v844_v5 = vsel %vm716_vm6, %v652_v47, %v780_v61 }
  0xd5   :  { %v797_v50 = vsel %vm669_vm3, %v605_v42, %v733_v44  ;;  %v813_v51 = vsel %vm685_vm4, %v621_v43, %v749_v45  ;;  %v466_v52 = vpop.f32.mrf.mxu2  ;;  %v506_v53 = vpop.f32.mrf.mxu3 }
  0xd6   :  { %v1209_v54 = vpack.c.bf16 %v797_v50, %v796_v48  ;;  %v1249_v55 = vpack.c.bf16 %v813_v51, %v812_v49  ;;  %v569_v56 = vmul.f32 %v1547_v34, %v466_v52  ;;  %v585_v57 = vmul.f32 %v1547_v34, %v506_v53  ;;  %v389_v58 = vpop.f32.mrf.mxu0  ;;  %v429_v59 = vpop.f32.mrf.mxu1 }
  0xd7   :  { %v538_v0 = vmul.f32 %v1547_v34, %v389_v58  ;;  %v554_v1 = vmul.f32 %v1547_v34, %v429_v59 }
  0xd8   :  { %1349 = vst [vmem:[%s1782_s4 + $0x20] sm:$0xff] %v1209_v54   ;;  %v637_v62 = vadd.f32 %v1553_v38, %v569_v56  ;;  %v653_v63 = vadd.f32 %v1553_v38, %v585_v57 }
  0xd9   :  { %1357 = vst [vmem:[%s1782_s4 + $0x60] sm:$0xff] %v1249_v55   ;;  %v606_v10 = vadd.f32 %v1553_v38, %v538_v0  ;;  %v622_v11 = vadd.f32 %v1553_v38, %v554_v1 }
  0xda   :  { %vm701_vm7 = vcmp.gt.f32.partialorder %v637_v62, 0.0  ;;  %v765_v2 = vmul.f32 0.1, %v637_v62  ;;  %vm717_vm8 = vcmp.gt.f32.partialorder %v653_v63, 0.0  ;;  %v781_v3 = vmul.f32 0.1, %v653_v63 }
  0xdb   :  { %v734_v20 = vmul.f32 0.1, %v606_v10  ;;  %v750_v21 = vmul.f32 0.1, %v622_v11  ;;  %vm670_vm9 = vcmp.gt.f32.partialorder %v606_v10, 0.0  ;;  %vm686_vm10 = vcmp.gt.f32.partialorder %v622_v11, 0.0 }
  0xdc   :  { %v829_v6 = vsel %vm701_vm7, %v637_v62, %v765_v2  ;;  %v845_v7 = vsel %vm717_vm8, %v653_v63, %v781_v3 }
  0xdd   :  { %v1289_v8 = vpack.c.bf16 %v829_v6, %v828_v4  ;;  %v1329_v9 = vpack.c.bf16 %v845_v7, %v844_v5  ;;  %v469_v12 = vpop.f32.mrf.mxu2  ;;  %v509_v13 = vpop.f32.mrf.mxu3  ;;  %v798_v28 = vsel %vm670_vm9, %v606_v10, %v734_v20  ;;  %v814_v29 = vsel %vm686_vm10, %v622_v11, %v750_v21 }
  0xde   :  { %v391_v14 = vpop.f32.mrf.mxu0  ;;  %v431_v15 = vpop.f32.mrf.mxu1  ;;  %v570_v18 = vmul.f32 %v1547_v34, %v469_v12  ;;  %v586_v19 = vmul.f32 %v1547_v34, %v509_v13 }
  0xdf   :  { %1365 = vst [vmem:[%s1782_s4 + $0xa0] sm:$0xff] %v1289_v8   ;;  %v539_v16 = vmul.f32 %v1547_v34, %v391_v14  ;;  %v555_v17 = vmul.f32 %v1547_v34, %v431_v15 }
  0xe0   :  { %1373 = vst [vmem:[%s1782_s4 + $0xe0] sm:$0xff] %v1329_v9   ;;  %v638_v26 = vadd.f32 %v1553_v38, %v570_v18  ;;  %v654_v27 = vadd.f32 %v1553_v38, %v586_v19 }
  0xe1   :  { %v607_v22 = vadd.f32 %v1553_v38, %v539_v16  ;;  %v623_v23 = vadd.f32 %v1553_v38, %v555_v17 }
  0xe2   :  { %v766_v42 = vmul.f32 0.1, %v638_v26  ;;  %v782_v43 = vmul.f32 0.1, %v654_v27  ;;  %vm702_vm13 = vcmp.gt.f32.partialorder %v638_v26, 0.0  ;;  %vm718_vm14 = vcmp.gt.f32.partialorder %v654_v27, 0.0 }
  0xe3   :  { %vm671_vm11 = vcmp.gt.f32.partialorder %v607_v22, 0.0  ;;  %v735_v24 = vmul.f32 0.1, %v607_v22  ;;  %vm687_vm12 = vcmp.gt.f32.partialorder %v623_v23, 0.0  ;;  %v751_v25 = vmul.f32 0.1, %v623_v23 }
  0xe4   :  { %v830_v50 = vsel %vm702_vm13, %v638_v26, %v766_v42  ;;  %v846_v51 = vsel %vm718_vm14, %v654_v27, %v782_v43 }
  0xe5   :  { %v799_v30 = vsel %vm671_vm11, %v607_v22, %v735_v24  ;;  %v815_v31 = vsel %vm687_vm12, %v623_v23, %v751_v25  ;;  %v471_v32 = vpop.f32.mrf.mxu2  ;;  %v511_v33 = vpop.f32.mrf.mxu3 }
  0xe6   :  { %v1214_v35 = vpack.c.bf16 %v799_v30, %v798_v28  ;;  %v1254_v36 = vpack.c.bf16 %v815_v31, %v814_v29  ;;  %v571_v37 = vmul.f32 %v1547_v34, %v471_v32  ;;  %v587_v39 = vmul.f32 %v1547_v34, %v511_v33  ;;  %v394_v40 = vpop.f32.mrf.mxu0  ;;  %v434_v41 = vpop.f32.mrf.mxu1 }
  0xe7   :  { %v540_v46 = vmul.f32 %v1547_v34, %v394_v40  ;;  %v556_v47 = vmul.f32 %v1547_v34, %v434_v41 }
  0xe8   :  { %1350 = vst [vmem:[%s1782_s4 + $0x28] sm:$0xff] %v1214_v35   ;;  %v639_v44 = vadd.f32 %v1553_v38, %v571_v37  ;;  %v655_v45 = vadd.f32 %v1553_v38, %v587_v39 }
  0xe9   :  { %1358 = vst [vmem:[%s1782_s4 + $0x68] sm:$0xff] %v1254_v36   ;;  %v608_v56 = vadd.f32 %v1553_v38, %v540_v46  ;;  %v624_v57 = vadd.f32 %v1553_v38, %v556_v47 }
  0xea   :  { %vm703_vm15 = vcmp.gt.f32.partialorder %v639_v44, 0.0  ;;  %v767_v48 = vmul.f32 0.1, %v639_v44  ;;  %vm719_vm0 = vcmp.gt.f32.partialorder %v655_v45, 0.0  ;;  %v783_v49 = vmul.f32 0.1, %v655_v45 }
  0xeb   :  { %v736_v2 = vmul.f32 0.1, %v608_v56  ;;  %v752_v3 = vmul.f32 0.1, %v624_v57  ;;  %vm672_vm1 = vcmp.gt.f32.partialorder %v608_v56, 0.0  ;;  %vm688_vm2 = vcmp.gt.f32.partialorder %v624_v57, 0.0 }
  0xec   :  { %v831_v52 = vsel %vm703_vm15, %v639_v44, %v767_v48  ;;  %v847_v53 = vsel %vm719_vm0, %v655_v45, %v783_v49 }
  0xed   :  { %v1294_v54 = vpack.c.bf16 %v831_v52, %v830_v50  ;;  %v1334_v55 = vpack.c.bf16 %v847_v53, %v846_v51  ;;  %v474_v58 = vpop.f32.mrf.mxu2  ;;  %v514_v59 = vpop.f32.mrf.mxu3  ;;  %v800_v10 = vsel %vm672_vm1, %v608_v56, %v736_v2  ;;  %v816_v11 = vsel %vm688_vm2, %v624_v57, %v752_v3 }
  0xee   :  { %v396_v60 = vpop.f32.mrf.mxu0  ;;  %v436_v61 = vpop.f32.mrf.mxu1  ;;  %v572_v0 = vmul.f32 %v1547_v34, %v474_v58  ;;  %v588_v1 = vmul.f32 %v1547_v34, %v514_v59 }
  0xef   :  { %1366 = vst [vmem:[%s1782_s4 + $0xa8] sm:$0xff] %v1294_v54   ;;  %v541_v62 = vmul.f32 %v1547_v34, %v396_v60  ;;  %v557_v63 = vmul.f32 %v1547_v34, %v436_v61 }
  0xf0   :  { %1374 = vst [vmem:[%s1782_s4 + $0xe8] sm:$0xff] %v1334_v55   ;;  %v640_v8 = vadd.f32 %v1553_v38, %v572_v0  ;;  %v656_v9 = vadd.f32 %v1553_v38, %v588_v1 }
  0xf1   :  { %v609_v4 = vadd.f32 %v1553_v38, %v541_v62  ;;  %v625_v5 = vadd.f32 %v1553_v38, %v557_v63 }
  0xf2   :  { %v768_v22 = vmul.f32 0.1, %v640_v8  ;;  %v784_v23 = vmul.f32 0.1, %v656_v9  ;;  %vm704_vm5 = vcmp.gt.f32.partialorder %v640_v8, 0.0  ;;  %vm720_vm6 = vcmp.gt.f32.partialorder %v656_v9, 0.0 }
  0xf3   :  { %vm673_vm3 = vcmp.gt.f32.partialorder %v609_v4, 0.0  ;;  %v737_v6 = vmul.f32 0.1, %v609_v4  ;;  %vm689_vm4 = vcmp.gt.f32.partialorder %v625_v5, 0.0  ;;  %v753_v7 = vmul.f32 0.1, %v625_v5 }
  0xf4   :  { %v832_v30 = vsel %vm704_vm5, %v640_v8, %v768_v22  ;;  %v848_v31 = vsel %vm720_vm6, %v656_v9, %v784_v23 }
  0xf5   :  { %v801_v12 = vsel %vm673_vm3, %v609_v4, %v737_v6  ;;  %v817_v13 = vsel %vm689_vm4, %v625_v5, %v753_v7  ;;  %v476_v14 = vpop.f32.mrf.mxu2  ;;  %v516_v15 = vpop.f32.mrf.mxu3 }
  0xf6   :  { %v1219_v16 = vpack.c.bf16 %v801_v12, %v800_v10  ;;  %v1259_v17 = vpack.c.bf16 %v817_v13, %v816_v11  ;;  %v573_v18 = vmul.f32 %v1547_v34, %v476_v14  ;;  %v589_v19 = vmul.f32 %v1547_v34, %v516_v15  ;;  %v399_v20 = vpop.f32.mrf.mxu0  ;;  %v439_v21 = vpop.f32.mrf.mxu1 }
  0xf7   :  { %v542_v26 = vmul.f32 %v1547_v34, %v399_v20  ;;  %v558_v27 = vmul.f32 %v1547_v34, %v439_v21 }
  0xf8   :  { %1351 = vst [vmem:[%s1782_s4 + $0x30] sm:$0xff] %v1219_v16   ;;  %v641_v24 = vadd.f32 %v1553_v38, %v573_v18  ;;  %v657_v25 = vadd.f32 %v1553_v38, %v589_v19 }
  0xf9   :  { %1359 = vst [vmem:[%s1782_s4 + $0x70] sm:$0xff] %v1259_v17   ;;  %v610_v37 = vadd.f32 %v1553_v38, %v542_v26  ;;  %v626_v39 = vadd.f32 %v1553_v38, %v558_v27 }
  0xfa   :  { %vm705_vm7 = vcmp.gt.f32.partialorder %v641_v24, 0.0  ;;  %v769_v28 = vmul.f32 0.1, %v641_v24  ;;  %vm721_vm8 = vcmp.gt.f32.partialorder %v657_v25, 0.0  ;;  %v785_v29 = vmul.f32 0.1, %v657_v25 }
  0xfb   :  { %v738_v48 = vmul.f32 0.1, %v610_v37  ;;  %v754_v49 = vmul.f32 0.1, %v626_v39  ;;  %vm674_vm9 = vcmp.gt.f32.partialorder %v610_v37, 0.0  ;;  %vm690_vm10 = vcmp.gt.f32.partialorder %v626_v39, 0.0 }
  0xfc   :  { %v833_v32 = vsel %vm705_vm7, %v641_v24, %v769_v28  ;;  %v849_v33 = vsel %vm721_vm8, %v657_v25, %v785_v29 }
  0xfd   :  { %v1299_v35 = vpack.c.bf16 %v833_v32, %v832_v30  ;;  %v1339_v36 = vpack.c.bf16 %v849_v33, %v848_v31  ;;  %v479_v40 = vpop.f32.mrf.mxu2  ;;  %v519_v41 = vpop.f32.mrf.mxu3  ;;  %v802_v56 = vsel %vm674_vm9, %v610_v37, %v738_v48  ;;  %v818_v57 = vsel %vm690_vm10, %v626_v39, %v754_v49 }
  0xfe   :  { %v401_v42 = vpop.f32.mrf.mxu0  ;;  %v441_v43 = vpop.f32.mrf.mxu1  ;;  %v574_v46 = vmul.f32 %v1547_v34, %v479_v40  ;;  %v590_v47 = vmul.f32 %v1547_v34, %v519_v41 }
  0xff   :  { %1367 = vst [vmem:[%s1782_s4 + $0xb0] sm:$0xff] %v1299_v35   ;;  %v543_v44 = vmul.f32 %v1547_v34, %v401_v42  ;;  %v559_v45 = vmul.f32 %v1547_v34, %v441_v43 }
 0x100   :  { %1375 = vst [vmem:[%s1782_s4 + $0xf0] sm:$0xff] %v1339_v36   ;;  %v642_v54 = vadd.f32 %v1553_v38, %v574_v46  ;;  %v658_v55 = vadd.f32 %v1553_v38, %v590_v47 }
 0x101   :  { %v611_v50 = vadd.f32 %v1553_v38, %v543_v44  ;;  %v627_v51 = vadd.f32 %v1553_v38, %v559_v45 }
 0x102   :  { %v770_v2 = vmul.f32 0.1, %v642_v54  ;;  %v786_v3 = vmul.f32 0.1, %v658_v55  ;;  %vm706_vm13 = vcmp.gt.f32.partialorder %v642_v54, 0.0  ;;  %vm722_vm14 = vcmp.gt.f32.partialorder %v658_v55, 0.0 }
 0x103   :  { %vm675_vm11 = vcmp.gt.f32.partialorder %v611_v50, 0.0  ;;  %v739_v52 = vmul.f32 0.1, %v611_v50  ;;  %vm691_vm12 = vcmp.gt.f32.partialorder %v627_v51, 0.0  ;;  %v755_v53 = vmul.f32 0.1, %v627_v51 }
 0x104   :  { %v834_v7 = vsel %vm706_vm13, %v642_v54, %v770_v2  ;;  %v850_v8 = vsel %vm722_vm14, %v658_v55, %v786_v3 }
 0x105   :  { %v803_v58 = vsel %vm675_vm11, %v611_v50, %v739_v52  ;;  %v819_v59 = vsel %vm691_vm12, %v627_v51, %v755_v53  ;;  %v481_v60 = vpop.f32.mrf.mxu2  ;;  %v521_v61 = vpop.f32.mrf.mxu3 }
 0x106   :  { %v1224_v62 = vpack.c.bf16 %v803_v58, %v802_v56  ;;  %v1264_v63 = vpack.c.bf16 %v819_v59, %v818_v57  ;;  %v575_v0 = vmul.f32 %v1547_v34, %v481_v60  ;;  %v591_v1 = vmul.f32 %v1547_v34, %v521_v61 }
 0x108   :  { %1352 = vst [vmem:[%s1782_s4 + $0x38] sm:$0xff] %v1224_v62   ;;  %v643_v4 = vadd.f32 %v1553_v38, %v575_v0  ;;  %v659_v5 = vadd.f32 %v1553_v38, %v591_v1 }
 0x109   :  { %1360 = vst [vmem:[%s1782_s4 + $0x78] sm:$0xff] %v1264_v63  }
 0x10a   :  { %vm707_vm15 = vcmp.gt.f32.partialorder %v643_v4, 0.0  ;;  %v771_v6 = vmul.f32 0.1, %v643_v4  ;;  %vm723_vm0 = vcmp.gt.f32.partialorder %v659_v5, 0.0  ;;  %v787_v34 = vmul.f32 0.1, %v659_v5 }
 0x10c   :  { %v835_v9 = vsel %vm707_vm15, %v643_v4, %v771_v6  ;;  %v851_v10 = vsel %vm723_vm0, %v659_v5, %v787_v34 }
 0x10d   :  { %v1304_v11 = vpack.c.bf16 %v835_v9, %v834_v7  ;;  %v1344_v12 = vpack.c.bf16 %v851_v10, %v850_v8 }
 0x10f   :  { %1368 = vst [vmem:[%s1782_s4 + $0xb8] sm:$0xff] %v1304_v11  }
 0x110   :  { %1376 = vst [vmem:[%s1782_s4 + $0xf8] sm:$0xff] %v1344_v12  }

// kernel: darknet_forward.11
= control target key start
LH: loop header
LB: loop body
LE: loop exit
PB: predicated region body
PF: predicated region fallthrough
CT: control target
= control target key end

     0   :  { %vm282_vm0 = vcmask 654336   ;;  %s1835_s1 = inlined_call_operand.vmem [shape: bf16[80,128], index: 1, kind: input, shape index: {}]   ;;  %s1836_s2 = inlined_call_operand.vmem [shape: f32[1,128], index: 2, kind: input, shape index: {}]   ;;  %s1837_s3 = inlined_call_operand.vmem [shape: f32[1,128], index: 3, kind: input, shape index: {}]   ;;  %s1838_s0 = inlined_call_operand.vmem [shape: bf16[512,80], index: 0, kind: input, shape index: {}]   ;;  %s1839_s4 = inlined_call_operand.vmem [shape: bf16[512,128], index: 4, kind: output, shape index: {}]  }
   0x1   :  { %v1224_v0 = vld [vmem:[%s1835_s1 + $0x20] sm:$0xff]  ;;  %v1223_v1 = vld [vmem:[%s1835_s1 + $0x18] sm:$0xff]  ;;  %v1222_v2 = vld [vmem:[%s1835_s1 + $0x10] sm:$0xff] }
   0x2   :  { %382 = vmatpush.bf16.msra.mxu0 %v1224_v0  ;;  %1416 = vmatpush.bf16.msra.mxu1 %v1224_v0  ;;  %v1221_v3 = vld [vmem:[%s1835_s1 + $0x8] sm:$0xff]  ;;  %v1220_v4 = vld [vmem:[%s1835_s1] sm:$0xff]  ;;  %v1190_v13 = vld [vmem:[%s1838_s0 + $0x10] sm:$0xff] }
   0x3   :  { %1417 = vmatpush.bf16.msra.mxu2 %v1224_v0  ;;  %1418 = vmatpush.bf16.msra.mxu3 %v1224_v0  ;;  %v1188_v5 = vld [vmem:[%s1838_s0] sm:$0xff]  ;;  %v1189_v9 = vld [vmem:[%s1838_s0 + $0x8] sm:$0xff]  ;;  %v1198_v14 = vld [vmem:[%s1838_s0 + $0x50] sm:$0xff] }
   0x4   :  { %v1196_v6 = vld [vmem:[%s1838_s0 + $0x40] sm:$0xff]  ;;  %v1197_v10 = vld [vmem:[%s1838_s0 + $0x48] sm:$0xff]  ;;  %v1206_v15 = vld [vmem:[%s1838_s0 + $0x90] sm:$0xff] }
   0x5   :  { %v1204_v7 = vld [vmem:[%s1838_s0 + $0x80] sm:$0xff]  ;;  %v1205_v11 = vld [vmem:[%s1838_s0 + $0x88] sm:$0xff]  ;;  %v1214_v16 = vld [vmem:[%s1838_s0 + $0xd0] sm:$0xff] }
   0x6   :  { %383 = vmatpush.bf16.msra.mxu0 %v1223_v1  ;;  %1419 = vmatpush.bf16.msra.mxu1 %v1223_v1  ;;  %v1212_v8 = vld [vmem:[%s1838_s0 + $0xc0] sm:$0xff]  ;;  %v1213_v12 = vld [vmem:[%s1838_s0 + $0xc8] sm:$0xff]  ;;  %v1191_v17 = vld [vmem:[%s1838_s0 + $0x18] sm:$0xff] }
   0x7   :  { %1420 = vmatpush.bf16.msra.mxu2 %v1223_v1  ;;  %1421 = vmatpush.bf16.msra.mxu3 %v1223_v1  ;;  %v1199_v18 = vld [vmem:[%s1838_s0 + $0x58] sm:$0xff]  ;;  %v1192_v21 = vld [vmem:[%s1838_s0 + $0x20] sm:$0xff]  ;;  %v1193_v25 = vld [vmem:[%s1838_s0 + $0x28] sm:$0xff] }
   0x8   :  { %v1207_v19 = vld [vmem:[%s1838_s0 + $0x98] sm:$0xff]  ;;  %v1200_v22 = vld [vmem:[%s1838_s0 + $0x60] sm:$0xff]  ;;  %v1201_v26 = vld [vmem:[%s1838_s0 + $0x68] sm:$0xff] }
   0x9   :  { %v1215_v20 = vld [vmem:[%s1838_s0 + $0xd8] sm:$0xff]  ;;  %v1208_v23 = vld [vmem:[%s1838_s0 + $0xa0] sm:$0xff]  ;;  %v1209_v27 = vld [vmem:[%s1838_s0 + $0xa8] sm:$0xff] }
   0xa   :  { %384 = vmatpush.bf16.msra.mxu0 %v1222_v2  ;;  %1422 = vmatpush.bf16.msra.mxu1 %v1222_v2  ;;  %v1216_v24 = vld [vmem:[%s1838_s0 + $0xe0] sm:$0xff]  ;;  %v1217_v28 = vld [vmem:[%s1838_s0 + $0xe8] sm:$0xff]  ;;  %v1194_v29 = vld [vmem:[%s1838_s0 + $0x30] sm:$0xff] }
   0xb   :  { %1423 = vmatpush.bf16.msra.mxu2 %v1222_v2  ;;  %1424 = vmatpush.bf16.msra.mxu3 %v1222_v2  ;;  %v1202_v30 = vld [vmem:[%s1838_s0 + $0x70] sm:$0xff]  ;;  %v1195_v33 = vld [vmem:[%s1838_s0 + $0x38] sm:$0xff]  ;;  %v1604_v37 = vld [vmem:[%s1836_s2] ss:$0 sm:$0xff] }
   0xc   :  { %v1210_v31 = vld [vmem:[%s1838_s0 + $0xb0] sm:$0xff]  ;;  %v1203_v34 = vld [vmem:[%s1838_s0 + $0x78] sm:$0xff]  ;;  %v1610_v41 = vld [vmem:[%s1837_s3] ss:$0 sm:$0xff] }
   0xd   :  { %v1218_v32 = vld [vmem:[%s1838_s0 + $0xf0] sm:$0xff]  ;;  %v1211_v35 = vld [vmem:[%s1838_s0 + $0xb8] sm:$0xff] }
   0xe   :  { %385 = vmatpush.bf16.msra.mxu0 %v1221_v3  ;;  %1425 = vmatpush.bf16.msra.mxu1 %v1221_v3  ;;  %v1219_v36 = vld [vmem:[%s1838_s0 + $0xf8] sm:$0xff] }
   0xf   :  { %1426 = vmatpush.bf16.msra.mxu2 %v1221_v3  ;;  %1427 = vmatpush.bf16.msra.mxu3 %v1221_v3 }
  0x12   :  { %386 = vmatpush.bf16.msra.mxu0 %v1220_v4  ;;  %1428 = vmatpush.bf16.msra.mxu1 %v1220_v4 }
  0x13   :  { %1429 = vmatpush.bf16.msra.mxu2 %v1220_v4  ;;  %1430 = vmatpush.bf16.msra.mxu3 %v1220_v4 }
  0x15   :  { %1156 = vmatmul.msk.bf16.vlgmr.msra.gmra.mxu0 %vm282_vm0, %v1188_v5  ;;  %1164 = vmatmul.msk.bf16.vlgmr.msra.gmra.mxu1 %vm282_vm0, %v1196_v6 }
  0x16   :  { %1172 = vmatmul.msk.bf16.vlgmr.msra.gmra.mxu2 %vm282_vm0, %v1204_v7  ;;  %1180 = vmatmul.msk.bf16.vlgmr.msra.gmra.mxu3 %vm282_vm0, %v1212_v8 }
  0x25   :  { %1157 = vmatmul.msk.bf16.gmra.mxu0 %vm282_vm0, %v1189_v9  ;;  %1165 = vmatmul.msk.bf16.gmra.mxu1 %vm282_vm0, %v1197_v10 }
  0x26   :  { %1173 = vmatmul.msk.bf16.gmra.mxu2 %vm282_vm0, %v1205_v11  ;;  %1181 = vmatmul.msk.bf16.gmra.mxu3 %vm282_vm0, %v1213_v12 }
  0x35   :  { %1158 = vmatmul.msk.bf16.gmra.mxu0 %vm282_vm0, %v1190_v13  ;;  %1166 = vmatmul.msk.bf16.gmra.mxu1 %vm282_vm0, %v1198_v14 }
  0x36   :  { %1174 = vmatmul.msk.bf16.gmra.mxu2 %vm282_vm0, %v1206_v15  ;;  %1182 = vmatmul.msk.bf16.gmra.mxu3 %vm282_vm0, %v1214_v16 }
  0x45   :  { %1159 = vmatmul.msk.bf16.gmra.mxu0 %vm282_vm0, %v1191_v17  ;;  %1167 = vmatmul.msk.bf16.gmra.mxu1 %vm282_vm0, %v1199_v18 }
  0x46   :  { %1175 = vmatmul.msk.bf16.gmra.mxu2 %vm282_vm0, %v1207_v19  ;;  %1183 = vmatmul.msk.bf16.gmra.mxu3 %vm282_vm0, %v1215_v20 }
  0x55   :  { %1160 = vmatmul.msk.bf16.gmra.mxu0 %vm282_vm0, %v1192_v21  ;;  %1168 = vmatmul.msk.bf16.gmra.mxu1 %vm282_vm0, %v1200_v22 }
  0x56   :  { %1176 = vmatmul.msk.bf16.gmra.mxu2 %vm282_vm0, %v1208_v23  ;;  %1184 = vmatmul.msk.bf16.gmra.mxu3 %vm282_vm0, %v1216_v24 }
  0x65   :  { %1161 = vmatmul.msk.bf16.gmra.mxu0 %vm282_vm0, %v1193_v25  ;;  %1169 = vmatmul.msk.bf16.gmra.mxu1 %vm282_vm0, %v1201_v26 }
  0x66   :  { %1177 = vmatmul.msk.bf16.gmra.mxu2 %vm282_vm0, %v1209_v27  ;;  %1185 = vmatmul.msk.bf16.gmra.mxu3 %vm282_vm0, %v1217_v28 }
  0x75   :  { %1162 = vmatmul.msk.bf16.gmra.mxu0 %vm282_vm0, %v1194_v29  ;;  %1170 = vmatmul.msk.bf16.gmra.mxu1 %vm282_vm0, %v1202_v30 }
  0x76   :  { %1178 = vmatmul.msk.bf16.gmra.mxu2 %vm282_vm0, %v1210_v31  ;;  %1186 = vmatmul.msk.bf16.gmra.mxu3 %vm282_vm0, %v1218_v32 }
  0x85   :  { %1163 = vmatmul.msk.bf16.gmra.mxu0 %vm282_vm0, %v1195_v33  ;;  %1171 = vmatmul.msk.bf16.gmra.mxu1 %vm282_vm0, %v1203_v34 }
  0x86   :  { %1179 = vmatmul.msk.bf16.gmra.mxu2 %vm282_vm0, %v1211_v35  ;;  %1187 = vmatmul.msk.bf16.gmra.mxu3 %vm282_vm0, %v1219_v36 }
  0x92   :  { %v388_v38 = vpop.f32.mrf.mxu0  ;;  %v428_v39 = vpop.f32.mrf.mxu1 }
  0x93   :  { %v552_v40 = vmul.f32 %v1604_v37, %v388_v38  ;;  %v568_v42 = vmul.f32 %v1604_v37, %v428_v39 }
  0x95   :  { %v620_v43 = vadd.f32 %v1610_v41, %v552_v40  ;;  %v636_v44 = vadd.f32 %v1610_v41, %v568_v42 }
  0x97   :  { %v748_v53 = vmul.f32 0.1, %v620_v43  ;;  %v764_v54 = vmul.f32 0.1, %v636_v44  ;;  %vm684_vm1 = vcmp.gt.f32.partialorder %v620_v43, 0.0  ;;  %vm700_vm2 = vcmp.gt.f32.partialorder %v636_v44, 0.0 }
  0x99   :  { %v468_v45 = vpop.f32.mrf.mxu2  ;;  %v508_v46 = vpop.f32.mrf.mxu3  ;;  %v812_v61 = vsel %vm684_vm1, %v620_v43, %v748_v53  ;;  %v828_v62 = vsel %vm700_vm2, %v636_v44, %v764_v54 }
  0x9a   :  { %v390_v47 = vpop.f32.mrf.mxu0  ;;  %v430_v48 = vpop.f32.mrf.mxu1  ;;  %v584_v51 = vmul.f32 %v1604_v37, %v468_v45  ;;  %v600_v52 = vmul.f32 %v1604_v37, %v508_v46 }
  0x9b   :  { %v553_v49 = vmul.f32 %v1604_v37, %v390_v47  ;;  %v569_v50 = vmul.f32 %v1604_v37, %v430_v48 }
  0x9c   :  { %v652_v59 = vadd.f32 %v1610_v41, %v584_v51  ;;  %v668_v60 = vadd.f32 %v1610_v41, %v600_v52 }
  0x9d   :  { %v621_v55 = vadd.f32 %v1610_v41, %v553_v49  ;;  %v637_v56 = vadd.f32 %v1610_v41, %v569_v50 }
  0x9e   :  { %v780_v9 = vmul.f32 0.1, %v652_v59  ;;  %v796_v10 = vmul.f32 0.1, %v668_v60  ;;  %vm716_vm5 = vcmp.gt.f32.partialorder %v652_v59, 0.0  ;;  %vm732_vm6 = vcmp.gt.f32.partialorder %v668_v60, 0.0 }
  0x9f   :  { %vm685_vm3 = vcmp.gt.f32.partialorder %v621_v55, 0.0  ;;  %v749_v57 = vmul.f32 0.1, %v621_v55  ;;  %vm701_vm4 = vcmp.gt.f32.partialorder %v637_v56, 0.0  ;;  %v765_v58 = vmul.f32 0.1, %v637_v56 }
  0xa0   :  { %v844_v17 = vsel %vm716_vm5, %v652_v59, %v780_v9  ;;  %v860_v18 = vsel %vm732_vm6, %v668_v60, %v796_v10 }
  0xa1   :  { %v813_v63 = vsel %vm685_vm3, %v621_v55, %v749_v57  ;;  %v829_v0 = vsel %vm701_vm4, %v637_v56, %v765_v58  ;;  %v470_v1 = vpop.f32.mrf.mxu2  ;;  %v510_v2 = vpop.f32.mrf.mxu3 }
  0xa2   :  { %v1228_v3 = vpack.c.bf16 %v813_v63, %v812_v61  ;;  %v1268_v4 = vpack.c.bf16 %v829_v0, %v828_v62  ;;  %v585_v5 = vmul.f32 %v1604_v37, %v470_v1  ;;  %v601_v6 = vmul.f32 %v1604_v37, %v510_v2  ;;  %v393_v7 = vpop.f32.mrf.mxu0  ;;  %v433_v8 = vpop.f32.mrf.mxu1 }
  0xa3   :  { %v554_v13 = vmul.f32 %v1604_v37, %v393_v7  ;;  %v570_v14 = vmul.f32 %v1604_v37, %v433_v8 }
  0xa4   :  { %1229 = vst [vmem:[%s1839_s4] sm:$0xff] %v1228_v3   ;;  %v653_v11 = vadd.f32 %v1610_v41, %v585_v5  ;;  %v669_v12 = vadd.f32 %v1610_v41, %v601_v6 }
  0xa5   :  { %1392 = vst [vmem:[%s1839_s4 + $0x40] sm:$0xff] %v1268_v4   ;;  %v622_v23 = vadd.f32 %v1610_v41, %v554_v13  ;;  %v638_v24 = vadd.f32 %v1610_v41, %v570_v14 }
  0xa6   :  { %vm717_vm7 = vcmp.gt.f32.partialorder %v653_v11, 0.0  ;;  %v781_v15 = vmul.f32 0.1, %v653_v11  ;;  %vm733_vm8 = vcmp.gt.f32.partialorder %v669_v12, 0.0  ;;  %v797_v16 = vmul.f32 0.1, %v669_v12 }
  0xa7   :  { %v750_v33 = vmul.f32 0.1, %v622_v23  ;;  %v766_v34 = vmul.f32 0.1, %v638_v24  ;;  %vm686_vm9 = vcmp.gt.f32.partialorder %v622_v23, 0.0  ;;  %vm702_vm10 = vcmp.gt.f32.partialorder %v638_v24, 0.0 }
  0xa8   :  { %v845_v19 = vsel %vm717_vm7, %v653_v11, %v781_v15  ;;  %v861_v20 = vsel %vm733_vm8, %v669_v12, %v797_v16 }
  0xa9   :  { %v1308_v21 = vpack.c.bf16 %v845_v19, %v844_v17  ;;  %v1348_v22 = vpack.c.bf16 %v861_v20, %v860_v18  ;;  %v473_v25 = vpop.f32.mrf.mxu2  ;;  %v513_v26 = vpop.f32.mrf.mxu3  ;;  %v814_v43 = vsel %vm686_vm9, %v622_v23, %v750_v33  ;;  %v830_v44 = vsel %vm702_vm10, %v638_v24, %v766_v34 }
  0xaa   :  { %v395_v27 = vpop.f32.mrf.mxu0  ;;  %v435_v28 = vpop.f32.mrf.mxu1  ;;  %v586_v31 = vmul.f32 %v1604_v37, %v473_v25  ;;  %v602_v32 = vmul.f32 %v1604_v37, %v513_v26 }
  0xab   :  { %1400 = vst [vmem:[%s1839_s4 + $0x80] sm:$0xff] %v1308_v21   ;;  %v555_v29 = vmul.f32 %v1604_v37, %v395_v27  ;;  %v571_v30 = vmul.f32 %v1604_v37, %v435_v28 }
  0xac   :  { %1408 = vst [vmem:[%s1839_s4 + $0xc0] sm:$0xff] %v1348_v22   ;;  %v654_v40 = vadd.f32 %v1610_v41, %v586_v31  ;;  %v670_v42 = vadd.f32 %v1610_v41, %v602_v32 }
  0xad   :  { %v623_v35 = vadd.f32 %v1610_v41, %v555_v29  ;;  %v639_v36 = vadd.f32 %v1610_v41, %v571_v30 }
  0xae   :  { %v782_v55 = vmul.f32 0.1, %v654_v40  ;;  %v798_v56 = vmul.f32 0.1, %v670_v42  ;;  %vm718_vm13 = vcmp.gt.f32.partialorder %v654_v40, 0.0  ;;  %vm734_vm14 = vcmp.gt.f32.partialorder %v670_v42, 0.0 }
  0xaf   :  { %vm687_vm11 = vcmp.gt.f32.partialorder %v623_v35, 0.0  ;;  %v751_v38 = vmul.f32 0.1, %v623_v35  ;;  %vm703_vm12 = vcmp.gt.f32.partialorder %v639_v36, 0.0  ;;  %v767_v39 = vmul.f32 0.1, %v639_v36 }
  0xb0   :  { %v846_v63 = vsel %vm718_vm13, %v654_v40, %v782_v55  ;;  %v862_v0 = vsel %vm734_vm14, %v670_v42, %v798_v56 }
  0xb1   :  { %v815_v45 = vsel %vm687_vm11, %v623_v35, %v751_v38  ;;  %v831_v46 = vsel %vm703_vm12, %v639_v36, %v767_v39  ;;  %v475_v47 = vpop.f32.mrf.mxu2  ;;  %v515_v48 = vpop.f32.mrf.mxu3 }
  0xb2   :  { %v1233_v49 = vpack.c.bf16 %v815_v45, %v814_v43  ;;  %v1273_v50 = vpack.c.bf16 %v831_v46, %v830_v44  ;;  %v587_v51 = vmul.f32 %v1604_v37, %v475_v47  ;;  %v603_v52 = vmul.f32 %v1604_v37, %v515_v48  ;;  %v398_v53 = vpop.f32.mrf.mxu0  ;;  %v438_v54 = vpop.f32.mrf.mxu1 }
  0xb3   :  { %v556_v59 = vmul.f32 %v1604_v37, %v398_v53  ;;  %v572_v60 = vmul.f32 %v1604_v37, %v438_v54 }
  0xb4   :  { %1385 = vst [vmem:[%s1839_s4 + $0x8] sm:$0xff] %v1233_v49   ;;  %v655_v57 = vadd.f32 %v1610_v41, %v587_v51  ;;  %v671_v58 = vadd.f32 %v1610_v41, %v603_v52 }
  0xb5   :  { %1393 = vst [vmem:[%s1839_s4 + $0x48] sm:$0xff] %v1273_v50   ;;  %v624_v5 = vadd.f32 %v1610_v41, %v556_v59  ;;  %v640_v6 = vadd.f32 %v1610_v41, %v572_v60 }
  0xb6   :  { %vm719_vm15 = vcmp.gt.f32.partialorder %v655_v57, 0.0  ;;  %v783_v61 = vmul.f32 0.1, %v655_v57  ;;  %vm735_vm0 = vcmp.gt.f32.partialorder %v671_v58, 0.0  ;;  %v799_v62 = vmul.f32 0.1, %v671_v58 }
  0xb7   :  { %v752_v15 = vmul.f32 0.1, %v624_v5  ;;  %v768_v16 = vmul.f32 0.1, %v640_v6  ;;  %vm688_vm1 = vcmp.gt.f32.partialorder %v624_v5, 0.0  ;;  %vm704_vm2 = vcmp.gt.f32.partialorder %v640_v6, 0.0 }
  0xb8   :  { %v847_v1 = vsel %vm719_vm15, %v655_v57, %v783_v61  ;;  %v863_v2 = vsel %vm735_vm0, %v671_v58, %v799_v62 }
  0xb9   :  { %v1313_v3 = vpack.c.bf16 %v847_v1, %v846_v63  ;;  %v1353_v4 = vpack.c.bf16 %v863_v2, %v862_v0  ;;  %v478_v7 = vpop.f32.mrf.mxu2  ;;  %v518_v8 = vpop.f32.mrf.mxu3  ;;  %v816_v23 = vsel %vm688_vm1, %v624_v5, %v752_v15  ;;  %v832_v24 = vsel %vm704_vm2, %v640_v6, %v768_v16 }
  0xba   :  { %v400_v9 = vpop.f32.mrf.mxu0  ;;  %v440_v10 = vpop.f32.mrf.mxu1  ;;  %v588_v13 = vmul.f32 %v1604_v37, %v478_v7  ;;  %v604_v14 = vmul.f32 %v1604_v37, %v518_v8 }
  0xbb   :  { %1401 = vst [vmem:[%s1839_s4 + $0x88] sm:$0xff] %v1313_v3   ;;  %v557_v11 = vmul.f32 %v1604_v37, %v400_v9  ;;  %v573_v12 = vmul.f32 %v1604_v37, %v440_v10 }
  0xbc   :  { %1409 = vst [vmem:[%s1839_s4 + $0xc8] sm:$0xff] %v1353_v4   ;;  %v656_v21 = vadd.f32 %v1610_v41, %v588_v13  ;;  %v672_v22 = vadd.f32 %v1610_v41, %v604_v14 }
  0xbd   :  { %v625_v17 = vadd.f32 %v1610_v41, %v557_v11  ;;  %v641_v18 = vadd.f32 %v1610_v41, %v573_v12 }
  0xbe   :  { %v784_v35 = vmul.f32 0.1, %v656_v21  ;;  %v800_v36 = vmul.f32 0.1, %v672_v22  ;;  %vm720_vm5 = vcmp.gt.f32.partialorder %v656_v21, 0.0  ;;  %vm736_vm6 = vcmp.gt.f32.partialorder %v672_v22, 0.0 }
  0xbf   :  { %vm689_vm3 = vcmp.gt.f32.partialorder %v625_v17, 0.0  ;;  %v753_v19 = vmul.f32 0.1, %v625_v17  ;;  %vm705_vm4 = vcmp.gt.f32.partialorder %v641_v18, 0.0  ;;  %v769_v20 = vmul.f32 0.1, %v641_v18 }
  0xc0   :  { %v848_v45 = vsel %vm720_vm5, %v656_v21, %v784_v35  ;;  %v864_v46 = vsel %vm736_vm6, %v672_v22, %v800_v36 }
  0xc1   :  { %v817_v25 = vsel %vm689_vm3, %v625_v17, %v753_v19  ;;  %v833_v26 = vsel %vm705_vm4, %v641_v18, %v769_v20  ;;  %v480_v27 = vpop.f32.mrf.mxu2  ;;  %v520_v28 = vpop.f32.mrf.mxu3 }
  0xc2   :  { %v1238_v29 = vpack.c.bf16 %v817_v25, %v816_v23  ;;  %v1278_v30 = vpack.c.bf16 %v833_v26, %v832_v24  ;;  %v589_v31 = vmul.f32 %v1604_v37, %v480_v27  ;;  %v605_v32 = vmul.f32 %v1604_v37, %v520_v28  ;;  %v403_v33 = vpop.f32.mrf.mxu0  ;;  %v443_v34 = vpop.f32.mrf.mxu1 }
  0xc3   :  { %v558_v40 = vmul.f32 %v1604_v37, %v403_v33  ;;  %v574_v42 = vmul.f32 %v1604_v37, %v443_v34 }
  0xc4   :  { %1386 = vst [vmem:[%s1839_s4 + $0x10] sm:$0xff] %v1238_v29   ;;  %v657_v38 = vadd.f32 %v1610_v41, %v589_v31  ;;  %v673_v39 = vadd.f32 %v1610_v41, %v605_v32 }
  0xc5   :  { %1394 = vst [vmem:[%s1839_s4 + $0x50] sm:$0xff] %v1278_v30   ;;  %v626_v51 = vadd.f32 %v1610_v41, %v558_v40  ;;  %v642_v52 = vadd.f32 %v1610_v41, %v574_v42 }
  0xc6   :  { %vm721_vm7 = vcmp.gt.f32.partialorder %v657_v38, 0.0  ;;  %v785_v43 = vmul.f32 0.1, %v657_v38  ;;  %vm737_vm8 = vcmp.gt.f32.partialorder %v673_v39, 0.0  ;;  %v801_v44 = vmul.f32 0.1, %v673_v39 }
  0xc7   :  { %v754_v61 = vmul.f32 0.1, %v626_v51  ;;  %v770_v62 = vmul.f32 0.1, %v642_v52  ;;  %vm690_vm9 = vcmp.gt.f32.partialorder %v626_v51, 0.0  ;;  %vm706_vm10 = vcmp.gt.f32.partialorder %v642_v52, 0.0 }
  0xc8   :  { %v849_v47 = vsel %vm721_vm7, %v657_v38, %v785_v43  ;;  %v865_v48 = vsel %vm737_vm8, %v673_v39, %v801_v44 }
  0xc9   :  { %v1318_v49 = vpack.c.bf16 %v849_v47, %v848_v45  ;;  %v1358_v50 = vpack.c.bf16 %v865_v48, %v864_v46  ;;  %v483_v53 = vpop.f32.mrf.mxu2  ;;  %v523_v54 = vpop.f32.mrf.mxu3  ;;  %v818_v5 = vsel %vm690_vm9, %v626_v51, %v754_v61  ;;  %v834_v6 = vsel %vm706_vm10, %v642_v52, %v770_v62 }
  0xca   :  { %v405_v55 = vpop.f32.mrf.mxu0  ;;  %v445_v56 = vpop.f32.mrf.mxu1  ;;  %v590_v59 = vmul.f32 %v1604_v37, %v483_v53  ;;  %v606_v60 = vmul.f32 %v1604_v37, %v523_v54 }
  0xcb   :  { %1402 = vst [vmem:[%s1839_s4 + $0x90] sm:$0xff] %v1318_v49   ;;  %v559_v57 = vmul.f32 %v1604_v37, %v405_v55  ;;  %v575_v58 = vmul.f32 %v1604_v37, %v445_v56 }
  0xcc   :  { %1410 = vst [vmem:[%s1839_s4 + $0xd0] sm:$0xff] %v1358_v50   ;;  %v658_v3 = vadd.f32 %v1610_v41, %v590_v59  ;;  %v674_v4 = vadd.f32 %v1610_v41, %v606_v60 }
  0xcd   :  { %v627_v63 = vadd.f32 %v1610_v41, %v559_v57  ;;  %v643_v0 = vadd.f32 %v1610_v41, %v575_v58 }
  0xce   :  { %v786_v17 = vmul.f32 0.1, %v658_v3  ;;  %v802_v18 = vmul.f32 0.1, %v674_v4  ;;  %vm722_vm13 = vcmp.gt.f32.partialorder %v658_v3, 0.0  ;;  %vm738_vm14 = vcmp.gt.f32.partialorder %v674_v4, 0.0 }
  0xcf   :  { %vm691_vm11 = vcmp.gt.f32.partialorder %v627_v63, 0.0  ;;  %v755_v1 = vmul.f32 0.1, %v627_v63  ;;  %vm707_vm12 = vcmp.gt.f32.partialorder %v643_v0, 0.0  ;;  %v771_v2 = vmul.f32 0.1, %v643_v0 }
  0xd0   :  { %v850_v25 = vsel %vm722_vm13, %v658_v3, %v786_v17  ;;  %v866_v26 = vsel %vm738_vm14, %v674_v4, %v802_v18 }
  0xd1   :  { %v819_v7 = vsel %vm691_vm11, %v627_v63, %v755_v1  ;;  %v835_v8 = vsel %vm707_vm12, %v643_v0, %v771_v2  ;;  %v485_v9 = vpop.f32.mrf.mxu2  ;;  %v525_v10 = vpop.f32.mrf.mxu3 }
  0xd2   :  { %v1243_v11 = vpack.c.bf16 %v819_v7, %v818_v5  ;;  %v1283_v12 = vpack.c.bf16 %v835_v8, %v834_v6  ;;  %v591_v13 = vmul.f32 %v1604_v37, %v485_v9  ;;  %v607_v14 = vmul.f32 %v1604_v37, %v525_v10  ;;  %v408_v15 = vpop.f32.mrf.mxu0  ;;  %v448_v16 = vpop.f32.mrf.mxu1 }
  0xd3   :  { %v560_v21 = vmul.f32 %v1604_v37, %v408_v15  ;;  %v576_v22 = vmul.f32 %v1604_v37, %v448_v16 }
  0xd4   :  { %1387 = vst [vmem:[%s1839_s4 + $0x18] sm:$0xff] %v1243_v11   ;;  %v659_v19 = vadd.f32 %v1610_v41, %v591_v13  ;;  %v675_v20 = vadd.f32 %v1610_v41, %v607_v14 }
  0xd5   :  { %1395 = vst [vmem:[%s1839_s4 + $0x58] sm:$0xff] %v1283_v12   ;;  %v628_v31 = vadd.f32 %v1610_v41, %v560_v21  ;;  %v644_v32 = vadd.f32 %v1610_v41, %v576_v22 }
  0xd6   :  { %vm723_vm15 = vcmp.gt.f32.partialorder %v659_v19, 0.0  ;;  %v787_v23 = vmul.f32 0.1, %v659_v19  ;;  %vm739_vm0 = vcmp.gt.f32.partialorder %v675_v20, 0.0  ;;  %v803_v24 = vmul.f32 0.1, %v675_v20 }
  0xd7   :  { %v756_v43 = vmul.f32 0.1, %v628_v31  ;;  %v772_v44 = vmul.f32 0.1, %v644_v32  ;;  %vm692_vm1 = vcmp.gt.f32.partialorder %v628_v31, 0.0  ;;  %vm708_vm2 = vcmp.gt.f32.partialorder %v644_v32, 0.0 }
  0xd8   :  { %v851_v27 = vsel %vm723_vm15, %v659_v19, %v787_v23  ;;  %v867_v28 = vsel %vm739_vm0, %v675_v20, %v803_v24 }
  0xd9   :  { %v1323_v29 = vpack.c.bf16 %v851_v27, %v850_v25  ;;  %v1363_v30 = vpack.c.bf16 %v867_v28, %v866_v26  ;;  %v488_v33 = vpop.f32.mrf.mxu2  ;;  %v528_v34 = vpop.f32.mrf.mxu3  ;;  %v820_v51 = vsel %vm692_vm1, %v628_v31, %v756_v43  ;;  %v836_v52 = vsel %vm708_vm2, %v644_v32, %v772_v44 }
  0xda   :  { %v410_v35 = vpop.f32.mrf.mxu0  ;;  %v450_v36 = vpop.f32.mrf.mxu1  ;;  %v592_v40 = vmul.f32 %v1604_v37, %v488_v33  ;;  %v608_v42 = vmul.f32 %v1604_v37, %v528_v34 }
  0xdb   :  { %1403 = vst [vmem:[%s1839_s4 + $0x98] sm:$0xff] %v1323_v29   ;;  %v561_v38 = vmul.f32 %v1604_v37, %v410_v35  ;;  %v577_v39 = vmul.f32 %v1604_v37, %v450_v36 }
  0xdc   :  { %1411 = vst [vmem:[%s1839_s4 + $0xd8] sm:$0xff] %v1363_v30   ;;  %v660_v49 = vadd.f32 %v1610_v41, %v592_v40  ;;  %v676_v50 = vadd.f32 %v1610_v41, %v608_v42 }
  0xdd   :  { %v629_v45 = vadd.f32 %v1610_v41, %v561_v38  ;;  %v645_v46 = vadd.f32 %v1610_v41, %v577_v39 }
  0xde   :  { %v788_v63 = vmul.f32 0.1, %v660_v49  ;;  %v804_v0 = vmul.f32 0.1, %v676_v50  ;;  %vm724_vm5 = vcmp.gt.f32.partialorder %v660_v49, 0.0  ;;  %vm740_vm6 = vcmp.gt.f32.partialorder %v676_v50, 0.0 }
  0xdf   :  { %vm693_vm3 = vcmp.gt.f32.partialorder %v629_v45, 0.0  ;;  %v757_v47 = vmul.f32 0.1, %v629_v45  ;;  %vm709_vm4 = vcmp.gt.f32.partialorder %v645_v46, 0.0  ;;  %v773_v48 = vmul.f32 0.1, %v645_v46 }
  0xe0   :  { %v852_v7 = vsel %vm724_vm5, %v660_v49, %v788_v63  ;;  %v868_v8 = vsel %vm740_vm6, %v676_v50, %v804_v0 }
  0xe1   :  { %v821_v53 = vsel %vm693_vm3, %v629_v45, %v757_v47  ;;  %v837_v54 = vsel %vm709_vm4, %v645_v46, %v773_v48  ;;  %v490_v55 = vpop.f32.mrf.mxu2  ;;  %v530_v56 = vpop.f32.mrf.mxu3 }
  0xe2   :  { %v1248_v57 = vpack.c.bf16 %v821_v53, %v820_v51  ;;  %v1288_v58 = vpack.c.bf16 %v837_v54, %v836_v52  ;;  %v593_v59 = vmul.f32 %v1604_v37, %v490_v55  ;;  %v609_v60 = vmul.f32 %v1604_v37, %v530_v56  ;;  %v413_v61 = vpop.f32.mrf.mxu0  ;;  %v453_v62 = vpop.f32.mrf.mxu1 }
  0xe3   :  { %v562_v3 = vmul.f32 %v1604_v37, %v413_v61  ;;  %v578_v4 = vmul.f32 %v1604_v37, %v453_v62 }
  0xe4   :  { %1388 = vst [vmem:[%s1839_s4 + $0x20] sm:$0xff] %v1248_v57   ;;  %v661_v1 = vadd.f32 %v1610_v41, %v593_v59  ;;  %v677_v2 = vadd.f32 %v1610_v41, %v609_v60 }
  0xe5   :  { %1396 = vst [vmem:[%s1839_s4 + $0x60] sm:$0xff] %v1288_v58   ;;  %v630_v13 = vadd.f32 %v1610_v41, %v562_v3  ;;  %v646_v14 = vadd.f32 %v1610_v41, %v578_v4 }
  0xe6   :  { %vm725_vm7 = vcmp.gt.f32.partialorder %v661_v1, 0.0  ;;  %v789_v5 = vmul.f32 0.1, %v661_v1  ;;  %vm741_vm8 = vcmp.gt.f32.partialorder %v677_v2, 0.0  ;;  %v805_v6 = vmul.f32 0.1, %v677_v2 }
  0xe7   :  { %v758_v23 = vmul.f32 0.1, %v630_v13  ;;  %v774_v24 = vmul.f32 0.1, %v646_v14  ;;  %vm694_vm9 = vcmp.gt.f32.partialorder %v630_v13, 0.0  ;;  %vm710_vm10 = vcmp.gt.f32.partialorder %v646_v14, 0.0 }
  0xe8   :  { %v853_v9 = vsel %vm725_vm7, %v661_v1, %v789_v5  ;;  %v869_v10 = vsel %vm741_vm8, %v677_v2, %v805_v6 }
  0xe9   :  { %v1328_v11 = vpack.c.bf16 %v853_v9, %v852_v7  ;;  %v1368_v12 = vpack.c.bf16 %v869_v10, %v868_v8  ;;  %v493_v15 = vpop.f32.mrf.mxu2  ;;  %v533_v16 = vpop.f32.mrf.mxu3  ;;  %v822_v31 = vsel %vm694_vm9, %v630_v13, %v758_v23  ;;  %v838_v32 = vsel %vm710_vm10, %v646_v14, %v774_v24 }
  0xea   :  { %v415_v17 = vpop.f32.mrf.mxu0  ;;  %v455_v18 = vpop.f32.mrf.mxu1  ;;  %v594_v21 = vmul.f32 %v1604_v37, %v493_v15  ;;  %v610_v22 = vmul.f32 %v1604_v37, %v533_v16 }
  0xeb   :  { %1404 = vst [vmem:[%s1839_s4 + $0xa0] sm:$0xff] %v1328_v11   ;;  %v563_v19 = vmul.f32 %v1604_v37, %v415_v17  ;;  %v579_v20 = vmul.f32 %v1604_v37, %v455_v18 }
  0xec   :  { %1412 = vst [vmem:[%s1839_s4 + $0xe0] sm:$0xff] %v1368_v12   ;;  %v662_v29 = vadd.f32 %v1610_v41, %v594_v21  ;;  %v678_v30 = vadd.f32 %v1610_v41, %v610_v22 }
  0xed   :  { %v631_v25 = vadd.f32 %v1610_v41, %v563_v19  ;;  %v647_v26 = vadd.f32 %v1610_v41, %v579_v20 }
  0xee   :  { %v790_v45 = vmul.f32 0.1, %v662_v29  ;;  %v806_v46 = vmul.f32 0.1, %v678_v30  ;;  %vm726_vm13 = vcmp.gt.f32.partialorder %v662_v29, 0.0  ;;  %vm742_vm14 = vcmp.gt.f32.partialorder %v678_v30, 0.0 }
  0xef   :  { %vm695_vm11 = vcmp.gt.f32.partialorder %v631_v25, 0.0  ;;  %v759_v27 = vmul.f32 0.1, %v631_v25  ;;  %vm711_vm12 = vcmp.gt.f32.partialorder %v647_v26, 0.0  ;;  %v775_v28 = vmul.f32 0.1, %v647_v26 }
  0xf0   :  { %v854_v53 = vsel %vm726_vm13, %v662_v29, %v790_v45  ;;  %v870_v54 = vsel %vm742_vm14, %v678_v30, %v806_v46 }
  0xf1   :  { %v823_v33 = vsel %vm695_vm11, %v631_v25, %v759_v27  ;;  %v839_v34 = vsel %vm711_vm12, %v647_v26, %v775_v28  ;;  %v495_v35 = vpop.f32.mrf.mxu2  ;;  %v535_v36 = vpop.f32.mrf.mxu3 }
  0xf2   :  { %v1253_v38 = vpack.c.bf16 %v823_v33, %v822_v31  ;;  %v1293_v39 = vpack.c.bf16 %v839_v34, %v838_v32  ;;  %v595_v40 = vmul.f32 %v1604_v37, %v495_v35  ;;  %v611_v42 = vmul.f32 %v1604_v37, %v535_v36  ;;  %v418_v43 = vpop.f32.mrf.mxu0  ;;  %v458_v44 = vpop.f32.mrf.mxu1 }
  0xf3   :  { %v564_v49 = vmul.f32 %v1604_v37, %v418_v43  ;;  %v580_v50 = vmul.f32 %v1604_v37, %v458_v44 }
  0xf4   :  { %1389 = vst [vmem:[%s1839_s4 + $0x28] sm:$0xff] %v1253_v38   ;;  %v663_v47 = vadd.f32 %v1610_v41, %v595_v40  ;;  %v679_v48 = vadd.f32 %v1610_v41, %v611_v42 }
  0xf5   :  { %1397 = vst [vmem:[%s1839_s4 + $0x68] sm:$0xff] %v1293_v39   ;;  %v632_v59 = vadd.f32 %v1610_v41, %v564_v49  ;;  %v648_v60 = vadd.f32 %v1610_v41, %v580_v50 }
  0xf6   :  { %vm727_vm15 = vcmp.gt.f32.partialorder %v663_v47, 0.0  ;;  %v791_v51 = vmul.f32 0.1, %v663_v47  ;;  %vm743_vm0 = vcmp.gt.f32.partialorder %v679_v48, 0.0  ;;  %v807_v52 = vmul.f32 0.1, %v679_v48 }
  0xf7   :  { %v760_v5 = vmul.f32 0.1, %v632_v59  ;;  %v776_v6 = vmul.f32 0.1, %v648_v60  ;;  %vm696_vm1 = vcmp.gt.f32.partialorder %v632_v59, 0.0  ;;  %vm712_vm2 = vcmp.gt.f32.partialorder %v648_v60, 0.0 }
  0xf8   :  { %v855_v55 = vsel %vm727_vm15, %v663_v47, %v791_v51  ;;  %v871_v56 = vsel %vm743_vm0, %v679_v48, %v807_v52 }
  0xf9   :  { %v1333_v57 = vpack.c.bf16 %v855_v55, %v854_v53  ;;  %v1373_v58 = vpack.c.bf16 %v871_v56, %v870_v54  ;;  %v498_v61 = vpop.f32.mrf.mxu2  ;;  %v538_v62 = vpop.f32.mrf.mxu3  ;;  %v824_v13 = vsel %vm696_vm1, %v632_v59, %v760_v5  ;;  %v840_v14 = vsel %vm712_vm2, %v648_v60, %v776_v6 }
  0xfa   :  { %v420_v63 = vpop.f32.mrf.mxu0  ;;  %v460_v0 = vpop.f32.mrf.mxu1  ;;  %v596_v3 = vmul.f32 %v1604_v37, %v498_v61  ;;  %v612_v4 = vmul.f32 %v1604_v37, %v538_v62 }
  0xfb   :  { %1405 = vst [vmem:[%s1839_s4 + $0xa8] sm:$0xff] %v1333_v57   ;;  %v565_v1 = vmul.f32 %v1604_v37, %v420_v63  ;;  %v581_v2 = vmul.f32 %v1604_v37, %v460_v0 }
  0xfc   :  { %1413 = vst [vmem:[%s1839_s4 + $0xe8] sm:$0xff] %v1373_v58   ;;  %v664_v11 = vadd.f32 %v1610_v41, %v596_v3  ;;  %v680_v12 = vadd.f32 %v1610_v41, %v612_v4 }
  0xfd   :  { %v633_v7 = vadd.f32 %v1610_v41, %v565_v1  ;;  %v649_v8 = vadd.f32 %v1610_v41, %v581_v2 }
  0xfe   :  { %v792_v25 = vmul.f32 0.1, %v664_v11  ;;  %v808_v26 = vmul.f32 0.1, %v680_v12  ;;  %vm728_vm5 = vcmp.gt.f32.partialorder %v664_v11, 0.0  ;;  %vm744_vm6 = vcmp.gt.f32.partialorder %v680_v12, 0.0 }
  0xff   :  { %vm697_vm3 = vcmp.gt.f32.partialorder %v633_v7, 0.0  ;;  %v761_v9 = vmul.f32 0.1, %v633_v7  ;;  %vm713_vm4 = vcmp.gt.f32.partialorder %v649_v8, 0.0  ;;  %v777_v10 = vmul.f32 0.1, %v649_v8 }
 0x100   :  { %v856_v33 = vsel %vm728_vm5, %v664_v11, %v792_v25  ;;  %v872_v34 = vsel %vm744_vm6, %v680_v12, %v808_v26 }
 0x101   :  { %v825_v15 = vsel %vm697_vm3, %v633_v7, %v761_v9  ;;  %v841_v16 = vsel %vm713_vm4, %v649_v8, %v777_v10  ;;  %v500_v17 = vpop.f32.mrf.mxu2  ;;  %v540_v18 = vpop.f32.mrf.mxu3 }
 0x102   :  { %v1258_v19 = vpack.c.bf16 %v825_v15, %v824_v13  ;;  %v1298_v20 = vpack.c.bf16 %v841_v16, %v840_v14  ;;  %v597_v21 = vmul.f32 %v1604_v37, %v500_v17  ;;  %v613_v22 = vmul.f32 %v1604_v37, %v540_v18  ;;  %v423_v23 = vpop.f32.mrf.mxu0  ;;  %v463_v24 = vpop.f32.mrf.mxu1 }
 0x103   :  { %v566_v29 = vmul.f32 %v1604_v37, %v423_v23  ;;  %v582_v30 = vmul.f32 %v1604_v37, %v463_v24 }
 0x104   :  { %1390 = vst [vmem:[%s1839_s4 + $0x30] sm:$0xff] %v1258_v19   ;;  %v665_v27 = vadd.f32 %v1610_v41, %v597_v21  ;;  %v681_v28 = vadd.f32 %v1610_v41, %v613_v22 }
 0x105   :  { %1398 = vst [vmem:[%s1839_s4 + $0x70] sm:$0xff] %v1298_v20   ;;  %v634_v40 = vadd.f32 %v1610_v41, %v566_v29  ;;  %v650_v42 = vadd.f32 %v1610_v41, %v582_v30 }
 0x106   :  { %vm729_vm7 = vcmp.gt.f32.partialorder %v665_v27, 0.0  ;;  %v793_v31 = vmul.f32 0.1, %v665_v27  ;;  %vm745_vm8 = vcmp.gt.f32.partialorder %v681_v28, 0.0  ;;  %v809_v32 = vmul.f32 0.1, %v681_v28 }
 0x107   :  { %v762_v51 = vmul.f32 0.1, %v634_v40  ;;  %v778_v52 = vmul.f32 0.1, %v650_v42  ;;  %vm698_vm9 = vcmp.gt.f32.partialorder %v634_v40, 0.0  ;;  %vm714_vm10 = vcmp.gt.f32.partialorder %v650_v42, 0.0 }
 0x108   :  { %v857_v35 = vsel %vm729_vm7, %v665_v27, %v793_v31  ;;  %v873_v36 = vsel %vm745_vm8, %v681_v28, %v809_v32 }
 0x109   :  { %v1338_v38 = vpack.c.bf16 %v857_v35, %v856_v33  ;;  %v1378_v39 = vpack.c.bf16 %v873_v36, %v872_v34  ;;  %v503_v43 = vpop.f32.mrf.mxu2  ;;  %v543_v44 = vpop.f32.mrf.mxu3  ;;  %v826_v59 = vsel %vm698_vm9, %v634_v40, %v762_v51  ;;  %v842_v60 = vsel %vm714_vm10, %v650_v42, %v778_v52 }
 0x10a   :  { %v425_v45 = vpop.f32.mrf.mxu0  ;;  %v465_v46 = vpop.f32.mrf.mxu1  ;;  %v598_v49 = vmul.f32 %v1604_v37, %v503_v43  ;;  %v614_v50 = vmul.f32 %v1604_v37, %v543_v44 }
 0x10b   :  { %1406 = vst [vmem:[%s1839_s4 + $0xb0] sm:$0xff] %v1338_v38   ;;  %v567_v47 = vmul.f32 %v1604_v37, %v425_v45  ;;  %v583_v48 = vmul.f32 %v1604_v37, %v465_v46 }
 0x10c   :  { %1414 = vst [vmem:[%s1839_s4 + $0xf0] sm:$0xff] %v1378_v39   ;;  %v666_v57 = vadd.f32 %v1610_v41, %v598_v49  ;;  %v682_v58 = vadd.f32 %v1610_v41, %v614_v50 }
 0x10d   :  { %v635_v53 = vadd.f32 %v1610_v41, %v567_v47  ;;  %v651_v54 = vadd.f32 %v1610_v41, %v583_v48 }
 0x10e   :  { %v794_v5 = vmul.f32 0.1, %v666_v57  ;;  %v810_v6 = vmul.f32 0.1, %v682_v58  ;;  %vm730_vm13 = vcmp.gt.f32.partialorder %v666_v57, 0.0  ;;  %vm746_vm14 = vcmp.gt.f32.partialorder %v682_v58, 0.0 }
 0x10f   :  { %vm699_vm11 = vcmp.gt.f32.partialorder %v635_v53, 0.0  ;;  %v763_v55 = vmul.f32 0.1, %v635_v53  ;;  %vm715_vm12 = vcmp.gt.f32.partialorder %v651_v54, 0.0  ;;  %v779_v56 = vmul.f32 0.1, %v651_v54 }
 0x110   :  { %v858_v10 = vsel %vm730_vm13, %v666_v57, %v794_v5  ;;  %v874_v11 = vsel %vm746_vm14, %v682_v58, %v810_v6 }
 0x111   :  { %v827_v61 = vsel %vm699_vm11, %v635_v53, %v763_v55  ;;  %v843_v62 = vsel %vm715_vm12, %v651_v54, %v779_v56  ;;  %v505_v63 = vpop.f32.mrf.mxu2  ;;  %v545_v0 = vpop.f32.mrf.mxu3 }
 0x112   :  { %v1263_v1 = vpack.c.bf16 %v827_v61, %v826_v59  ;;  %v1303_v2 = vpack.c.bf16 %v843_v62, %v842_v60  ;;  %v599_v3 = vmul.f32 %v1604_v37, %v505_v63  ;;  %v615_v4 = vmul.f32 %v1604_v37, %v545_v0 }
 0x114   :  { %1391 = vst [vmem:[%s1839_s4 + $0x38] sm:$0xff] %v1263_v1   ;;  %v667_v7 = vadd.f32 %v1610_v41, %v599_v3  ;;  %v683_v8 = vadd.f32 %v1610_v41, %v615_v4 }
 0x115   :  { %1399 = vst [vmem:[%s1839_s4 + $0x78] sm:$0xff] %v1303_v2  }
 0x116   :  { %vm731_vm15 = vcmp.gt.f32.partialorder %v667_v7, 0.0  ;;  %v795_v9 = vmul.f32 0.1, %v667_v7  ;;  %vm747_vm0 = vcmp.gt.f32.partialorder %v683_v8, 0.0  ;;  %v811_v37 = vmul.f32 0.1, %v683_v8 }
 0x118   :  { %v859_v12 = vsel %vm731_vm15, %v667_v7, %v795_v9  ;;  %v875_v13 = vsel %vm747_vm0, %v683_v8, %v811_v37 }
 0x119   :  { %v1343_v14 = vpack.c.bf16 %v859_v12, %v858_v10  ;;  %v1383_v15 = vpack.c.bf16 %v875_v13, %v874_v11 }
 0x11b   :  { %1407 = vst [vmem:[%s1839_s4 + $0xb8] sm:$0xff] %v1343_v14  }
 0x11c   :  { %1415 = vst [vmem:[%s1839_s4 + $0xf8] sm:$0xff] %v1383_v15  }

// kernel: darknet_forward.12
= control target key start
LH: loop header
LB: loop body
LE: loop exit
PB: predicated region body
PF: predicated region fallthrough
CT: control target
= control target key end

     0   :  { %vm114_vm0 = vcmask 654336   ;;  %s587_s1 = inlined_call_operand.vmem [shape: bf16[80,128], index: 1, kind: input, shape index: {}]   ;;  %s588_s2 = inlined_call_operand.vmem [shape: f32[1,128], index: 2, kind: input, shape index: {}]   ;;  %s589_s3 = inlined_call_operand.vmem [shape: f32[1,128], index: 3, kind: input, shape index: {}]   ;;  %s590_s0 = inlined_call_operand.vmem [shape: bf16[128,80], index: 0, kind: input, shape index: {}]   ;;  %s591_s4 = inlined_call_operand.vmem [shape: bf16[128,128], index: 4, kind: output, shape index: {}]  }
   0x1   :  { %v384_v0 = vld [vmem:[%s587_s1 + $0x20] sm:$0xff]  ;;  %v383_v1 = vld [vmem:[%s587_s1 + $0x18] sm:$0xff]  ;;  %v382_v2 = vld [vmem:[%s587_s1 + $0x10] sm:$0xff] }
   0x2   :  { %142 = vmatpush.bf16.msra.mxu0 %v384_v0  ;;  %432 = vmatpush.bf16.msra.mxu1 %v384_v0  ;;  %v381_v3 = vld [vmem:[%s587_s1 + $0x8] sm:$0xff]  ;;  %v380_v4 = vld [vmem:[%s587_s1] sm:$0xff]  ;;  %v374_v6 = vld [vmem:[%s590_s0 + $0x10] sm:$0xff] }
   0x3   :  { %433 = vmatpush.bf16.msra.mxu2 %v384_v0  ;;  %434 = vmatpush.bf16.msra.mxu3 %v384_v0  ;;  %v372_v5 = vld [vmem:[%s590_s0] sm:$0xff]  ;;  %v378_v8 = vld [vmem:[%s590_s0 + $0x30] sm:$0xff]  ;;  %v373_v9 = vld [vmem:[%s590_s0 + $0x8] sm:$0xff] }
   0x4   :  { %v376_v7 = vld [vmem:[%s590_s0 + $0x20] sm:$0xff]  ;;  %v375_v10 = vld [vmem:[%s590_s0 + $0x18] sm:$0xff]  ;;  %v377_v11 = vld [vmem:[%s590_s0 + $0x28] sm:$0xff] }
   0x5   :  { %v379_v12 = vld [vmem:[%s590_s0 + $0x38] sm:$0xff]  ;;  %v524_v13 = vld [vmem:[%s588_s2] ss:$0 sm:$0xff] }
   0x6   :  { %143 = vmatpush.bf16.msra.mxu0 %v383_v1  ;;  %435 = vmatpush.bf16.msra.mxu1 %v383_v1  ;;  %v530_v17 = vld [vmem:[%s589_s3] ss:$0 sm:$0xff] }
   0x7   :  { %436 = vmatpush.bf16.msra.mxu2 %v383_v1  ;;  %437 = vmatpush.bf16.msra.mxu3 %v383_v1 }
   0xa   :  { %144 = vmatpush.bf16.msra.mxu0 %v382_v2  ;;  %438 = vmatpush.bf16.msra.mxu1 %v382_v2 }
   0xb   :  { %439 = vmatpush.bf16.msra.mxu2 %v382_v2  ;;  %440 = vmatpush.bf16.msra.mxu3 %v382_v2 }
   0xe   :  { %145 = vmatpush.bf16.msra.mxu0 %v381_v3  ;;  %441 = vmatpush.bf16.msra.mxu1 %v381_v3 }
   0xf   :  { %442 = vmatpush.bf16.msra.mxu2 %v381_v3  ;;  %443 = vmatpush.bf16.msra.mxu3 %v381_v3 }
  0x12   :  { %146 = vmatpush.bf16.msra.mxu0 %v380_v4  ;;  %444 = vmatpush.bf16.msra.mxu1 %v380_v4 }
  0x13   :  { %445 = vmatpush.bf16.msra.mxu2 %v380_v4  ;;  %446 = vmatpush.bf16.msra.mxu3 %v380_v4 }
  0x15   :  { %364 = vmatmul.msk.bf16.vlgmr.msra.gmra.mxu0 %vm114_vm0, %v372_v5  ;;  %366 = vmatmul.msk.bf16.vlgmr.msra.gmra.mxu1 %vm114_vm0, %v374_v6 }
  0x16   :  { %368 = vmatmul.msk.bf16.vlgmr.msra.gmra.mxu2 %vm114_vm0, %v376_v7  ;;  %370 = vmatmul.msk.bf16.vlgmr.msra.gmra.mxu3 %vm114_vm0, %v378_v8 }
  0x25   :  { %365 = vmatmul.msk.bf16.gmra.mxu0 %vm114_vm0, %v373_v9  ;;  %367 = vmatmul.msk.bf16.gmra.mxu1 %vm114_vm0, %v375_v10 }
  0x26   :  { %369 = vmatmul.msk.bf16.gmra.mxu2 %vm114_vm0, %v377_v11  ;;  %371 = vmatmul.msk.bf16.gmra.mxu3 %vm114_vm0, %v379_v12 }
  0x92   :  { %v148_v14 = vpop.f32.mrf.mxu0  ;;  %v158_v15 = vpop.f32.mrf.mxu1 }
  0x93   :  { %v192_v16 = vmul.f32 %v524_v13, %v148_v14  ;;  %v196_v18 = vmul.f32 %v524_v13, %v158_v15 }
  0x95   :  { %v212_v19 = vadd.f32 %v530_v17, %v192_v16  ;;  %v216_v20 = vadd.f32 %v530_v17, %v196_v18 }
  0x97   :  { %v244_v29 = vmul.f32 0.1, %v212_v19  ;;  %v248_v30 = vmul.f32 0.1, %v216_v20  ;;  %vm228_vm1 = vcmp.gt.f32.partialorder %v212_v19, 0.0  ;;  %vm232_vm2 = vcmp.gt.f32.partialorder %v216_v20, 0.0 }
  0x99   :  { %v168_v21 = vpop.f32.mrf.mxu2  ;;  %v178_v22 = vpop.f32.mrf.mxu3  ;;  %v260_v37 = vsel %vm228_vm1, %v212_v19, %v244_v29  ;;  %v264_v38 = vsel %vm232_vm2, %v216_v20, %v248_v30 }
  0x9a   :  { %v150_v23 = vpop.f32.mrf.mxu0  ;;  %v160_v24 = vpop.f32.mrf.mxu1  ;;  %v200_v27 = vmul.f32 %v524_v13, %v168_v21  ;;  %v204_v28 = vmul.f32 %v524_v13, %v178_v22 }
  0x9b   :  { %v193_v25 = vmul.f32 %v524_v13, %v150_v23  ;;  %v197_v26 = vmul.f32 %v524_v13, %v160_v24 }
  0x9c   :  { %v220_v35 = vadd.f32 %v530_v17, %v200_v27  ;;  %v224_v36 = vadd.f32 %v530_v17, %v204_v28 }
  0x9d   :  { %v213_v31 = vadd.f32 %v530_v17, %v193_v25  ;;  %v217_v32 = vadd.f32 %v530_v17, %v197_v26 }
  0x9e   :  { %v252_v49 = vmul.f32 0.1, %v220_v35  ;;  %v256_v50 = vmul.f32 0.1, %v224_v36  ;;  %vm236_vm5 = vcmp.gt.f32.partialorder %v220_v35, 0.0  ;;  %vm240_vm6 = vcmp.gt.f32.partialorder %v224_v36, 0.0 }
  0x9f   :  { %vm229_vm3 = vcmp.gt.f32.partialorder %v213_v31, 0.0  ;;  %v245_v33 = vmul.f32 0.1, %v213_v31  ;;  %vm233_vm4 = vcmp.gt.f32.partialorder %v217_v32, 0.0  ;;  %v249_v34 = vmul.f32 0.1, %v217_v32 }
  0xa0   :  { %v268_v57 = vsel %vm236_vm5, %v220_v35, %v252_v49  ;;  %v272_v58 = vsel %vm240_vm6, %v224_v36, %v256_v50 }
  0xa1   :  { %v261_v39 = vsel %vm229_vm3, %v213_v31, %v245_v33  ;;  %v265_v40 = vsel %vm233_vm4, %v217_v32, %v249_v34  ;;  %v170_v41 = vpop.f32.mrf.mxu2  ;;  %v180_v42 = vpop.f32.mrf.mxu3 }
  0xa2   :  { %v388_v43 = vpack.c.bf16 %v261_v39, %v260_v37  ;;  %v398_v44 = vpack.c.bf16 %v265_v40, %v264_v38  ;;  %v201_v45 = vmul.f32 %v524_v13, %v170_v41  ;;  %v205_v46 = vmul.f32 %v524_v13, %v180_v42  ;;  %v153_v47 = vpop.f32.mrf.mxu0  ;;  %v163_v48 = vpop.f32.mrf.mxu1 }
  0xa3   :  { %v194_v53 = vmul.f32 %v524_v13, %v153_v47  ;;  %v198_v54 = vmul.f32 %v524_v13, %v163_v48 }
  0xa4   :  { %389 = vst [vmem:[%s591_s4] sm:$0xff] %v388_v43   ;;  %v221_v51 = vadd.f32 %v530_v17, %v201_v45  ;;  %v225_v52 = vadd.f32 %v530_v17, %v205_v46 }
  0xa5   :  { %426 = vst [vmem:[%s591_s4 + $0x10] sm:$0xff] %v398_v44   ;;  %v214_v63 = vadd.f32 %v530_v17, %v194_v53  ;;  %v218_v0 = vadd.f32 %v530_v17, %v198_v54 }
  0xa6   :  { %vm237_vm7 = vcmp.gt.f32.partialorder %v221_v51, 0.0  ;;  %v253_v55 = vmul.f32 0.1, %v221_v51  ;;  %vm241_vm8 = vcmp.gt.f32.partialorder %v225_v52, 0.0  ;;  %v257_v56 = vmul.f32 0.1, %v225_v52 }
  0xa7   :  { %v246_v9 = vmul.f32 0.1, %v214_v63  ;;  %v250_v10 = vmul.f32 0.1, %v218_v0  ;;  %vm230_vm9 = vcmp.gt.f32.partialorder %v214_v63, 0.0  ;;  %vm234_vm10 = vcmp.gt.f32.partialorder %v218_v0, 0.0 }
  0xa8   :  { %v269_v59 = vsel %vm237_vm7, %v221_v51, %v253_v55  ;;  %v273_v60 = vsel %vm241_vm8, %v225_v52, %v257_v56 }
  0xa9   :  { %v408_v61 = vpack.c.bf16 %v269_v59, %v268_v57  ;;  %v418_v62 = vpack.c.bf16 %v273_v60, %v272_v58  ;;  %v173_v1 = vpop.f32.mrf.mxu2  ;;  %v183_v2 = vpop.f32.mrf.mxu3  ;;  %v262_v19 = vsel %vm230_vm9, %v214_v63, %v246_v9  ;;  %v266_v20 = vsel %vm234_vm10, %v218_v0, %v250_v10 }
  0xaa   :  { %v155_v3 = vpop.f32.mrf.mxu0  ;;  %v165_v4 = vpop.f32.mrf.mxu1  ;;  %v202_v7 = vmul.f32 %v524_v13, %v173_v1  ;;  %v206_v8 = vmul.f32 %v524_v13, %v183_v2 }
  0xab   :  { %428 = vst [vmem:[%s591_s4 + $0x20] sm:$0xff] %v408_v61   ;;  %v195_v5 = vmul.f32 %v524_v13, %v155_v3  ;;  %v199_v6 = vmul.f32 %v524_v13, %v165_v4 }
  0xac   :  { %430 = vst [vmem:[%s591_s4 + $0x30] sm:$0xff] %v418_v62   ;;  %v222_v16 = vadd.f32 %v530_v17, %v202_v7  ;;  %v226_v18 = vadd.f32 %v530_v17, %v206_v8 }
  0xad   :  { %v215_v11 = vadd.f32 %v530_v17, %v195_v5  ;;  %v219_v12 = vadd.f32 %v530_v17, %v199_v6 }
  0xae   :  { %v254_v29 = vmul.f32 0.1, %v222_v16  ;;  %v258_v30 = vmul.f32 0.1, %v226_v18  ;;  %vm238_vm13 = vcmp.gt.f32.partialorder %v222_v16, 0.0  ;;  %vm242_vm14 = vcmp.gt.f32.partialorder %v226_v18, 0.0 }
  0xaf   :  { %vm231_vm11 = vcmp.gt.f32.partialorder %v215_v11, 0.0  ;;  %v247_v14 = vmul.f32 0.1, %v215_v11  ;;  %vm235_vm12 = vcmp.gt.f32.partialorder %v219_v12, 0.0  ;;  %v251_v15 = vmul.f32 0.1, %v219_v12 }
  0xb0   :  { %v270_v34 = vsel %vm238_vm13, %v222_v16, %v254_v29  ;;  %v274_v35 = vsel %vm242_vm14, %v226_v18, %v258_v30 }
  0xb1   :  { %v263_v21 = vsel %vm231_vm11, %v215_v11, %v247_v14  ;;  %v267_v22 = vsel %vm235_vm12, %v219_v12, %v251_v15  ;;  %v175_v23 = vpop.f32.mrf.mxu2  ;;  %v185_v24 = vpop.f32.mrf.mxu3 }
  0xb2   :  { %v393_v25 = vpack.c.bf16 %v263_v21, %v262_v19  ;;  %v403_v26 = vpack.c.bf16 %v267_v22, %v266_v20  ;;  %v203_v27 = vmul.f32 %v524_v13, %v175_v23  ;;  %v207_v28 = vmul.f32 %v524_v13, %v185_v24 }
  0xb4   :  { %425 = vst [vmem:[%s591_s4 + $0x8] sm:$0xff] %v393_v25   ;;  %v223_v31 = vadd.f32 %v530_v17, %v203_v27  ;;  %v227_v32 = vadd.f32 %v530_v17, %v207_v28 }
  0xb5   :  { %427 = vst [vmem:[%s591_s4 + $0x18] sm:$0xff] %v403_v26  }
  0xb6   :  { %vm239_vm15 = vcmp.gt.f32.partialorder %v223_v31, 0.0  ;;  %v255_v33 = vmul.f32 0.1, %v223_v31  ;;  %vm243_vm0 = vcmp.gt.f32.partialorder %v227_v32, 0.0  ;;  %v259_v13 = vmul.f32 0.1, %v227_v32 }
  0xb8   :  { %v271_v36 = vsel %vm239_vm15, %v223_v31, %v255_v33  ;;  %v275_v37 = vsel %vm243_vm0, %v227_v32, %v259_v13 }
  0xb9   :  { %v413_v38 = vpack.c.bf16 %v271_v36, %v270_v34  ;;  %v423_v39 = vpack.c.bf16 %v275_v37, %v274_v35 }
  0xbb   :  { %429 = vst [vmem:[%s591_s4 + $0x28] sm:$0xff] %v413_v38  }
  0xbc   :  { %431 = vst [vmem:[%s591_s4 + $0x38] sm:$0xff] %v423_v39  }

// kernel: darknet_forward.13
= control target key start
LH: loop header
LB: loop body
LE: loop exit
PB: predicated region body
PF: predicated region fallthrough
CT: control target
= control target key end

     0   :  { %vm82_vm0 = vcmask 130048   ;;  %s511_s1 = inlined_call_operand.vmem [shape: bf16[16,128], index: 1, kind: input, shape index: {}]   ;;  %s512_s0 = inlined_call_operand.vmem [shape: bf16[128,16], index: 0, kind: input, shape index: {}]   ;;  %s513_s2 = inlined_call_operand.vmem [shape: f32[1,128], index: 2, kind: input, shape index: {}]   ;;  %s514_s3 = inlined_call_operand.vmem [shape: f32[1,128], index: 3, kind: input, shape index: {}]   ;;  %s515_s4 = inlined_call_operand.vmem [shape: bf16[128,128], index: 4, kind: output, shape index: {}]  }
   0x1   :  { %v332_v0 = vld [vmem:[%s511_s1] sm:$0xff]  ;;  %v326_v2 = vld [vmem:[%s512_s0 + $0x10] sm:$0xff]  ;;  %v325_v5 = vld [vmem:[%s512_s0 + $0x8] sm:$0xff] }
   0x2   :  { %v324_v1 = vld [vmem:[%s512_s0] sm:$0xff]  ;;  %114 = vmatpush.bf16.msra.mxu0 %v332_v0  ;;  %380 = vmatpush.bf16.msra.mxu1 %v332_v0  ;;  %v330_v4 = vld [vmem:[%s512_s0 + $0x30] sm:$0xff]  ;;  %v327_v6 = vld [vmem:[%s512_s0 + $0x18] sm:$0xff] }
   0x3   :  { %v328_v3 = vld [vmem:[%s512_s0 + $0x20] sm:$0xff]  ;;  %381 = vmatpush.bf16.msra.mxu2 %v332_v0  ;;  %382 = vmatpush.bf16.msra.mxu3 %v332_v0  ;;  %v329_v7 = vld [vmem:[%s512_s0 + $0x28] sm:$0xff]  ;;  %v331_v8 = vld [vmem:[%s512_s0 + $0x38] sm:$0xff] }
   0x4   :  { %v448_v9 = vld [vmem:[%s513_s2] ss:$0 sm:$0xff] }
   0x5   :  { %316 = vmatmul.msk.bf16.vlgmr.msra.gmra.mxu0 %vm82_vm0, %v324_v1  ;;  %318 = vmatmul.msk.bf16.vlgmr.msra.gmra.mxu1 %vm82_vm0, %v326_v2  ;;  %v454_v13 = vld [vmem:[%s514_s3] ss:$0 sm:$0xff] }
   0x6   :  { %320 = vmatmul.msk.bf16.vlgmr.msra.gmra.mxu2 %vm82_vm0, %v328_v3  ;;  %322 = vmatmul.msk.bf16.vlgmr.msra.gmra.mxu3 %vm82_vm0, %v330_v4 }
  0x15   :  { %317 = vmatmul.msk.bf16.gmra.mxu0 %vm82_vm0, %v325_v5  ;;  %319 = vmatmul.msk.bf16.gmra.mxu1 %vm82_vm0, %v327_v6 }
  0x16   :  { %321 = vmatmul.msk.bf16.gmra.mxu2 %vm82_vm0, %v329_v7  ;;  %323 = vmatmul.msk.bf16.gmra.mxu3 %vm82_vm0, %v331_v8 }
  0x82   :  { %v116_v10 = vpop.f32.mrf.mxu0  ;;  %v126_v11 = vpop.f32.mrf.mxu1 }
  0x83   :  { %v160_v12 = vmul.f32 %v448_v9, %v116_v10  ;;  %v164_v14 = vmul.f32 %v448_v9, %v126_v11 }
  0x85   :  { %v180_v15 = vadd.f32 %v454_v13, %v160_v12  ;;  %v184_v16 = vadd.f32 %v454_v13, %v164_v14 }
  0x87   :  { %v212_v25 = vmul.f32 0.1, %v180_v15  ;;  %v216_v26 = vmul.f32 0.1, %v184_v16  ;;  %vm196_vm1 = vcmp.gt.f32.partialorder %v180_v15, 0.0  ;;  %vm200_vm2 = vcmp.gt.f32.partialorder %v184_v16, 0.0 }
  0x89   :  { %v136_v17 = vpop.f32.mrf.mxu2  ;;  %v146_v18 = vpop.f32.mrf.mxu3  ;;  %v228_v33 = vsel %vm196_vm1, %v180_v15, %v212_v25  ;;  %v232_v34 = vsel %vm200_vm2, %v184_v16, %v216_v26 }
  0x8a   :  { %v118_v19 = vpop.f32.mrf.mxu0  ;;  %v128_v20 = vpop.f32.mrf.mxu1  ;;  %v168_v23 = vmul.f32 %v448_v9, %v136_v17  ;;  %v172_v24 = vmul.f32 %v448_v9, %v146_v18 }
  0x8b   :  { %v161_v21 = vmul.f32 %v448_v9, %v118_v19  ;;  %v165_v22 = vmul.f32 %v448_v9, %v128_v20 }
  0x8c   :  { %v188_v31 = vadd.f32 %v454_v13, %v168_v23  ;;  %v192_v32 = vadd.f32 %v454_v13, %v172_v24 }
  0x8d   :  { %v181_v27 = vadd.f32 %v454_v13, %v161_v21  ;;  %v185_v28 = vadd.f32 %v454_v13, %v165_v22 }
  0x8e   :  { %v220_v45 = vmul.f32 0.1, %v188_v31  ;;  %v224_v46 = vmul.f32 0.1, %v192_v32  ;;  %vm204_vm5 = vcmp.gt.f32.partialorder %v188_v31, 0.0  ;;  %vm208_vm6 = vcmp.gt.f32.partialorder %v192_v32, 0.0 }
  0x8f   :  { %vm197_vm3 = vcmp.gt.f32.partialorder %v181_v27, 0.0  ;;  %v213_v29 = vmul.f32 0.1, %v181_v27  ;;  %vm201_vm4 = vcmp.gt.f32.partialorder %v185_v28, 0.0  ;;  %v217_v30 = vmul.f32 0.1, %v185_v28 }
  0x90   :  { %v236_v53 = vsel %vm204_vm5, %v188_v31, %v220_v45  ;;  %v240_v54 = vsel %vm208_vm6, %v192_v32, %v224_v46 }
  0x91   :  { %v229_v35 = vsel %vm197_vm3, %v181_v27, %v213_v29  ;;  %v233_v36 = vsel %vm201_vm4, %v185_v28, %v217_v30  ;;  %v138_v37 = vpop.f32.mrf.mxu2  ;;  %v148_v38 = vpop.f32.mrf.mxu3 }
  0x92   :  { %v336_v39 = vpack.c.bf16 %v229_v35, %v228_v33  ;;  %v346_v40 = vpack.c.bf16 %v233_v36, %v232_v34  ;;  %v169_v41 = vmul.f32 %v448_v9, %v138_v37  ;;  %v173_v42 = vmul.f32 %v448_v9, %v148_v38  ;;  %v121_v43 = vpop.f32.mrf.mxu0  ;;  %v131_v44 = vpop.f32.mrf.mxu1 }
  0x93   :  { %v162_v49 = vmul.f32 %v448_v9, %v121_v43  ;;  %v166_v50 = vmul.f32 %v448_v9, %v131_v44 }
  0x94   :  { %337 = vst [vmem:[%s515_s4] sm:$0xff] %v336_v39   ;;  %v189_v47 = vadd.f32 %v454_v13, %v169_v41  ;;  %v193_v48 = vadd.f32 %v454_v13, %v173_v42 }
  0x95   :  { %374 = vst [vmem:[%s515_s4 + $0x10] sm:$0xff] %v346_v40   ;;  %v182_v59 = vadd.f32 %v454_v13, %v162_v49  ;;  %v186_v60 = vadd.f32 %v454_v13, %v166_v50 }
  0x96   :  { %vm205_vm7 = vcmp.gt.f32.partialorder %v189_v47, 0.0  ;;  %v221_v51 = vmul.f32 0.1, %v189_v47  ;;  %vm209_vm8 = vcmp.gt.f32.partialorder %v193_v48, 0.0  ;;  %v225_v52 = vmul.f32 0.1, %v193_v48 }
  0x97   :  { %v214_v5 = vmul.f32 0.1, %v182_v59  ;;  %v218_v6 = vmul.f32 0.1, %v186_v60  ;;  %vm198_vm9 = vcmp.gt.f32.partialorder %v182_v59, 0.0  ;;  %vm202_vm10 = vcmp.gt.f32.partialorder %v186_v60, 0.0 }
  0x98   :  { %v237_v55 = vsel %vm205_vm7, %v189_v47, %v221_v51  ;;  %v241_v56 = vsel %vm209_vm8, %v193_v48, %v225_v52 }
  0x99   :  { %v356_v57 = vpack.c.bf16 %v237_v55, %v236_v53  ;;  %v366_v58 = vpack.c.bf16 %v241_v56, %v240_v54  ;;  %v141_v61 = vpop.f32.mrf.mxu2  ;;  %v151_v62 = vpop.f32.mrf.mxu3  ;;  %v230_v15 = vsel %vm198_vm9, %v182_v59, %v214_v5  ;;  %v234_v16 = vsel %vm202_vm10, %v186_v60, %v218_v6 }
  0x9a   :  { %v123_v63 = vpop.f32.mrf.mxu0  ;;  %v133_v0 = vpop.f32.mrf.mxu1  ;;  %v170_v3 = vmul.f32 %v448_v9, %v141_v61  ;;  %v174_v4 = vmul.f32 %v448_v9, %v151_v62 }
  0x9b   :  { %376 = vst [vmem:[%s515_s4 + $0x20] sm:$0xff] %v356_v57   ;;  %v163_v1 = vmul.f32 %v448_v9, %v123_v63  ;;  %v167_v2 = vmul.f32 %v448_v9, %v133_v0 }
  0x9c   :  { %378 = vst [vmem:[%s515_s4 + $0x30] sm:$0xff] %v366_v58   ;;  %v190_v12 = vadd.f32 %v454_v13, %v170_v3  ;;  %v194_v14 = vadd.f32 %v454_v13, %v174_v4 }
  0x9d   :  { %v183_v7 = vadd.f32 %v454_v13, %v163_v1  ;;  %v187_v8 = vadd.f32 %v454_v13, %v167_v2 }
  0x9e   :  { %v222_v25 = vmul.f32 0.1, %v190_v12  ;;  %v226_v26 = vmul.f32 0.1, %v194_v14  ;;  %vm206_vm13 = vcmp.gt.f32.partialorder %v190_v12, 0.0  ;;  %vm210_vm14 = vcmp.gt.f32.partialorder %v194_v14, 0.0 }
  0x9f   :  { %vm199_vm11 = vcmp.gt.f32.partialorder %v183_v7, 0.0  ;;  %v215_v10 = vmul.f32 0.1, %v183_v7  ;;  %vm203_vm12 = vcmp.gt.f32.partialorder %v187_v8, 0.0  ;;  %v219_v11 = vmul.f32 0.1, %v187_v8 }
  0xa0   :  { %v238_v30 = vsel %vm206_vm13, %v190_v12, %v222_v25  ;;  %v242_v31 = vsel %vm210_vm14, %v194_v14, %v226_v26 }
  0xa1   :  { %v231_v17 = vsel %vm199_vm11, %v183_v7, %v215_v10  ;;  %v235_v18 = vsel %vm203_vm12, %v187_v8, %v219_v11  ;;  %v143_v19 = vpop.f32.mrf.mxu2  ;;  %v153_v20 = vpop.f32.mrf.mxu3 }
  0xa2   :  { %v341_v21 = vpack.c.bf16 %v231_v17, %v230_v15  ;;  %v351_v22 = vpack.c.bf16 %v235_v18, %v234_v16  ;;  %v171_v23 = vmul.f32 %v448_v9, %v143_v19  ;;  %v175_v24 = vmul.f32 %v448_v9, %v153_v20 }
  0xa4   :  { %373 = vst [vmem:[%s515_s4 + $0x8] sm:$0xff] %v341_v21   ;;  %v191_v27 = vadd.f32 %v454_v13, %v171_v23  ;;  %v195_v28 = vadd.f32 %v454_v13, %v175_v24 }
  0xa5   :  { %375 = vst [vmem:[%s515_s4 + $0x18] sm:$0xff] %v351_v22  }
  0xa6   :  { %vm207_vm15 = vcmp.gt.f32.partialorder %v191_v27, 0.0  ;;  %v223_v29 = vmul.f32 0.1, %v191_v27  ;;  %vm211_vm0 = vcmp.gt.f32.partialorder %v195_v28, 0.0  ;;  %v227_v9 = vmul.f32 0.1, %v195_v28 }
  0xa8   :  { %v239_v32 = vsel %vm207_vm15, %v191_v27, %v223_v29  ;;  %v243_v33 = vsel %vm211_vm0, %v195_v28, %v227_v9 }
  0xa9   :  { %v361_v34 = vpack.c.bf16 %v239_v32, %v238_v30  ;;  %v371_v35 = vpack.c.bf16 %v243_v33, %v242_v31 }
  0xab   :  { %377 = vst [vmem:[%s515_s4 + $0x28] sm:$0xff] %v361_v34  }
  0xac   :  { %379 = vst [vmem:[%s515_s4 + $0x38] sm:$0xff] %v371_v35  }

// kernel: darknet_forward.14
= control target key start
LH: loop header
LB: loop body
LE: loop exit
PB: predicated region body
PF: predicated region fallthrough
CT: control target
= control target key end

     0   :  { %vm112_vm0 = vcmask 130048   ;;  %s375_s1 = inlined_call_operand.vmem [shape: bf16[144,128], index: 1, kind: input, shape index: {}]   ;;  %s376_s0 = inlined_call_operand.vmem [shape: bf16[32,144], index: 0, kind: input, shape index: {}]   ;;  %s377_s2 = inlined_call_operand.vmem [shape: f32[1,128], index: 2, kind: input, shape index: {}]   ;;  %s378_s3 = inlined_call_operand.vmem [shape: f32[1,128], index: 3, kind: input, shape index: {}]   ;;  %s379_s4 = inlined_call_operand.vmem [shape: bf16[32,128], index: 4, kind: output, shape index: {}]  }
   0x1   :  { %v262_v0 = vld [vmem:[%s375_s1 + $0x38] sm:$0xff]  ;;  %v263_v1 = vld [vmem:[%s375_s1 + $0x40] sm:$0xff]  ;;  %v261_v3 = vld [vmem:[%s375_s1 + $0x30] sm:$0xff] }
   0x2   :  { %v251_v2 = vld [vmem:[%s376_s0 + $0x4] sm:$0xf]  ;;  %119 = vmatpush.bf16.msra.mxu0 %v262_v0  ;;  %275 = vmatpush.bf16.msra.mxu2 %v262_v0  ;;  %v201_v4 = vld [vmem:[%s376_s0 + $0x8] sm:$0xf0]  ;;  %v258_v8 = vld [vmem:[%s375_s1 + $0x18] sm:$0xff] }
   0x3   :  { %145 = vmatpush.bf16.msra.mxu1 %v263_v1  ;;  %v204_v5 = vor.u32 %v251_v2, %v201_v4  ;;  %v260_v6 = vld [vmem:[%s375_s1 + $0x28] sm:$0xff]  ;;  %v259_v7 = vld [vmem:[%s375_s1 + $0x20] sm:$0xff]  ;;  %v253_v9 = vld [vmem:[%s376_s0 + $0x14] sm:$0xf] }
   0x4   :  { %v209_v10 = vld [vmem:[%s376_s0 + $0x18] sm:$0xf0]  ;;  %v257_v11 = vld [vmem:[%s375_s1 + $0x10] sm:$0xff]  ;;  %v256_v13 = vld [vmem:[%s375_s1 + $0x8] sm:$0xff] }
   0x5   :  { %v212_v12 = vor.u32 %v253_v9, %v209_v10  ;;  %v255_v14 = vld [vmem:[%s375_s1] sm:$0xff]  ;;  %v252_v16 = vld [vmem:[%s376_s0 + $0x4] sm:$0xf0]  ;;  %v207_v17 = vld [vmem:[%s376_s0 + $0x10] sm:$0xf] }
   0x6   :  { %120 = vmatpush.bf16.msra.mxu0 %v261_v3  ;;  %276 = vmatpush.bf16.msra.mxu2 %v261_v3  ;;  %v199_v15 = vld [vmem:[%s376_s0] sm:$0xf]  ;;  %v254_v18 = vld [vmem:[%s376_s0 + $0x14] sm:$0xf0] }
   0x7   :  { %249 = vmatmul.msk.bf16.vlgmr.msra.gmra.mxu1 %vm112_vm0, %v204_v5  ;;  %v200_v19 = vor.u32 %v252_v16, %v199_v15  ;;  %v208_v20 = vor.u32 %v254_v18, %v207_v17  ;;  %v283_v25 = vld [vmem:[%s377_s2] ss:$0 sm:$0xff] }
   0x8   :  { %v284_v28 = vld [vmem:[%s378_s3] ss:$0 sm:$0xff] }
   0xa   :  { %121 = vmatpush.bf16.msra.mxu0 %v260_v6  ;;  %277 = vmatpush.bf16.msra.mxu2 %v260_v6 }
   0xe   :  { %122 = vmatpush.bf16.msra.mxu0 %v259_v7  ;;  %278 = vmatpush.bf16.msra.mxu2 %v259_v7 }
  0x12   :  { %123 = vmatpush.bf16.msra.mxu0 %v258_v8  ;;  %279 = vmatpush.bf16.msra.mxu2 %v258_v8 }
  0x16   :  { %124 = vmatpush.bf16.msra.mxu0 %v257_v11  ;;  %280 = vmatpush.bf16.msra.mxu2 %v257_v11 }
  0x17   :  { %250 = vmatmul.msk.bf16.gmra.mxu1 %vm112_vm0, %v212_v12 }
  0x1a   :  { %125 = vmatpush.bf16.msra.mxu0 %v256_v13  ;;  %281 = vmatpush.bf16.msra.mxu2 %v256_v13 }
  0x1e   :  { %126 = vmatpush.bf16.msra.mxu0 %v255_v14  ;;  %282 = vmatpush.bf16.msra.mxu2 %v255_v14 }
  0x21   :  { %127 = vmatmul.bf16.vlgmr.msra.gmra.mxu0 %v200_v19  ;;  %132 = vmatmul.bf16.vlgmr.msra.gmra.mxu2 %v208_v20 }
  0x84   :  { %v147_v21 = vpop.f32.mrf.mxu1 }
  0x8c   :  { %v149_v22 = vpop.f32.mrf.mxu1 }
  0x94   :  { %v152_v26 = vpop.f32.mrf.mxu1 }
  0x9c   :  { %v154_v38 = vpop.f32.mrf.mxu1 }
  0x9e   :  { %v128_v23 = vpop.f32.mrf.mxu0 }
  0x9f   :  { %v148_v24 = vadd.f32 %v147_v21, %v128_v23 }
  0xa1   :  { %v161_v27 = vmul.f32 %v283_v25, %v148_v24 }
  0xa3   :  { %v169_v32 = vadd.f32 %v284_v28, %v161_v27 }
  0xa4   :  { %v133_v29 = vpop.f32.mrf.mxu2 }
  0xa5   :  { %v153_v30 = vadd.f32 %v152_v26, %v133_v29  ;;  %v177_v36 = vmul.f32 0.1, %v169_v32  ;;  %vm173_vm1 = vcmp.gt.f32.partialorder %v169_v32, 0.0 }
  0xa6   :  { %v130_v31 = vpop.f32.mrf.mxu0 }
  0xa7   :  { %v150_v33 = vadd.f32 %v149_v22, %v130_v31  ;;  %v163_v34 = vmul.f32 %v283_v25, %v153_v30  ;;  %v181_v43 = vsel %vm173_vm1, %v169_v32, %v177_v36 }
  0xa9   :  { %v162_v35 = vmul.f32 %v283_v25, %v150_v33  ;;  %v171_v40 = vadd.f32 %v284_v28, %v163_v34 }
  0xab   :  { %v170_v37 = vadd.f32 %v284_v28, %v162_v35  ;;  %v179_v47 = vmul.f32 0.1, %v171_v40  ;;  %vm175_vm3 = vcmp.gt.f32.partialorder %v171_v40, 0.0 }
  0xac   :  { %v135_v39 = vpop.f32.mrf.mxu2 }
  0xad   :  { %vm174_vm2 = vcmp.gt.f32.partialorder %v170_v37, 0.0  ;;  %v178_v41 = vmul.f32 0.1, %v170_v37  ;;  %v155_v42 = vadd.f32 %v154_v38, %v135_v39  ;;  %v183_v50 = vsel %vm175_vm3, %v171_v40, %v179_v47 }
  0xaf   :  { %v182_v44 = vsel %vm174_vm2, %v170_v37, %v178_v41  ;;  %v164_v45 = vmul.f32 %v283_v25, %v155_v42 }
  0xb0   :  { %v267_v46 = vpack.c.bf16 %v182_v44, %v181_v43 }
  0xb1   :  { %v172_v48 = vadd.f32 %v284_v28, %v164_v45 }
  0xb2   :  { %268 = vst [vmem:[%s379_s4] sm:$0xff] %v267_v46  }
  0xb3   :  { %vm176_vm4 = vcmp.gt.f32.partialorder %v172_v48, 0.0  ;;  %v180_v49 = vmul.f32 0.1, %v172_v48 }
  0xb5   :  { %v184_v51 = vsel %vm176_vm4, %v172_v48, %v180_v49 }
  0xb6   :  { %v272_v52 = vpack.c.bf16 %v184_v51, %v183_v50 }
  0xb8   :  { %274 = vst [vmem:[%s379_s4 + $0x8] sm:$0xff] %v272_v52  }

// kernel: darknet_forward.15
= control target key start
LH: loop header
LB: loop body
LE: loop exit
PB: predicated region body
PF: predicated region fallthrough
CT: control target
= control target key end

     0   :  { %vm48_vm0 = vcmask 261120   ;;  %s188_s1 = inlined_call_operand.vmem [shape: bf16[32,128], index: 1, kind: input, shape index: {}]   ;;  %s189_s2 = inlined_call_operand.vmem [shape: f32[1,128], index: 2, kind: input, shape index: {}]   ;;  %s190_s3 = inlined_call_operand.vmem [shape: f32[1,128], index: 3, kind: input, shape index: {}]   ;;  %s191_s0 = inlined_call_operand.vmem [shape: bf16[32,32], index: 0, kind: input, shape index: {}]   ;;  %s192_s4 = inlined_call_operand.vmem [shape: bf16[32,128], index: 4, kind: output, shape index: {}]  }
   0x1   :  { %v123_v0 = vld [vmem:[%s188_s1 + $0x8] sm:$0xff]  ;;  %v122_v1 = vld [vmem:[%s188_s1] sm:$0xff] }
   0x2   :  { %61 = vmatpush.bf16.msra.mxu0 %v123_v0  ;;  %135 = vmatpush.bf16.msra.mxu1 %v123_v0  ;;  %v120_v2 = vld [vmem:[%s191_s0] sm:$0xff]  ;;  %v121_v3 = vld [vmem:[%s191_s0 + $0x8] sm:$0xff] }
   0x3   :  { %v137_v6 = vld [vmem:[%s189_s2] ss:$0 sm:$0xff] }
   0x4   :  { %v138_v8 = vld [vmem:[%s190_s3] ss:$0 sm:$0xff] }
   0x6   :  { %62 = vmatpush.bf16.msra.mxu0 %v122_v1  ;;  %136 = vmatpush.bf16.msra.mxu1 %v122_v1 }
   0x9   :  { %118 = vmatmul.msk.bf16.vlgmr.msra.gmra.mxu0 %vm48_vm0, %v120_v2  ;;  %119 = vmatmul.msk.bf16.vlgmr.msra.gmra.mxu1 %vm48_vm0, %v121_v3 }
  0x86   :  { %v64_v4 = vpop.f32.mrf.mxu0  ;;  %v69_v5 = vpop.f32.mrf.mxu1 }
  0x87   :  { %v78_v7 = vmul.f32 %v137_v6, %v64_v4  ;;  %v80_v9 = vmul.f32 %v137_v6, %v69_v5 }
  0x89   :  { %v86_v14 = vadd.f32 %v138_v8, %v78_v7  ;;  %v88_v15 = vadd.f32 %v138_v8, %v80_v9 }
  0x8e   :  { %v66_v10 = vpop.f32.mrf.mxu0  ;;  %v71_v11 = vpop.f32.mrf.mxu1 }
  0x8f   :  { %v79_v12 = vmul.f32 %v137_v6, %v66_v10  ;;  %v81_v13 = vmul.f32 %v137_v6, %v71_v11 }
  0x91   :  { %v87_v16 = vadd.f32 %v138_v8, %v79_v12  ;;  %v89_v17 = vadd.f32 %v138_v8, %v81_v13 }
  0x93   :  { %v127_v18 = vpack.c.bf16 %v87_v16, %v86_v14  ;;  %v132_v19 = vpack.c.bf16 %v89_v17, %v88_v15 }
  0x95   :  { %128 = vst [vmem:[%s192_s4] sm:$0xff] %v127_v18  }
  0x96   :  { %134 = vst [vmem:[%s192_s4 + $0x8] sm:$0xff] %v132_v19  }

// kernel: darknet_forward.16
= control target key start
LH: loop header
LB: loop body
LE: loop exit
PB: predicated region body
PF: predicated region fallthrough
CT: control target
= control target key end

     0   :  { %v13_v0 = vlaneseq  ;;  %v173_v2 = vmov 9.0   ;;  %v174_v7 = vmov 4.0   ;;  %v175_v10 = vmov 16.0   ;;  %s270_s0 = inlined_call_operand.vmem [shape: bf16[16,128], index: 0, kind: input, shape index: {}]   ;;  %s271_s1 = inlined_call_operand.vmem [shape: f32[16,128], index: 1, kind: output, shape index: {}]  }
   0x1   :  { %v148_v1 = vld [vmem:[%s270_s0] sm:$0xff]   ;;  %157 = vrcp.f32 %v173_v2  ;;  %v176_v12 = vmov 3.0  }
   0x2   :  { %v149_v3 = vunpack.c.l.bf16 %v148_v1  ;;  %v150_v4 = vunpack.c.h.bf16 %v148_v1  ;;  %v14_v5 = vshrl.u32 %v13_v0, 7  ;;  %v17_v6 = vand.u32 127, %v13_v0 }
   0x3   :  { %159 = vrcp.f32 %v174_v7 }
   0x4   :  { %v15_v8 = vadd.s32 8, %v14_v5  ;;  %v18_v9 = vmul.u32 128, %v14_v5  ;;  %161 = vrcp.f32 %v175_v10  ;;  %v125_v11 = vmul.f32 1.442695, %v149_v3 }
   0x5   :  { %163 = vrcp.f32 %v176_v12  ;;  %v127_v13 = vmul.f32 1.442695, %v150_v4 }
   0x6   :  { %v19_v14 = vmul.u32 128, %v15_v8  ;;  %165 = vpow2.f32 %v125_v11  ;;  %v23_v16 = vadd.s32 %v18_v9, %v17_v6 }
   0x7   :  { %v158_v15 = vpop.eup %157  ;;  %167 = vpow2.f32 %v127_v13 }
   0x8   :  { %v28_v17 = vmul.f32 9.0, %v158_v15  ;;  %v24_v19 = vadd.s32 %v19_v14, %v17_v6  ;;  %v25_v26 = vcvt.s32.f32 %v23_v16  ;;  %vm32_vm0 = vweird.f32 %v158_v15 }
   0x9   :  { %v160_v18 = vpop.eup %159 }
   0xa   :  { %v162_v20 = vpop.eup %161  ;;  %v29_v21 = vsub.f32 1.0, %v28_v17  ;;  %v43_v22 = vmul.f32 4.0, %v160_v18  ;;  %v26_v31 = vcvt.s32.f32 %v24_v19  ;;  %vm47_vm1 = vweird.f32 %v160_v18 }
   0xb   :  { %v164_v23 = vpop.eup %163  ;;  %v66_v24 = vmul.f32 16.0, %v162_v20  ;;  %vm70_vm2 = vweird.f32 %v162_v20 }
   0xc   :  { %v192_v25 = vpop.eup %165  ;;  %v30_v27 = vmul.f32 %v158_v15, %v29_v21  ;;  %v44_v28 = vsub.f32 1.0, %v43_v22  ;;  %v77_v29 = vmul.f32 3.0, %v164_v23  ;;  %vm81_vm3 = vweird.f32 %v164_v23 }
   0xd   :  { %v194_v30 = vpop.eup %167  ;;  %v67_v32 = vsub.f32 1.0, %v66_v24  ;;  %v129_v33 = vadd.f32 1.0, %v192_v25 }
   0xe   :  { %v31_v34 = vadd.f32 %v158_v15, %v30_v27  ;;  %v45_v35 = vmul.f32 %v160_v18, %v44_v28  ;;  %v78_v36 = vsub.f32 1.0, %v77_v29  ;;  %v130_v37 = vadd.f32 1.0, %v194_v30 }
   0xf   :  { %v68_v38 = vmul.f32 %v162_v20, %v67_v32  ;;  %169 = vrcp.f32 %v129_v33  ;;  %v177_v28 = vmov 10.0   ;;  %v178_v32 = vmov 13.0  }
  0x10   :  { %v33_v39 = vsel %vm32_vm0, %v158_v15, %v31_v34  ;;  %v46_v40 = vadd.f32 %v160_v18, %v45_v35  ;;  %v79_v41 = vmul.f32 %v164_v23, %v78_v36  ;;  %171 = vrcp.f32 %v130_v37 }
  0x11   :  { %v34_v42 = vmul.f32 %v33_v39, %v25_v26  ;;  %v35_v43 = vmul.f32 %v33_v39, %v26_v31  ;;  %v69_v44 = vadd.f32 %v162_v20, %v68_v38 }
  0x12   :  { %v48_v45 = vsel %vm47_vm1, %v160_v18, %v46_v40  ;;  %v80_v49 = vadd.f32 %v164_v23, %v79_v41 }
  0x13   :  { %v198_v46 = vfloor.f32 %v34_v42  ;;  %v200_v47 = vfloor.f32 %v35_v43  ;;  %v71_v48 = vsel %vm70_vm2, %v162_v20, %v69_v44 }
  0x14   :  { %v82_v60 = vsel %vm81_vm3, %v164_v23, %v80_v49 }
  0x15   :  { %v38_v50 = vmul.f32 9.0, %v198_v46  ;;  %v39_v51 = vmul.f32 9.0, %v200_v47  ;;  %v49_v52 = vmul.f32 %v48_v45, %v198_v46  ;;  %v50_v53 = vmul.f32 %v48_v45, %v200_v47  ;;  %v170_v56 = vpop.eup %169 }
  0x16   :  { %v72_v54 = vmul.f32 %v71_v48, %v198_v46  ;;  %v73_v55 = vmul.f32 %v71_v48, %v200_v47  ;;  %v172_v61 = vpop.eup %171  ;;  %v133_v7 = vmul.f32 %v170_v56, %v192_v25 }
  0x17   :  { %v208_v57 = vsub.f32 %v25_v26, %v38_v50  ;;  %v51_v58 = vfloor.f32 %v49_v52  ;;  %v52_v59 = vfloor.f32 %v50_v53  ;;  %v210_v62 = vsub.f32 %v26_v31, %v39_v51 }
  0x18   :  { %v74_v63 = vfloor.f32 %v72_v54  ;;  %v75_v0 = vfloor.f32 %v73_v55  ;;  %v134_v10 = vmul.f32 %v172_v61, %v194_v30 }
  0x19   :  { %v53_v1 = vmul.f32 4.0, %v51_v58  ;;  %v54_v2 = vmul.f32 4.0, %v52_v59  ;;  %v57_v3 = vmul.f32 %v51_v58, %v48_v45  ;;  %v58_v4 = vmul.f32 %v52_v59, %v48_v45 }
  0x1a   :  { %v83_v5 = vmul.f32 %v82_v60, %v74_v63  ;;  %v84_v6 = vmul.f32 %v82_v60, %v75_v0  ;;  %vm103_vm4 = vcmp.eq.f32.partialorder %v208_v57, 0.0  ;;  %vm104_vm5 = vcmp.eq.f32.partialorder %v210_v62, 0.0 }
  0x1b   :  { %v59_v8 = vfloor.f32 %v57_v3  ;;  %v60_v9 = vfloor.f32 %v58_v4  ;;  %v55_v11 = vsub.f32 %v198_v46, %v53_v1  ;;  %v56_v14 = vsub.f32 %v200_v47, %v54_v2 }
  0x1c   :  { %v85_v12 = vfloor.f32 %v83_v5  ;;  %v86_v13 = vfloor.f32 %v84_v6  ;;  %vm105_vm6 = vcmp.eq.f32.partialorder %v208_v57, 1.0  ;;  %vm106_vm7 = vcmp.eq.f32.partialorder %v210_v62, 1.0 }
  0x1d   :  { %v61_v15 = vmul.f32 4.0, %v59_v8  ;;  %v62_v16 = vmul.f32 4.0, %v60_v9  ;;  %vm113_vm8 = vcmp.eq.f32.partialorder %v208_v57, 2.0  ;;  %vm111_vm9 = vcmp.lt.f32.partialorder %v208_v57, 2.0 }
  0x1e   :  { %v87_v17 = vmul.f32 3.0, %v85_v12  ;;  %v88_v18 = vmul.f32 3.0, %v86_v13  ;;  %vm115_vm10 = vcmp.eq.f32.partialorder %v208_v57, 3.0  ;;  %vm114_vm11 = vcmp.eq.f32.partialorder %v210_v62, 2.0 }
  0x1f   :  { %v63_v19 = vsub.f32 %v51_v58, %v61_v15  ;;  %v64_v20 = vsub.f32 %v52_v59, %v62_v16  ;;  %vm116_vm12 = vcmp.eq.f32.partialorder %v210_v62, 3.0  ;;  %vm229_vm13 = vmor %vm113_vm8, %vm115_vm10  ;;  %vm112_vm14 = vcmp.lt.f32.partialorder %v210_v62, 2.0 }
  0x20   :  { %v89_v21 = vsub.f32 %v74_v63, %v87_v17  ;;  %v90_v22 = vsub.f32 %v75_v0, %v88_v18  ;;  %v135_v27 = vsel %vm229_vm13, %v192_v25, %v133_v7  ;;  %vm241_vm3 = vmor %vm114_vm11, %vm116_vm12 }
  0x21   :  { %v107_v24 = vsel %vm105_vm6, %v63_v19, 0.0  ;;  %v108_v26 = vsel %vm106_vm7, %v64_v20, 0.0  ;;  %v136_v45 = vsel %vm241_vm3, %v194_v30, %v134_v10 }
  0x22   :  { %vm91_vm15 = vcmp.eq.f32.partialorder %v89_v21, 1.0  ;;  %vm92_vm0 = vcmp.eq.f32.partialorder %v90_v22, 1.0  ;;  %vm97_vm1 = vcmp.eq.f32.partialorder %v89_v21, 2.0  ;;  %vm98_vm2 = vcmp.eq.f32.partialorder %v90_v22, 2.0 }
  0x23   :  { %v93_v29 = vsel %vm91_vm15, 16.0, %v177_v28  ;;  %v94_v31 = vsel %vm92_vm0, 16.0, %v177_v28  ;;  %v95_v33 = vsel %vm91_vm15, 30.0, %v178_v32  ;;  %v96_v34 = vsel %vm92_vm0, 30.0, %v178_v32 }
  0x24   :  { %v99_v36 = vsel %vm97_vm1, 33.0, %v93_v29  ;;  %v100_v25 = vsel %vm98_vm2, 33.0, %v94_v31  ;;  %v101_v37 = vsel %vm97_vm1, 23.0, %v95_v33  ;;  %v102_v38 = vsel %vm98_vm2, 23.0, %v96_v34 }
  0x25   :  { %v109_v39 = vsel %vm103_vm4, %v55_v11, %v107_v24  ;;  %v110_v40 = vsel %vm104_vm5, %v56_v14, %v108_v26  ;;  %v117_v41 = vsel %vm115_vm10, %v101_v37, 1.0  ;;  %v118_v42 = vsel %vm116_vm12, %v102_v38, 1.0 }
  0x26   :  { %v119_v43 = vsel %vm113_vm8, %v99_v36, %v117_v41  ;;  %v120_v44 = vsel %vm114_vm11, %v100_v25, %v118_v42  ;;  %v137_v46 = vadd.f32 %v135_v27, %v109_v39  ;;  %v138_v49 = vadd.f32 %v136_v45, %v110_v40 }
  0x27   :  { %v121_v47 = vsel %vm111_vm9, 4.0, %v119_v43  ;;  %v122_v48 = vsel %vm112_vm14, 4.0, %v120_v44 }
  0x28   :  { %v139_v50 = vmul.f32 %v137_v46, %v121_v47  ;;  %v140_v51 = vmul.f32 %v138_v49, %v122_v48 }
  0x2a   :  { %141 = vst [vmem:[%s271_s1] sm:$0xff] %v139_v50 }
  0x2b   :  { %142 = vst [vmem:[%s271_s1 + $0x8] sm:$0xff] %v140_v51 }

// kernel: darknet_forward.18
= control target key start
LH: loop header
LB: loop body
LE: loop exit
PB: predicated region body
PF: predicated region fallthrough
CT: control target
= control target key end

     0   :  { %vm482_vm0 = vcmask 785408   ;;  %s2546_s1 = inlined_call_operand.vmem [shape: bf16[224,128], index: 1, kind: input, shape index: {}]   ;;  %s2547_s0 = inlined_call_operand.vmem [shape: bf16[512,224], index: 0, kind: input, shape index: {}]   ;;  %s2548_s2 = inlined_call_operand.vmem [shape: f32[1,128], index: 2, kind: input, shape index: {}]   ;;  %s2549_s3 = inlined_call_operand.vmem [shape: f32[1,128], index: 3, kind: input, shape index: {}]   ;;  %s2550_s4 = inlined_call_operand.vmem [shape: bf16[512,128], index: 4, kind: output, shape index: {}]  }
   0x1   :  { %v1600_v0 = vld [vmem:[%s2546_s1 + $0x38] sm:$0xff]  ;;  %v1606_v1 = vld [vmem:[%s2546_s1 + $0x68] sm:$0xff]  ;;  %v1599_v2 = vld [vmem:[%s2546_s1 + $0x30] sm:$0xff] }
   0x2   :  { %579 = vmatpush.bf16.msra.mxu0 %v1600_v0  ;;  %1798 = vmatpush.bf16.msra.mxu2 %v1600_v0  ;;  %v1605_v3 = vld [vmem:[%s2546_s1 + $0x60] sm:$0xff]  ;;  %v1598_v4 = vld [vmem:[%s2546_s1 + $0x28] sm:$0xff]  ;;  %v1604_v5 = vld [vmem:[%s2546_s1 + $0x58] sm:$0xff] }
   0x3   :  { %750 = vmatpush.bf16.msra.mxu1 %v1606_v1  ;;  %1806 = vmatpush.bf16.msra.mxu3 %v1606_v1  ;;  %v1597_v6 = vld [vmem:[%s2546_s1 + $0x20] sm:$0xff]  ;;  %v1603_v7 = vld [vmem:[%s2546_s1 + $0x50] sm:$0xff]  ;;  %v1596_v8 = vld [vmem:[%s2546_s1 + $0x18] sm:$0xff] }
   0x4   :  { %v1602_v9 = vld [vmem:[%s2546_s1 + $0x48] sm:$0xff]  ;;  %v1595_v10 = vld [vmem:[%s2546_s1 + $0x10] sm:$0xff]  ;;  %v1601_v11 = vld [vmem:[%s2546_s1 + $0x40] sm:$0xff] }
   0x5   :  { %v1529_v12 = vld [vmem:[%s2547_s0 + $0x4] sm:$0xf]  ;;  %v1189_v13 = vld [vmem:[%s2547_s0 + $0x8] sm:$0xf0]  ;;  %v1563_v14 = vld [vmem:[%s2547_s0 + $0x114] sm:$0xf] }
   0x6   :  { %580 = vmatpush.bf16.msra.mxu0 %v1599_v2  ;;  %1799 = vmatpush.bf16.msra.mxu2 %v1599_v2  ;;  %v1325_v15 = vld [vmem:[%s2547_s0 + $0x118] sm:$0xf0]  ;;  %v1192_v16 = vor.u32 %v1529_v12, %v1189_v13  ;;  %v1594_v17 = vld [vmem:[%s2546_s1 + $0x8] sm:$0xff]  ;;  %v1593_v19 = vld [vmem:[%s2546_s1] sm:$0xff] }
   0x7   :  { %751 = vmatpush.bf16.msra.mxu1 %v1605_v3  ;;  %1807 = vmatpush.bf16.msra.mxu3 %v1605_v3  ;;  %v1328_v18 = vor.u32 %v1563_v14, %v1325_v15  ;;  %v1187_v20 = vld [vmem:[%s2547_s0] sm:$0xf]  ;;  %v1530_v21 = vld [vmem:[%s2547_s0 + $0x4] sm:$0xf0]  ;;  %v1531_v26 = vld [vmem:[%s2547_s0 + $0x14] sm:$0xf] }
   0x8   :  { %v1315_v22 = vld [vmem:[%s2547_s0 + $0x100] sm:$0xf]  ;;  %v1562_v23 = vld [vmem:[%s2547_s0 + $0x104] sm:$0xf0]  ;;  %v1188_v24 = vor.u32 %v1530_v21, %v1187_v20  ;;  %v1197_v27 = vld [vmem:[%s2547_s0 + $0x18] sm:$0xf0] }
   0x9   :  { %v1316_v25 = vor.u32 %v1562_v23, %v1315_v22  ;;  %v1565_v28 = vld [vmem:[%s2547_s0 + $0x124] sm:$0xf]  ;;  %v1333_v29 = vld [vmem:[%s2547_s0 + $0x128] sm:$0xf0]  ;;  %v1200_v30 = vor.u32 %v1531_v26, %v1197_v27  ;;  %v1195_v32 = vld [vmem:[%s2547_s0 + $0x10] sm:$0xf] }
   0xa   :  { %581 = vmatpush.bf16.msra.mxu0 %v1598_v4  ;;  %1800 = vmatpush.bf16.msra.mxu2 %v1598_v4  ;;  %v1336_v31 = vor.u32 %v1565_v28, %v1333_v29  ;;  %v1532_v33 = vld [vmem:[%s2547_s0 + $0x14] sm:$0xf0]  ;;  %v1323_v34 = vld [vmem:[%s2547_s0 + $0x110] sm:$0xf]  ;;  %v1533_v38 = vld [vmem:[%s2547_s0 + $0x24] sm:$0xf] }
   0xb   :  { %752 = vmatpush.bf16.msra.mxu1 %v1604_v5  ;;  %1808 = vmatpush.bf16.msra.mxu3 %v1604_v5  ;;  %v1564_v35 = vld [vmem:[%s2547_s0 + $0x114] sm:$0xf0]  ;;  %v1196_v36 = vor.u32 %v1532_v33, %v1195_v32  ;;  %v1205_v39 = vld [vmem:[%s2547_s0 + $0x28] sm:$0xf0]  ;;  %v1567_v40 = vld [vmem:[%s2547_s0 + $0x134] sm:$0xf] }
   0xc   :  { %v1324_v37 = vor.u32 %v1564_v35, %v1323_v34  ;;  %v1341_v41 = vld [vmem:[%s2547_s0 + $0x138] sm:$0xf0]  ;;  %v1208_v42 = vor.u32 %v1533_v38, %v1205_v39  ;;  %v1203_v44 = vld [vmem:[%s2547_s0 + $0x20] sm:$0xf]  ;;  %v1534_v45 = vld [vmem:[%s2547_s0 + $0x24] sm:$0xf0] }
   0xd   :  { %v1344_v43 = vor.u32 %v1567_v40, %v1341_v41  ;;  %v1331_v46 = vld [vmem:[%s2547_s0 + $0x120] sm:$0xf]  ;;  %v1566_v47 = vld [vmem:[%s2547_s0 + $0x124] sm:$0xf0]  ;;  %v1204_v48 = vor.u32 %v1534_v45, %v1203_v44  ;;  %v1535_v50 = vld [vmem:[%s2547_s0 + $0x34] sm:$0xf] }
   0xe   :  { %582 = vmatpush.bf16.msra.mxu0 %v1597_v6  ;;  %1801 = vmatpush.bf16.msra.mxu2 %v1597_v6  ;;  %v1332_v49 = vor.u32 %v1566_v47, %v1331_v46  ;;  %v1213_v51 = vld [vmem:[%s2547_s0 + $0x38] sm:$0xf0]  ;;  %v1569_v52 = vld [vmem:[%s2547_s0 + $0x144] sm:$0xf]  ;;  %v1349_v53 = vld [vmem:[%s2547_s0 + $0x148] sm:$0xf0] }
   0xf   :  { %753 = vmatpush.bf16.msra.mxu1 %v1603_v7  ;;  %1809 = vmatpush.bf16.msra.mxu3 %v1603_v7  ;;  %v1216_v54 = vor.u32 %v1535_v50, %v1213_v51  ;;  %v1352_v55 = vor.u32 %v1569_v52, %v1349_v53  ;;  %v1211_v56 = vld [vmem:[%s2547_s0 + $0x30] sm:$0xf]  ;;  %v1536_v57 = vld [vmem:[%s2547_s0 + $0x34] sm:$0xf0]  ;;  %v1537_v62 = vld [vmem:[%s2547_s0 + $0x44] sm:$0xf] }
  0x10   :  { %v1339_v58 = vld [vmem:[%s2547_s0 + $0x130] sm:$0xf]  ;;  %v1568_v59 = vld [vmem:[%s2547_s0 + $0x134] sm:$0xf0]  ;;  %v1212_v60 = vor.u32 %v1536_v57, %v1211_v56  ;;  %v1221_v63 = vld [vmem:[%s2547_s0 + $0x48] sm:$0xf0] }
  0x11   :  { %v1340_v61 = vor.u32 %v1568_v59, %v1339_v58  ;;  %v1571_v0 = vld [vmem:[%s2547_s0 + $0x154] sm:$0xf]  ;;  %v1357_v1 = vld [vmem:[%s2547_s0 + $0x158] sm:$0xf0]  ;;  %v1224_v2 = vor.u32 %v1537_v62, %v1221_v63  ;;  %v1219_v4 = vld [vmem:[%s2547_s0 + $0x40] sm:$0xf] }
  0x12   :  { %583 = vmatpush.bf16.msra.mxu0 %v1596_v8  ;;  %1802 = vmatpush.bf16.msra.mxu2 %v1596_v8  ;;  %v1360_v3 = vor.u32 %v1571_v0, %v1357_v1  ;;  %v1538_v5 = vld [vmem:[%s2547_s0 + $0x44] sm:$0xf0]  ;;  %v1347_v6 = vld [vmem:[%s2547_s0 + $0x140] sm:$0xf]  ;;  %v1573_v12 = vld [vmem:[%s2547_s0 + $0x164] sm:$0xf] }
  0x13   :  { %754 = vmatpush.bf16.msra.mxu1 %v1602_v9  ;;  %1810 = vmatpush.bf16.msra.mxu3 %v1602_v9  ;;  %v1570_v7 = vld [vmem:[%s2547_s0 + $0x144] sm:$0xf0]  ;;  %v1220_v8 = vor.u32 %v1538_v5, %v1219_v4  ;;  %v1365_v13 = vld [vmem:[%s2547_s0 + $0x168] sm:$0xf0]  ;;  %v1541_v22 = vld [vmem:[%s2547_s0 + $0x64] sm:$0xf] }
  0x14   :  { %v1348_v9 = vor.u32 %v1570_v7, %v1347_v6  ;;  %v1368_v15 = vor.u32 %v1573_v12, %v1365_v13  ;;  %v1237_v23 = vld [vmem:[%s2547_s0 + $0x68] sm:$0xf0]  ;;  %v1235_v28 = vld [vmem:[%s2547_s0 + $0x60] sm:$0xf]  ;;  %v1542_v29 = vld [vmem:[%s2547_s0 + $0x64] sm:$0xf0] }
  0x15   :  { %v1240_v26 = vor.u32 %v1541_v22, %v1237_v23  ;;  %v1236_v32 = vor.u32 %v1542_v29, %v1235_v28  ;;  %v1543_v34 = vld [vmem:[%s2547_s0 + $0x74] sm:$0xf]  ;;  %v1245_v35 = vld [vmem:[%s2547_s0 + $0x78] sm:$0xf0]  ;;  %v1243_v40 = vld [vmem:[%s2547_s0 + $0x70] sm:$0xf] }
  0x16   :  { %584 = vmatpush.bf16.msra.mxu0 %v1595_v10  ;;  %1803 = vmatpush.bf16.msra.mxu2 %v1595_v10  ;;  %v1539_v10 = vld [vmem:[%s2547_s0 + $0x54] sm:$0xf]  ;;  %v1248_v38 = vor.u32 %v1543_v34, %v1245_v35  ;;  %v1544_v41 = vld [vmem:[%s2547_s0 + $0x74] sm:$0xf0]  ;;  %v1545_v46 = vld [vmem:[%s2547_s0 + $0x84] sm:$0xf] }
  0x17   :  { %755 = vmatpush.bf16.msra.mxu1 %v1601_v11  ;;  %1811 = vmatpush.bf16.msra.mxu3 %v1601_v11  ;;  %v1229_v11 = vld [vmem:[%s2547_s0 + $0x58] sm:$0xf0]  ;;  %v1244_v44 = vor.u32 %v1544_v41, %v1243_v40  ;;  %v1253_v47 = vld [vmem:[%s2547_s0 + $0x88] sm:$0xf0]  ;;  %v1251_v53 = vld [vmem:[%s2547_s0 + $0x80] sm:$0xf] }
  0x18   :  { %v1232_v14 = vor.u32 %v1539_v10, %v1229_v11  ;;  %v1256_v50 = vor.u32 %v1545_v46, %v1253_v47  ;;  %v1578_v56 = vld [vmem:[%s2547_s0 + $0x184] sm:$0xf0]  ;;  %v2118_v63 = vld [vmem:[%s2548_s2] ss:$0 sm:$0xff]  ;;  %v1547_v0 = vld [vmem:[%s2547_s0 + $0x94] sm:$0xf] }
  0x19   :  { %v1261_v1 = vld [vmem:[%s2547_s0 + $0x98] sm:$0xf0]  ;;  %v1549_v28 = vld [vmem:[%s2547_s0 + $0xa4] sm:$0xf]  ;;  %v1269_v29 = vld [vmem:[%s2547_s0 + $0xa8] sm:$0xf0] }
  0x1a   :  { %1497 = vmatmul.msk.bf16.vlgmr.msra.gmra.mxu1 %vm482_vm0, %v1192_v16  ;;  %585 = vmatpush.bf16.msra.mxu0 %v1594_v17  ;;  %v1227_v16 = vld [vmem:[%s2547_s0 + $0x50] sm:$0xf]  ;;  %v1264_v6 = vor.u32 %v1547_v0, %v1261_v1  ;;  %v1272_v34 = vor.u32 %v1549_v28, %v1269_v29  ;;  %v1395_v46 = vld [vmem:[%s2547_s0 + $0x1a0] sm:$0xf]  ;;  %v1582_v47 = vld [vmem:[%s2547_s0 + $0x1a4] sm:$0xf0] }
  0x1b   :  { %1804 = vmatpush.bf16.msra.mxu2 %v1594_v17  ;;  %1514 = vmatmul.msk.bf16.vlgmr.msra.gmra.mxu3 %vm482_vm0, %v1328_v18  ;;  %v1540_v17 = vld [vmem:[%s2547_s0 + $0x54] sm:$0xf0]  ;;  %v1355_v18 = vld [vmem:[%s2547_s0 + $0x150] sm:$0xf]  ;;  %v1585_v1 = vld [vmem:[%s2547_s0 + $0x1c4] sm:$0xf] }
  0x1c   :  { %v1228_v20 = vor.u32 %v1540_v17, %v1227_v16 }
  0x1e   :  { %586 = vmatpush.bf16.msra.mxu0 %v1593_v19 }
  0x1f   :  { %1805 = vmatpush.bf16.msra.mxu2 %v1593_v19  ;;  %v1572_v19 = vld [vmem:[%s2547_s0 + $0x154] sm:$0xf0] }
  0x20   :  { %v1356_v21 = vor.u32 %v1572_v19, %v1355_v18  ;;  %v1387_v18 = vld [vmem:[%s2547_s0 + $0x190] sm:$0xf]  ;;  %v1580_v19 = vld [vmem:[%s2547_s0 + $0x194] sm:$0xf0] }
  0x21   :  { %587 = vmatmul.bf16.vlgmr.msra.gmra.mxu0 %v1188_v24  ;;  %v1575_v24 = vld [vmem:[%s2547_s0 + $0x174] sm:$0xf] }
  0x22   :  { %667 = vmatmul.bf16.vlgmr.msra.gmra.mxu2 %v1316_v25  ;;  %v1373_v25 = vld [vmem:[%s2547_s0 + $0x178] sm:$0xf0] }
  0x23   :  { %v1376_v27 = vor.u32 %v1575_v24, %v1373_v25  ;;  %v1388_v24 = vor.u32 %v1580_v19, %v1387_v18  ;;  %v1403_v19 = vld [vmem:[%s2547_s0 + $0x1b0] sm:$0xf] }
  0x2a   :  { %1498 = vmatmul.msk.bf16.gmra.mxu1 %vm482_vm0, %v1200_v30  ;;  %v1363_v30 = vld [vmem:[%s2547_s0 + $0x160] sm:$0xf] }
  0x2b   :  { %1515 = vmatmul.msk.bf16.gmra.mxu3 %vm482_vm0, %v1336_v31  ;;  %v1574_v31 = vld [vmem:[%s2547_s0 + $0x164] sm:$0xf0] }
  0x2c   :  { %v1364_v33 = vor.u32 %v1574_v31, %v1363_v30  ;;  %v1583_v30 = vld [vmem:[%s2547_s0 + $0x1b4] sm:$0xf]  ;;  %v1405_v31 = vld [vmem:[%s2547_s0 + $0x1b8] sm:$0xf0] }
  0x31   :  { %592 = vmatmul.bf16.gmra.mxu0 %v1196_v36  ;;  %v1577_v36 = vld [vmem:[%s2547_s0 + $0x184] sm:$0xf] }
  0x32   :  { %672 = vmatmul.bf16.gmra.mxu2 %v1324_v37  ;;  %v1381_v37 = vld [vmem:[%s2547_s0 + $0x188] sm:$0xf0] }
  0x33   :  { %v1384_v39 = vor.u32 %v1577_v36, %v1381_v37 }
  0x3a   :  { %1499 = vmatmul.msk.bf16.gmra.mxu1 %vm482_vm0, %v1208_v42  ;;  %v1371_v42 = vld [vmem:[%s2547_s0 + $0x170] sm:$0xf] }
  0x3b   :  { %1516 = vmatmul.msk.bf16.gmra.mxu3 %vm482_vm0, %v1344_v43  ;;  %v1576_v43 = vld [vmem:[%s2547_s0 + $0x174] sm:$0xf0] }
  0x3c   :  { %v1372_v45 = vor.u32 %v1576_v43, %v1371_v42  ;;  %v1267_v42 = vld [vmem:[%s2547_s0 + $0xa0] sm:$0xf]  ;;  %v1550_v43 = vld [vmem:[%s2547_s0 + $0xa4] sm:$0xf0] }
  0x41   :  { %597 = vmatmul.bf16.gmra.mxu0 %v1204_v48  ;;  %v1579_v48 = vld [vmem:[%s2547_s0 + $0x194] sm:$0xf] }
  0x42   :  { %677 = vmatmul.bf16.gmra.mxu2 %v1332_v49  ;;  %v1389_v49 = vld [vmem:[%s2547_s0 + $0x198] sm:$0xf0] }
  0x43   :  { %v1392_v52 = vor.u32 %v1579_v48, %v1389_v49 }
  0x4a   :  { %1500 = vmatmul.msk.bf16.gmra.mxu1 %vm482_vm0, %v1216_v54  ;;  %v1546_v54 = vld [vmem:[%s2547_s0 + $0x84] sm:$0xf0] }
  0x4b   :  { %1517 = vmatmul.msk.bf16.gmra.mxu3 %vm482_vm0, %v1352_v55  ;;  %v1379_v55 = vld [vmem:[%s2547_s0 + $0x180] sm:$0xf]  ;;  %v1252_v57 = vor.u32 %v1546_v54, %v1251_v53  ;;  %v1396_v54 = vor.u32 %v1582_v47, %v1395_v46 }
  0x4c   :  { %v1380_v59 = vor.u32 %v1578_v56, %v1379_v55 }
  0x51   :  { %602 = vmatmul.bf16.gmra.mxu0 %v1212_v60 }
  0x52   :  { %682 = vmatmul.bf16.gmra.mxu2 %v1340_v61 }
  0x5a   :  { %1501 = vmatmul.msk.bf16.gmra.mxu1 %vm482_vm0, %v1224_v2  ;;  %v1581_v2 = vld [vmem:[%s2547_s0 + $0x1a4] sm:$0xf] }
  0x5b   :  { %1518 = vmatmul.msk.bf16.gmra.mxu3 %vm482_vm0, %v1360_v3  ;;  %v1397_v3 = vld [vmem:[%s2547_s0 + $0x1a8] sm:$0xf0] }
  0x5c   :  { %v1400_v12 = vor.u32 %v1581_v2, %v1397_v3  ;;  %v1413_v2 = vld [vmem:[%s2547_s0 + $0x1c8] sm:$0xf0] }
  0x61   :  { %607 = vmatmul.bf16.gmra.mxu0 %v1220_v8 }
  0x62   :  { %687 = vmatmul.bf16.gmra.mxu2 %v1348_v9  ;;  %v2138_v9 = vld [vmem:[%s2549_s3] ss:$0 sm:$0xff] }
  0x6a   :  { %1502 = vmatmul.msk.bf16.gmra.mxu1 %vm482_vm0, %v1232_v14  ;;  %v1259_v14 = vld [vmem:[%s2547_s0 + $0x90] sm:$0xf] }
  0x6b   :  { %1519 = vmatmul.msk.bf16.gmra.mxu3 %vm482_vm0, %v1368_v15  ;;  %v1548_v15 = vld [vmem:[%s2547_s0 + $0x94] sm:$0xf0] }
  0x6c   :  { %v1260_v22 = vor.u32 %v1548_v15, %v1259_v14  ;;  %v1275_v15 = vld [vmem:[%s2547_s0 + $0xb0] sm:$0xf] }
  0x71   :  { %612 = vmatmul.bf16.gmra.mxu0 %v1228_v20 }
  0x72   :  { %692 = vmatmul.bf16.gmra.mxu2 %v1356_v21 }
  0x7a   :  { %1503 = vmatmul.msk.bf16.gmra.mxu1 %vm482_vm0, %v1240_v26 }
  0x7b   :  { %1520 = vmatmul.msk.bf16.gmra.mxu3 %vm482_vm0, %v1376_v27 }
  0x81   :  { %617 = vmatmul.bf16.gmra.mxu0 %v1236_v32 }
  0x82   :  { %697 = vmatmul.bf16.gmra.mxu2 %v1364_v33 }
  0x8a   :  { %1504 = vmatmul.msk.bf16.gmra.mxu1 %vm482_vm0, %v1248_v38 }
  0x8b   :  { %1521 = vmatmul.msk.bf16.gmra.mxu3 %vm482_vm0, %v1384_v39  ;;  %v1408_v39 = vor.u32 %v1583_v30, %v1405_v31 }
  0x91   :  { %622 = vmatmul.bf16.gmra.mxu0 %v1244_v44 }
  0x92   :  { %702 = vmatmul.bf16.gmra.mxu2 %v1372_v45 }
  0x97   :  { %v757_v51 = vpop.f32.mrf.mxu1 }
  0x9a   :  { %1505 = vmatmul.msk.bf16.gmra.mxu1 %vm482_vm0, %v1256_v50  ;;  %v1268_v50 = vor.u32 %v1550_v43, %v1267_v42 }
  0x9b   :  { %1522 = vmatmul.msk.bf16.gmra.mxu3 %vm482_vm0, %v1392_v52 }
  0x9e   :  { %v588_v58 = vpop.f32.mrf.mxu0  ;;  %v842_v60 = vpop.f32.mrf.mxu3 }
  0x9f   :  { %v759_v61 = vpop.f32.mrf.mxu1  ;;  %v758_v62 = vadd.f32 %v757_v51, %v588_v58 }
  0xa1   :  { %627 = vmatmul.bf16.gmra.mxu0 %v1252_v57  ;;  %v921_v8 = vmul.f32 %v2118_v63, %v758_v62  ;;  %v1277_v62 = vld [vmem:[%s2547_s0 + $0xb8] sm:$0xf0] }
  0xa2   :  { %707 = vmatmul.bf16.gmra.mxu2 %v1380_v59 }
  0xa3   :  { %v989_v16 = vadd.f32 %v2138_v9, %v921_v8 }
  0xa5   :  { %v2132_v4 = vpop.f32.mrf.mxu2 }
  0xa6   :  { %v590_v5 = vpop.f32.mrf.mxu0  ;;  %v844_v7 = vpop.f32.mrf.mxu3 }
  0xa7   :  { %v760_v10 = vadd.f32 %v759_v61, %v590_v5  ;;  %v762_v11 = vpop.f32.mrf.mxu1  ;;  %v1551_v61 = vld [vmem:[%s2547_s0 + $0xb4] sm:$0xf] }
  0xa9   :  { %v922_v13 = vmul.f32 %v2118_v63, %v760_v10 }
  0xaa   :  { %1506 = vmatmul.msk.bf16.gmra.mxu1 %vm482_vm0, %v1264_v6  ;;  %v1280_v6 = vor.u32 %v1551_v61, %v1277_v62 }
  0xab   :  { %v990_v17 = vadd.f32 %v2138_v9, %v922_v13  ;;  %1523 = vmatmul.msk.bf16.gmra.mxu3 %vm482_vm0, %v1400_v12  ;;  %v1416_v12 = vor.u32 %v1585_v1, %v1413_v2 }
  0xad   :  { %v1610_v20 = vpack.c.bf16 %v990_v17, %v989_v16  ;;  %v2157_v21 = vpop.f32.mrf.mxu2  ;;  %v1552_v16 = vld [vmem:[%s2547_s0 + $0xb4] sm:$0xf0] }
  0xae   :  { %v593_v23 = vpop.f32.mrf.mxu0  ;;  %v847_v25 = vpop.f32.mrf.mxu3 }
  0xaf   :  { %1611 = vst [vmem:[%s2550_s4] sm:$0xff] %v1610_v20   ;;  %v764_v26 = vpop.f32.mrf.mxu1  ;;  %v763_v27 = vadd.f32 %v762_v11, %v593_v23  ;;  %v1584_v20 = vld [vmem:[%s2547_s0 + $0x1b4] sm:$0xf0] }
  0xb0   :  { %v1404_v28 = vor.u32 %v1584_v20, %v1403_v19 }
  0xb1   :  { %632 = vmatmul.bf16.gmra.mxu0 %v1260_v22  ;;  %v923_v36 = vmul.f32 %v2118_v63, %v763_v27 }
  0xb2   :  { %712 = vmatmul.bf16.gmra.mxu2 %v1388_v24  ;;  %v1276_v24 = vor.u32 %v1552_v16, %v1275_v15 }
  0xb3   :  { %v991_v44 = vadd.f32 %v2138_v9, %v923_v36  ;;  %v1285_v36 = vld [vmem:[%s2547_s0 + $0xc8] sm:$0xf0] }
  0xb5   :  { %v673_v32 = vpop.f32.mrf.mxu2 }
  0xb6   :  { %v595_v33 = vpop.f32.mrf.mxu0  ;;  %v849_v35 = vpop.f32.mrf.mxu3  ;;  %v843_v41 = vadd.f32 %v842_v60, %v673_v32 }
  0xb7   :  { %v765_v37 = vadd.f32 %v764_v26, %v595_v33  ;;  %v767_v38 = vpop.f32.mrf.mxu1 }
  0xb8   :  { %v955_v51 = vmul.f32 %v2118_v63, %v843_v41 }
  0xb9   :  { %v924_v40 = vmul.f32 %v2118_v63, %v765_v37 }
  0xba   :  { %1507 = vmatmul.msk.bf16.gmra.mxu1 %vm482_vm0, %v1272_v34  ;;  %v1023_v58 = vadd.f32 %v2138_v9, %v955_v51  ;;  %v1554_v51 = vld [vmem:[%s2547_s0 + $0xc4] sm:$0xf0] }
  0xbb   :  { %v992_v45 = vadd.f32 %v2138_v9, %v924_v40  ;;  %1524 = vmatmul.msk.bf16.gmra.mxu3 %vm482_vm0, %v1408_v39  ;;  %v1421_v39 = vld [vmem:[%s2547_s0 + $0x1d8] sm:$0xf0] }
  0xbd   :  { %v1615_v48 = vpack.c.bf16 %v992_v45, %v991_v44  ;;  %v675_v49 = vpop.f32.mrf.mxu2 }
  0xbe   :  { %v845_v52 = vadd.f32 %v844_v7, %v675_v49  ;;  %v598_v53 = vpop.f32.mrf.mxu0  ;;  %v2193_v55 = vpop.f32.mrf.mxu3 }
  0xbf   :  { %1767 = vst [vmem:[%s2550_s4 + $0x8] sm:$0xff] %v1615_v48   ;;  %v769_v56 = vpop.f32.mrf.mxu1  ;;  %v768_v60 = vadd.f32 %v767_v38, %v598_v53  ;;  %v1587_v38 = vld [vmem:[%s2547_s0 + $0x1d4] sm:$0xf] }
  0xc0   :  { %v956_v57 = vmul.f32 %v2118_v63, %v845_v52  ;;  %v1424_v47 = vor.u32 %v1587_v38, %v1421_v39 }
  0xc1   :  { %637 = vmatmul.bf16.gmra.mxu0 %v1268_v50  ;;  %v925_v8 = vmul.f32 %v2118_v63, %v768_v60  ;;  %v1283_v50 = vld [vmem:[%s2547_s0 + $0xc0] sm:$0xf] }
  0xc2   :  { %v1024_v59 = vadd.f32 %v2138_v9, %v956_v57  ;;  %717 = vmatmul.bf16.gmra.mxu2 %v1396_v54  ;;  %v1411_v54 = vld [vmem:[%s2547_s0 + $0x1c0] sm:$0xf] }
  0xc3   :  { %v993_v17 = vadd.f32 %v2138_v9, %v925_v8  ;;  %v1293_v8 = vld [vmem:[%s2547_s0 + $0xd8] sm:$0xf0] }
  0xc4   :  { %v1695_v0 = vpack.c.bf16 %v1024_v59, %v1023_v58  ;;  %v1284_v58 = vor.u32 %v1554_v51, %v1283_v50 }
  0xc5   :  { %v678_v3 = vpop.f32.mrf.mxu2 }
  0xc6   :  { %1783 = vst [vmem:[%s2550_s4 + $0x88] sm:$0xff] %v1695_v0   ;;  %v600_v5 = vpop.f32.mrf.mxu0  ;;  %v854_v7 = vpop.f32.mrf.mxu3  ;;  %v848_v14 = vadd.f32 %v847_v25, %v678_v3 }
  0xc7   :  { %v770_v10 = vadd.f32 %v769_v56, %v600_v5  ;;  %v772_v11 = vpop.f32.mrf.mxu1 }
  0xc8   :  { %v957_v25 = vmul.f32 %v2118_v63, %v848_v14 }
  0xc9   :  { %v926_v13 = vmul.f32 %v2118_v63, %v770_v10 }
  0xca   :  { %1508 = vmatmul.msk.bf16.gmra.mxu1 %vm482_vm0, %v1280_v6  ;;  %v1025_v32 = vadd.f32 %v2138_v9, %v957_v25  ;;  %v1556_v25 = vld [vmem:[%s2547_s0 + $0xd4] sm:$0xf0] }
  0xcb   :  { %v994_v18 = vadd.f32 %v2138_v9, %v926_v13  ;;  %1525 = vmatmul.msk.bf16.gmra.mxu3 %vm482_vm0, %v1416_v12  ;;  %v1429_v12 = vld [vmem:[%s2547_s0 + $0x1e8] sm:$0xf0] }
  0xcd   :  { %v1620_v22 = vpack.c.bf16 %v994_v18, %v993_v17  ;;  %v680_v23 = vpop.f32.mrf.mxu2 }
  0xce   :  { %v850_v26 = vadd.f32 %v849_v35, %v680_v23  ;;  %v603_v27 = vpop.f32.mrf.mxu0  ;;  %v2235_v29 = vpop.f32.mrf.mxu3  ;;  %v1553_v35 = vld [vmem:[%s2547_s0 + $0xc4] sm:$0xf] }
  0xcf   :  { %1768 = vst [vmem:[%s2550_s4 + $0x10] sm:$0xff] %v1620_v22   ;;  %v774_v30 = vpop.f32.mrf.mxu1  ;;  %v773_v34 = vadd.f32 %v772_v11, %v603_v27  ;;  %v1288_v42 = vor.u32 %v1553_v35, %v1285_v36  ;;  %v1589_v11 = vld [vmem:[%s2547_s0 + $0x1e4] sm:$0xf] }
  0xd0   :  { %v958_v31 = vmul.f32 %v2118_v63, %v850_v26  ;;  %v1432_v20 = vor.u32 %v1589_v11, %v1429_v12 }
  0xd1   :  { %642 = vmatmul.bf16.gmra.mxu0 %v1276_v24  ;;  %v927_v44 = vmul.f32 %v2118_v63, %v773_v34  ;;  %v1291_v24 = vld [vmem:[%s2547_s0 + $0xd0] sm:$0xf] }
  0xd2   :  { %v1026_v33 = vadd.f32 %v2138_v9, %v958_v31  ;;  %722 = vmatmul.bf16.gmra.mxu2 %v1404_v28  ;;  %v1419_v28 = vld [vmem:[%s2547_s0 + $0x1d0] sm:$0xf] }
  0xd3   :  { %v995_v52 = vadd.f32 %v2138_v9, %v927_v44  ;;  %v1301_v44 = vld [vmem:[%s2547_s0 + $0xe8] sm:$0xf0] }
  0xd4   :  { %v1700_v37 = vpack.c.bf16 %v1026_v33, %v1025_v32  ;;  %v1292_v32 = vor.u32 %v1556_v25, %v1291_v24 }
  0xd5   :  { %v683_v40 = vpop.f32.mrf.mxu2 }
  0xd6   :  { %1784 = vst [vmem:[%s2550_s4 + $0x90] sm:$0xff] %v1700_v37   ;;  %v605_v41 = vpop.f32.mrf.mxu0  ;;  %v859_v43 = vpop.f32.mrf.mxu3  ;;  %v853_v49 = vadd.f32 %v2193_v55, %v683_v40  ;;  %v1586_v55 = vld [vmem:[%s2547_s0 + $0x1c4] sm:$0xf0] }
  0xd7   :  { %v775_v45 = vadd.f32 %v774_v30, %v605_v41  ;;  %v777_v46 = vpop.f32.mrf.mxu1  ;;  %v1412_v62 = vor.u32 %v1586_v55, %v1411_v54 }
  0xd8   :  { %v959_v59 = vmul.f32 %v2118_v63, %v853_v49 }
  0xd9   :  { %v928_v48 = vmul.f32 %v2118_v63, %v775_v45 }
  0xda   :  { %1509 = vmatmul.msk.bf16.gmra.mxu1 %vm482_vm0, %v1288_v42  ;;  %v1027_v3 = vadd.f32 %v2138_v9, %v959_v59  ;;  %v1558_v59 = vld [vmem:[%s2547_s0 + $0xe4] sm:$0xf0] }
  0xdb   :  { %v996_v53 = vadd.f32 %v2138_v9, %v928_v48  ;;  %1526 = vmatmul.msk.bf16.gmra.mxu3 %vm482_vm0, %v1424_v47  ;;  %v1437_v47 = vld [vmem:[%s2547_s0 + $0x1f8] sm:$0xf0] }
  0xdd   :  { %v1625_v56 = vpack.c.bf16 %v996_v53, %v995_v52  ;;  %v685_v57 = vpop.f32.mrf.mxu2 }
  0xde   :  { %v855_v60 = vadd.f32 %v854_v7, %v685_v57  ;;  %v608_v61 = vpop.f32.mrf.mxu0  ;;  %v2278_v0 = vpop.f32.mrf.mxu3  ;;  %v1555_v7 = vld [vmem:[%s2547_s0 + $0xd4] sm:$0xf] }
  0xdf   :  { %1769 = vst [vmem:[%s2550_s4 + $0x18] sm:$0xff] %v1625_v56   ;;  %v779_v1 = vpop.f32.mrf.mxu1  ;;  %v778_v6 = vadd.f32 %v777_v46, %v608_v61  ;;  %v1296_v15 = vor.u32 %v1555_v7, %v1293_v8  ;;  %v1591_v46 = vld [vmem:[%s2547_s0 + $0x1f4] sm:$0xf] }
  0xe0   :  { %v960_v2 = vmul.f32 %v2118_v63, %v855_v60  ;;  %v1440_v55 = vor.u32 %v1591_v46, %v1437_v47 }
  0xe1   :  { %647 = vmatmul.bf16.gmra.mxu0 %v1284_v58  ;;  %v929_v17 = vmul.f32 %v2118_v63, %v778_v6  ;;  %v1299_v58 = vld [vmem:[%s2547_s0 + $0xe0] sm:$0xf] }
  0xe2   :  { %v1028_v5 = vadd.f32 %v2138_v9, %v960_v2  ;;  %727 = vmatmul.bf16.gmra.mxu2 %v1412_v62  ;;  %v1427_v62 = vld [vmem:[%s2547_s0 + $0x1e0] sm:$0xf] }
  0xe3   :  { %v997_v26 = vadd.f32 %v2138_v9, %v929_v17  ;;  %v1309_v17 = vld [vmem:[%s2547_s0 + $0xf8] sm:$0xf0] }
  0xe4   :  { %v1705_v10 = vpack.c.bf16 %v1028_v5, %v1027_v3  ;;  %v1300_v3 = vor.u32 %v1558_v59, %v1299_v58 }
  0xe5   :  { %v688_v13 = vpop.f32.mrf.mxu2 }
  0xe6   :  { %1785 = vst [vmem:[%s2550_s4 + $0x98] sm:$0xff] %v1705_v10   ;;  %v610_v14 = vpop.f32.mrf.mxu0  ;;  %v864_v16 = vpop.f32.mrf.mxu3  ;;  %v858_v23 = vadd.f32 %v2235_v29, %v688_v13  ;;  %v1588_v29 = vld [vmem:[%s2547_s0 + $0x1d4] sm:$0xf0] }
  0xe7   :  { %v780_v18 = vadd.f32 %v779_v1, %v610_v14  ;;  %v782_v19 = vpop.f32.mrf.mxu1  ;;  %v1420_v36 = vor.u32 %v1588_v29, %v1419_v28  ;;  %v1307_v29 = vld [vmem:[%s2547_s0 + $0xf0] sm:$0xf] }
  0xe8   :  { %v961_v33 = vmul.f32 %v2118_v63, %v858_v23 }
  0xe9   :  { %v930_v22 = vmul.f32 %v2118_v63, %v780_v18 }
  0xea   :  { %1510 = vmatmul.msk.bf16.gmra.mxu1 %vm482_vm0, %v1296_v15  ;;  %v1029_v40 = vadd.f32 %v2138_v9, %v961_v33  ;;  %v1435_v33 = vld [vmem:[%s2547_s0 + $0x1f0] sm:$0xf] }
  0xeb   :  { %v998_v27 = vadd.f32 %v2138_v9, %v930_v22  ;;  %1527 = vmatmul.msk.bf16.gmra.mxu3 %vm482_vm0, %v1432_v20 }
  0xed   :  { %v1630_v30 = vpack.c.bf16 %v998_v27, %v997_v26  ;;  %v690_v31 = vpop.f32.mrf.mxu2 }
  0xee   :  { %v860_v34 = vadd.f32 %v859_v43, %v690_v31  ;;  %v613_v35 = vpop.f32.mrf.mxu0  ;;  %v867_v37 = vpop.f32.mrf.mxu3  ;;  %v1557_v43 = vld [vmem:[%s2547_s0 + $0xe4] sm:$0xf] }
  0xef   :  { %1770 = vst [vmem:[%s2550_s4 + $0x20] sm:$0xff] %v1630_v30   ;;  %v784_v38 = vpop.f32.mrf.mxu1  ;;  %v783_v42 = vadd.f32 %v782_v19, %v613_v35  ;;  %v1304_v50 = vor.u32 %v1557_v43, %v1301_v44  ;;  %v1560_v30 = vld [vmem:[%s2547_s0 + $0xf4] sm:$0xf0] }
  0xf0   :  { %v962_v39 = vmul.f32 %v2118_v63, %v860_v34  ;;  %v1592_v34 = vld [vmem:[%s2547_s0 + $0x1f4] sm:$0xf0] }
  0xf1   :  { %652 = vmatmul.bf16.gmra.mxu0 %v1292_v32  ;;  %v931_v52 = vmul.f32 %v2118_v63, %v783_v42 }
  0xf2   :  { %v1030_v41 = vadd.f32 %v2138_v9, %v962_v39  ;;  %732 = vmatmul.bf16.gmra.mxu2 %v1420_v36 }
  0xf3   :  { %v999_v60 = vadd.f32 %v2138_v9, %v931_v52 }
  0xf4   :  { %v1710_v45 = vpack.c.bf16 %v1030_v41, %v1029_v40  ;;  %v1436_v41 = vor.u32 %v1592_v34, %v1435_v33 }
  0xf5   :  { %v693_v48 = vpop.f32.mrf.mxu2 }
  0xf6   :  { %1786 = vst [vmem:[%s2550_s4 + $0xa0] sm:$0xff] %v1710_v45   ;;  %v615_v49 = vpop.f32.mrf.mxu0  ;;  %v869_v51 = vpop.f32.mrf.mxu3  ;;  %v863_v57 = vadd.f32 %v2278_v0, %v693_v48  ;;  %v1590_v0 = vld [vmem:[%s2547_s0 + $0x1e4] sm:$0xf0]  ;;  %v1561_v48 = vld [vmem:[%s2547_s0 + $0x104] sm:$0xf] }
  0xf7   :  { %v785_v53 = vadd.f32 %v784_v38, %v615_v49  ;;  %v787_v54 = vpop.f32.mrf.mxu1  ;;  %v1428_v8 = vor.u32 %v1590_v0, %v1427_v62  ;;  %v1317_v49 = vld [vmem:[%s2547_s0 + $0x108] sm:$0xf0] }
  0xf8   :  { %v963_v5 = vmul.f32 %v2118_v63, %v863_v57 }
  0xf9   :  { %v932_v56 = vmul.f32 %v2118_v63, %v785_v53  ;;  %v1320_v53 = vor.u32 %v1561_v48, %v1317_v49 }
  0xfa   :  { %1511 = vmatmul.msk.bf16.gmra.mxu1 %vm482_vm0, %v1304_v50  ;;  %v1031_v13 = vadd.f32 %v2138_v9, %v963_v5 }
  0xfb   :  { %v1000_v61 = vadd.f32 %v2138_v9, %v932_v56  ;;  %1528 = vmatmul.msk.bf16.gmra.mxu3 %vm482_vm0, %v1440_v55 }
  0xfd   :  { %v1635_v1 = vpack.c.bf16 %v1000_v61, %v999_v60  ;;  %v695_v2 = vpop.f32.mrf.mxu2 }
  0xfe   :  { %v865_v6 = vadd.f32 %v864_v16, %v695_v2  ;;  %v618_v7 = vpop.f32.mrf.mxu0  ;;  %v872_v10 = vpop.f32.mrf.mxu3  ;;  %v1559_v16 = vld [vmem:[%s2547_s0 + $0xf4] sm:$0xf] }
  0xff   :  { %1771 = vst [vmem:[%s2550_s4 + $0x28] sm:$0xff] %v1635_v1   ;;  %v789_v11 = vpop.f32.mrf.mxu1  ;;  %v788_v15 = vadd.f32 %v787_v54, %v618_v7  ;;  %v1312_v22 = vor.u32 %v1559_v16, %v1309_v17 }
 0x100   :  { %v964_v12 = vmul.f32 %v2118_v63, %v865_v6 }
 0x101   :  { %657 = vmatmul.bf16.gmra.mxu0 %v1300_v3  ;;  %v933_v24 = vmul.f32 %v2118_v63, %v788_v15 }
 0x102   :  { %v1032_v14 = vadd.f32 %v2138_v9, %v964_v12  ;;  %737 = vmatmul.bf16.gmra.mxu2 %v1428_v8 }
 0x103   :  { %v1001_v31 = vadd.f32 %v2138_v9, %v933_v24 }
 0x104   :  { %v1715_v18 = vpack.c.bf16 %v1032_v14, %v1031_v13 }
 0x105   :  { %v698_v19 = vpop.f32.mrf.mxu2 }
 0x106   :  { %1787 = vst [vmem:[%s2550_s4 + $0xa8] sm:$0xff] %v1715_v18   ;;  %v620_v20 = vpop.f32.mrf.mxu0  ;;  %v874_v23 = vpop.f32.mrf.mxu3  ;;  %v868_v28 = vadd.f32 %v867_v37, %v698_v19  ;;  %v1308_v37 = vor.u32 %v1560_v30, %v1307_v29 }
 0x107   :  { %v790_v25 = vadd.f32 %v789_v11, %v620_v20  ;;  %v792_v26 = vpop.f32.mrf.mxu1 }
 0x108   :  { %v965_v38 = vmul.f32 %v2118_v63, %v868_v28 }
 0x109   :  { %v934_v27 = vmul.f32 %v2118_v63, %v790_v25 }
 0x10a   :  { %1512 = vmatmul.msk.bf16.gmra.mxu1 %vm482_vm0, %v1312_v22  ;;  %v1033_v45 = vadd.f32 %v2138_v9, %v965_v38 }
 0x10b   :  { %v1002_v32 = vadd.f32 %v2138_v9, %v934_v27 }
 0x10d   :  { %v1640_v35 = vpack.c.bf16 %v1002_v32, %v1001_v31  ;;  %v700_v36 = vpop.f32.mrf.mxu2 }
 0x10e   :  { %v870_v39 = vadd.f32 %v869_v51, %v700_v36  ;;  %v623_v40 = vpop.f32.mrf.mxu0  ;;  %v877_v42 = vpop.f32.mrf.mxu3 }
 0x10f   :  { %1772 = vst [vmem:[%s2550_s4 + $0x30] sm:$0xff] %v1640_v35   ;;  %v794_v43 = vpop.f32.mrf.mxu1  ;;  %v793_v47 = vadd.f32 %v792_v26, %v623_v40 }
 0x110   :  { %v966_v44 = vmul.f32 %v2118_v63, %v870_v39 }
 0x111   :  { %662 = vmatmul.bf16.gmra.mxu0 %v1308_v37  ;;  %v935_v55 = vmul.f32 %v2118_v63, %v793_v47 }
 0x112   :  { %v1034_v46 = vadd.f32 %v2138_v9, %v966_v44  ;;  %742 = vmatmul.bf16.gmra.mxu2 %v1436_v41 }
 0x113   :  { %v1003_v60 = vadd.f32 %v2138_v9, %v935_v55 }
 0x114   :  { %v1720_v50 = vpack.c.bf16 %v1034_v46, %v1033_v45 }
 0x115   :  { %v703_v51 = vpop.f32.mrf.mxu2 }
 0x116   :  { %1788 = vst [vmem:[%s2550_s4 + $0xb0] sm:$0xff] %v1720_v50   ;;  %v625_v52 = vpop.f32.mrf.mxu0  ;;  %v879_v54 = vpop.f32.mrf.mxu3  ;;  %v873_v59 = vadd.f32 %v872_v10, %v703_v51 }
 0x117   :  { %v795_v56 = vadd.f32 %v794_v43, %v625_v52  ;;  %v797_v57 = vpop.f32.mrf.mxu1 }
 0x118   :  { %v967_v1 = vmul.f32 %v2118_v63, %v873_v59 }
 0x119   :  { %v936_v58 = vmul.f32 %v2118_v63, %v795_v56 }
 0x11a   :  { %1513 = vmatmul.msk.bf16.gmra.mxu1 %vm482_vm0, %v1320_v53  ;;  %v1035_v8 = vadd.f32 %v2138_v9, %v967_v1 }
 0x11b   :  { %v1004_v61 = vadd.f32 %v2138_v9, %v936_v58 }
 0x11d   :  { %v1645_v62 = vpack.c.bf16 %v1004_v61, %v1003_v60  ;;  %v705_v0 = vpop.f32.mrf.mxu2 }
 0x11e   :  { %v875_v2 = vadd.f32 %v874_v23, %v705_v0  ;;  %v628_v3 = vpop.f32.mrf.mxu0  ;;  %v882_v5 = vpop.f32.mrf.mxu3 }
 0x11f   :  { %1773 = vst [vmem:[%s2550_s4 + $0x38] sm:$0xff] %v1645_v62   ;;  %v799_v6 = vpop.f32.mrf.mxu1  ;;  %v798_v11 = vadd.f32 %v797_v57, %v628_v3 }
 0x120   :  { %v968_v7 = vmul.f32 %v2118_v63, %v875_v2 }
 0x121   :  { %v937_v16 = vmul.f32 %v2118_v63, %v798_v11 }
 0x122   :  { %v1036_v10 = vadd.f32 %v2138_v9, %v968_v7 }
 0x123   :  { %v1005_v22 = vadd.f32 %v2138_v9, %v937_v16 }
 0x124   :  { %v1725_v12 = vpack.c.bf16 %v1036_v10, %v1035_v8 }
 0x125   :  { %v708_v13 = vpop.f32.mrf.mxu2 }
 0x126   :  { %1789 = vst [vmem:[%s2550_s4 + $0xb8] sm:$0xff] %v1725_v12   ;;  %v630_v14 = vpop.f32.mrf.mxu0  ;;  %v884_v15 = vpop.f32.mrf.mxu3  ;;  %v878_v20 = vadd.f32 %v877_v42, %v708_v13 }
 0x127   :  { %v800_v17 = vadd.f32 %v799_v6, %v630_v14  ;;  %v802_v18 = vpop.f32.mrf.mxu1 }
 0x128   :  { %v969_v26 = vmul.f32 %v2118_v63, %v878_v20 }
 0x129   :  { %v938_v19 = vmul.f32 %v2118_v63, %v800_v17 }
 0x12a   :  { %v1037_v32 = vadd.f32 %v2138_v9, %v969_v26 }
 0x12b   :  { %v1006_v23 = vadd.f32 %v2138_v9, %v938_v19 }
 0x12d   :  { %v1650_v24 = vpack.c.bf16 %v1006_v23, %v1005_v22  ;;  %v710_v25 = vpop.f32.mrf.mxu2 }
 0x12e   :  { %v880_v27 = vadd.f32 %v879_v54, %v710_v25  ;;  %v633_v28 = vpop.f32.mrf.mxu0  ;;  %v887_v30 = vpop.f32.mrf.mxu3 }
 0x12f   :  { %1774 = vst [vmem:[%s2550_s4 + $0x40] sm:$0xff] %v1650_v24   ;;  %v804_v29 = vpop.f32.mrf.mxu1  ;;  %v803_v34 = vadd.f32 %v802_v18, %v633_v28 }
 0x130   :  { %v970_v31 = vmul.f32 %v2118_v63, %v880_v27 }
 0x131   :  { %v939_v38 = vmul.f32 %v2118_v63, %v803_v34 }
 0x132   :  { %v1038_v33 = vadd.f32 %v2138_v9, %v970_v31 }
 0x133   :  { %v1007_v44 = vadd.f32 %v2138_v9, %v939_v38 }
 0x134   :  { %v1730_v35 = vpack.c.bf16 %v1038_v33, %v1037_v32 }
 0x135   :  { %v713_v36 = vpop.f32.mrf.mxu2 }
 0x136   :  { %1790 = vst [vmem:[%s2550_s4 + $0xc0] sm:$0xff] %v1730_v35   ;;  %v635_v37 = vpop.f32.mrf.mxu0  ;;  %v889_v42 = vpop.f32.mrf.mxu3  ;;  %v883_v43 = vadd.f32 %v882_v5, %v713_v36 }
 0x137   :  { %v805_v39 = vadd.f32 %v804_v29, %v635_v37  ;;  %v807_v40 = vpop.f32.mrf.mxu1 }
 0x138   :  { %v971_v48 = vmul.f32 %v2118_v63, %v883_v43 }
 0x139   :  { %v940_v41 = vmul.f32 %v2118_v63, %v805_v39 }
 0x13a   :  { %v1039_v53 = vadd.f32 %v2138_v9, %v971_v48 }
 0x13b   :  { %v1008_v45 = vadd.f32 %v2138_v9, %v940_v41 }
 0x13d   :  { %v1655_v46 = vpack.c.bf16 %v1008_v45, %v1007_v44  ;;  %v715_v47 = vpop.f32.mrf.mxu2 }
 0x13e   :  { %v885_v49 = vadd.f32 %v884_v15, %v715_v47  ;;  %v638_v50 = vpop.f32.mrf.mxu0  ;;  %v892_v56 = vpop.f32.mrf.mxu3 }
 0x13f   :  { %1775 = vst [vmem:[%s2550_s4 + $0x48] sm:$0xff] %v1655_v46   ;;  %v809_v51 = vpop.f32.mrf.mxu1  ;;  %v808_v55 = vadd.f32 %v807_v40, %v638_v50 }
 0x140   :  { %v972_v52 = vmul.f32 %v2118_v63, %v885_v49 }
 0x141   :  { %v941_v60 = vmul.f32 %v2118_v63, %v808_v55 }
 0x142   :  { %v1040_v54 = vadd.f32 %v2138_v9, %v972_v52 }
 0x143   :  { %v1009_v2 = vadd.f32 %v2138_v9, %v941_v60 }
 0x144   :  { %v1735_v57 = vpack.c.bf16 %v1040_v54, %v1039_v53 }
 0x145   :  { %v718_v58 = vpop.f32.mrf.mxu2 }
 0x146   :  { %1791 = vst [vmem:[%s2550_s4 + $0xc8] sm:$0xff] %v1735_v57   ;;  %v640_v59 = vpop.f32.mrf.mxu0  ;;  %v888_v1 = vadd.f32 %v887_v30, %v718_v58  ;;  %v894_v7 = vpop.f32.mrf.mxu3 }
 0x147   :  { %v810_v61 = vadd.f32 %v809_v51, %v640_v59  ;;  %v812_v62 = vpop.f32.mrf.mxu1 }
 0x148   :  { %v973_v8 = vmul.f32 %v2118_v63, %v888_v1 }
 0x149   :  { %v942_v0 = vmul.f32 %v2118_v63, %v810_v61 }
 0x14a   :  { %v1041_v14 = vadd.f32 %v2138_v9, %v973_v8 }
 0x14b   :  { %v1010_v3 = vadd.f32 %v2138_v9, %v942_v0 }
 0x14d   :  { %v1660_v5 = vpack.c.bf16 %v1010_v3, %v1009_v2  ;;  %v720_v6 = vpop.f32.mrf.mxu2 }
 0x14e   :  { %v890_v10 = vadd.f32 %v889_v42, %v720_v6  ;;  %v643_v11 = vpop.f32.mrf.mxu0  ;;  %v897_v24 = vpop.f32.mrf.mxu3 }
 0x14f   :  { %1776 = vst [vmem:[%s2550_s4 + $0x50] sm:$0xff] %v1660_v5   ;;  %v814_v12 = vpop.f32.mrf.mxu1  ;;  %v813_v16 = vadd.f32 %v812_v62, %v643_v11 }
 0x150   :  { %v974_v13 = vmul.f32 %v2118_v63, %v890_v10 }
 0x151   :  { %v943_v20 = vmul.f32 %v2118_v63, %v813_v16 }
 0x152   :  { %v1042_v15 = vadd.f32 %v2138_v9, %v974_v13 }
 0x153   :  { %v1011_v27 = vadd.f32 %v2138_v9, %v943_v20 }
 0x154   :  { %v1740_v17 = vpack.c.bf16 %v1042_v15, %v1041_v14 }
 0x155   :  { %v723_v18 = vpop.f32.mrf.mxu2 }
 0x156   :  { %1792 = vst [vmem:[%s2550_s4 + $0xd0] sm:$0xff] %v1740_v17   ;;  %v645_v19 = vpop.f32.mrf.mxu0  ;;  %v893_v26 = vadd.f32 %v892_v56, %v723_v18  ;;  %v899_v36 = vpop.f32.mrf.mxu3 }
 0x157   :  { %v815_v22 = vadd.f32 %v814_v12, %v645_v19  ;;  %v817_v23 = vpop.f32.mrf.mxu1 }
 0x158   :  { %v975_v31 = vmul.f32 %v2118_v63, %v893_v26 }
 0x159   :  { %v944_v25 = vmul.f32 %v2118_v63, %v815_v22 }
 0x15a   :  { %v1043_v37 = vadd.f32 %v2138_v9, %v975_v31 }
 0x15b   :  { %v1012_v28 = vadd.f32 %v2138_v9, %v944_v25 }
 0x15d   :  { %v1665_v29 = vpack.c.bf16 %v1012_v28, %v1011_v27  ;;  %v725_v30 = vpop.f32.mrf.mxu2 }
 0x15e   :  { %v895_v32 = vadd.f32 %v894_v7, %v725_v30  ;;  %v648_v33 = vpop.f32.mrf.mxu0  ;;  %v902_v50 = vpop.f32.mrf.mxu3 }
 0x15f   :  { %1777 = vst [vmem:[%s2550_s4 + $0x58] sm:$0xff] %v1665_v29   ;;  %v819_v34 = vpop.f32.mrf.mxu1  ;;  %v818_v39 = vadd.f32 %v817_v23, %v648_v33 }
 0x160   :  { %v976_v35 = vmul.f32 %v2118_v63, %v895_v32 }
 0x161   :  { %v945_v43 = vmul.f32 %v2118_v63, %v818_v39 }
 0x162   :  { %v1044_v38 = vadd.f32 %v2138_v9, %v976_v35 }
 0x163   :  { %v1013_v48 = vadd.f32 %v2138_v9, %v945_v43 }
 0x164   :  { %v1745_v40 = vpack.c.bf16 %v1044_v38, %v1043_v37 }
 0x165   :  { %v728_v41 = vpop.f32.mrf.mxu2 }
 0x166   :  { %1793 = vst [vmem:[%s2550_s4 + $0xd8] sm:$0xff] %v1745_v40   ;;  %v650_v42 = vpop.f32.mrf.mxu0  ;;  %v898_v47 = vadd.f32 %v897_v24, %v728_v41  ;;  %v904_v0 = vpop.f32.mrf.mxu3 }
 0x167   :  { %v820_v44 = vadd.f32 %v819_v34, %v650_v42  ;;  %v822_v45 = vpop.f32.mrf.mxu1 }
 0x168   :  { %v977_v53 = vmul.f32 %v2118_v63, %v898_v47 }
 0x169   :  { %v946_v46 = vmul.f32 %v2118_v63, %v820_v44 }
 0x16a   :  { %v1045_v58 = vadd.f32 %v2138_v9, %v977_v53 }
 0x16b   :  { %v1014_v49 = vadd.f32 %v2138_v9, %v946_v46 }
 0x16d   :  { %v1670_v51 = vpack.c.bf16 %v1014_v49, %v1013_v48  ;;  %v730_v52 = vpop.f32.mrf.mxu2 }
 0x16e   :  { %v900_v54 = vadd.f32 %v899_v36, %v730_v52  ;;  %v653_v55 = vpop.f32.mrf.mxu0  ;;  %v907_v17 = vpop.f32.mrf.mxu3 }
 0x16f   :  { %1778 = vst [vmem:[%s2550_s4 + $0x60] sm:$0xff] %v1670_v51   ;;  %v824_v56 = vpop.f32.mrf.mxu1  ;;  %v823_v60 = vadd.f32 %v822_v45, %v653_v55 }
 0x170   :  { %v978_v57 = vmul.f32 %v2118_v63, %v900_v54 }
 0x171   :  { %v947_v2 = vmul.f32 %v2118_v63, %v823_v60 }
 0x172   :  { %v1046_v59 = vadd.f32 %v2138_v9, %v978_v57 }
 0x173   :  { %v1015_v8 = vadd.f32 %v2138_v9, %v947_v2 }
 0x174   :  { %v1750_v61 = vpack.c.bf16 %v1046_v59, %v1045_v58 }
 0x175   :  { %v733_v62 = vpop.f32.mrf.mxu2 }
 0x176   :  { %1794 = vst [vmem:[%s2550_s4 + $0xe0] sm:$0xff] %v1750_v61   ;;  %v655_v1 = vpop.f32.mrf.mxu0  ;;  %v903_v7 = vadd.f32 %v902_v50, %v733_v62  ;;  %v909_v30 = vpop.f32.mrf.mxu3 }
 0x177   :  { %v825_v3 = vadd.f32 %v824_v56, %v655_v1  ;;  %v827_v5 = vpop.f32.mrf.mxu1 }
 0x178   :  { %v979_v13 = vmul.f32 %v2118_v63, %v903_v7 }
 0x179   :  { %v948_v6 = vmul.f32 %v2118_v63, %v825_v3 }
 0x17a   :  { %v1047_v19 = vadd.f32 %v2138_v9, %v979_v13 }
 0x17b   :  { %v1016_v10 = vadd.f32 %v2138_v9, %v948_v6 }
 0x17d   :  { %v1675_v11 = vpack.c.bf16 %v1016_v10, %v1015_v8  ;;  %v735_v12 = vpop.f32.mrf.mxu2 }
 0x17e   :  { %v905_v14 = vadd.f32 %v904_v0, %v735_v12  ;;  %v658_v15 = vpop.f32.mrf.mxu0  ;;  %v912_v44 = vpop.f32.mrf.mxu3 }
 0x17f   :  { %1779 = vst [vmem:[%s2550_s4 + $0x68] sm:$0xff] %v1675_v11   ;;  %v829_v16 = vpop.f32.mrf.mxu1  ;;  %v828_v22 = vadd.f32 %v827_v5, %v658_v15 }
 0x180   :  { %v980_v18 = vmul.f32 %v2118_v63, %v905_v14 }
 0x181   :  { %v949_v26 = vmul.f32 %v2118_v63, %v828_v22 }
 0x182   :  { %v1048_v20 = vadd.f32 %v2138_v9, %v980_v18 }
 0x183   :  { %v1017_v32 = vadd.f32 %v2138_v9, %v949_v26 }
 0x184   :  { %v1755_v23 = vpack.c.bf16 %v1048_v20, %v1047_v19 }
 0x185   :  { %v738_v24 = vpop.f32.mrf.mxu2 }
 0x186   :  { %1795 = vst [vmem:[%s2550_s4 + $0xe8] sm:$0xff] %v1755_v23   ;;  %v660_v25 = vpop.f32.mrf.mxu0  ;;  %v908_v31 = vadd.f32 %v907_v17, %v738_v24  ;;  %v914_v57 = vpop.f32.mrf.mxu3 }
 0x187   :  { %v830_v27 = vadd.f32 %v829_v16, %v660_v25  ;;  %v832_v28 = vpop.f32.mrf.mxu1 }
 0x188   :  { %v981_v36 = vmul.f32 %v2118_v63, %v908_v31 }
 0x189   :  { %v950_v29 = vmul.f32 %v2118_v63, %v830_v27 }
 0x18a   :  { %v1049_v41 = vadd.f32 %v2138_v9, %v981_v36 }
 0x18b   :  { %v1018_v33 = vadd.f32 %v2138_v9, %v950_v29 }
 0x18d   :  { %v1680_v34 = vpack.c.bf16 %v1018_v33, %v1017_v32  ;;  %v740_v35 = vpop.f32.mrf.mxu2 }
 0x18e   :  { %v910_v37 = vadd.f32 %v909_v30, %v740_v35  ;;  %v663_v38 = vpop.f32.mrf.mxu0 }
 0x18f   :  { %1780 = vst [vmem:[%s2550_s4 + $0x70] sm:$0xff] %v1680_v34   ;;  %v834_v39 = vpop.f32.mrf.mxu1  ;;  %v833_v43 = vadd.f32 %v832_v28, %v663_v38 }
 0x190   :  { %v982_v40 = vmul.f32 %v2118_v63, %v910_v37 }
 0x191   :  { %v951_v48 = vmul.f32 %v2118_v63, %v833_v43 }
 0x192   :  { %v1050_v42 = vadd.f32 %v2138_v9, %v982_v40 }
 0x193   :  { %v1019_v53 = vadd.f32 %v2138_v9, %v951_v48 }
 0x194   :  { %v1760_v45 = vpack.c.bf16 %v1050_v42, %v1049_v41 }
 0x195   :  { %v743_v46 = vpop.f32.mrf.mxu2 }
 0x196   :  { %1796 = vst [vmem:[%s2550_s4 + $0xf0] sm:$0xff] %v1760_v45   ;;  %v665_v47 = vpop.f32.mrf.mxu0  ;;  %v913_v52 = vadd.f32 %v912_v44, %v743_v46 }
 0x197   :  { %v835_v49 = vadd.f32 %v834_v39, %v665_v47  ;;  %v837_v50 = vpop.f32.mrf.mxu1 }
 0x198   :  { %v838_v55 = vadd.f32 %v837_v50, %v2132_v4  ;;  %v983_v59 = vmul.f32 %v2118_v63, %v913_v52 }
 0x199   :  { %v952_v51 = vmul.f32 %v2118_v63, %v835_v49 }
 0x19a   :  { %v953_v62 = vmul.f32 %v2118_v63, %v838_v55  ;;  %v1051_v2 = vadd.f32 %v2138_v9, %v983_v59 }
 0x19b   :  { %v1020_v54 = vadd.f32 %v2138_v9, %v952_v51 }
 0x19c   :  { %v1021_v5 = vadd.f32 %v2138_v9, %v953_v62 }
 0x19d   :  { %v1685_v56 = vpack.c.bf16 %v1020_v54, %v1019_v53  ;;  %v745_v58 = vpop.f32.mrf.mxu2 }
 0x19e   :  { %v915_v60 = vadd.f32 %v914_v57, %v745_v58 }
 0x19f   :  { %1781 = vst [vmem:[%s2550_s4 + $0x78] sm:$0xff] %v1685_v56   ;;  %v839_v61 = vpop.f32.mrf.mxu1 }
 0x1a0   :  { %v984_v0 = vmul.f32 %v2118_v63, %v915_v60  ;;  %v840_v1 = vadd.f32 %v839_v61, %v2157_v21 }
 0x1a2   :  { %v1052_v4 = vadd.f32 %v2138_v9, %v984_v0  ;;  %v954_v3 = vmul.f32 %v2118_v63, %v840_v1 }
 0x1a4   :  { %v1765_v6 = vpack.c.bf16 %v1052_v4, %v1051_v2  ;;  %v1022_v7 = vadd.f32 %v2138_v9, %v954_v3 }
 0x1a6   :  { %1797 = vst [vmem:[%s2550_s4 + $0xf8] sm:$0xff] %v1765_v6   ;;  %v1690_v8 = vpack.c.bf16 %v1022_v7, %v1021_v5 }
 0x1a8   :  { %1782 = vst [vmem:[%s2550_s4 + $0x80] sm:$0xff] %v1690_v8  }

// kernel: darknet_forward.19
= control target key start
LH: loop header
LB: loop body
LE: loop exit
PB: predicated region body
PF: predicated region fallthrough
CT: control target
= control target key end

     0   :  { %v37_v0 = vlaneseq  ;;  %v863_v2 = vmov 9.0   ;;  %v864_v7 = vmov 16.0   ;;  %v865_v8 = vmov 256.0   ;;  %s1670_s0 = inlined_call_operand.vmem [shape: bf16[112,128], index: 0, kind: input, shape index: {}]   ;;  %s1671_s1 = inlined_call_operand.vmem [shape: f32[112,128], index: 1, kind: output, shape index: {}]  }
   0x1   :  { %v760_v1 = vld [vmem:[%s1670_s0] sm:$0xff]   ;;  %799 = vrcp.f32 %v863_v2  ;;  %v787_v3 = vld [vmem:[%s1670_s0 + $0x8] sm:$0xff]   ;;  %v866_v12 = vmov 3.0   ;;  %v919_v54 = vld [vmem:[%s1670_s0 + $0x10] sm:$0xff]  }
   0x2   :  { %v761_v4 = vunpack.c.l.bf16 %v760_v1  ;;  %v885_v5 = vshrl.u32 %v37_v0, 7  ;;  %v887_v6 = vand.u32 127, %v37_v0  ;;  %801 = vrcp.f32 %v864_v7 }
   0x3   :  { %803 = vrcp.f32 %v865_v8  ;;  %v762_v9 = vunpack.c.h.bf16 %v760_v1  ;;  %v765_v10 = vunpack.c.l.bf16 %v787_v3  ;;  %v766_v21 = vunpack.c.h.bf16 %v787_v3 }
   0x4   :  { %v54_v11 = vmul.u32 128, %v885_v5  ;;  %805 = vrcp.f32 %v866_v12  ;;  %v629_v13 = vmul.f32 1.442695, %v761_v4  ;;  %v39_v14 = vadd.s32 8, %v885_v5 }
   0x5   :  { %v631_v15 = vmul.f32 1.442695, %v762_v9  ;;  %v40_v16 = vadd.s32 16, %v885_v5  ;;  %v633_v17 = vmul.f32 1.442695, %v765_v10  ;;  %v41_v18 = vadd.s32 24, %v885_v5 }
   0x6   :  { %v894_v19 = vadd.s32 %v54_v11, %v887_v6  ;;  %807 = vpow2.f32 %v629_v13  ;;  %v55_v20 = vmul.u32 128, %v39_v14  ;;  %v42_v25 = vadd.s32 32, %v885_v5 }
   0x7   :  { %v800_v22 = vpop.eup %799  ;;  %809 = vpow2.f32 %v631_v15  ;;  %v56_v23 = vmul.u32 128, %v40_v16  ;;  %v57_v24 = vmul.u32 128, %v41_v18  ;;  %v635_v44 = vmul.f32 1.442695, %v766_v21 }
   0x8   :  { %v802_v26 = vpop.eup %801  ;;  %v97_v27 = vcvt.s32.f32 %v894_v19  ;;  %v112_v28 = vmul.f32 9.0, %v800_v22  ;;  %vm116_vm0 = vweird.f32 %v800_v22  ;;  %v899_v29 = vadd.s32 %v55_v20, %v887_v6 }
   0x9   :  { %v804_v30 = vpop.eup %803  ;;  %v175_v31 = vmul.f32 16.0, %v802_v26  ;;  %vm179_vm1 = vweird.f32 %v802_v26  ;;  %v902_v32 = vadd.s32 %v56_v23, %v887_v6  ;;  %811 = vpow2.f32 %v633_v17 }
   0xa   :  { %v806_v33 = vpop.eup %805  ;;  %v113_v34 = vsub.f32 1.0, %v112_v28  ;;  %v294_v35 = vmul.f32 256.0, %v804_v30  ;;  %vm298_vm2 = vweird.f32 %v804_v30  ;;  %v98_v36 = vcvt.s32.f32 %v899_v29 }
   0xb   :  { %v176_v37 = vsub.f32 1.0, %v175_v31  ;;  %v329_v38 = vmul.f32 3.0, %v806_v33  ;;  %vm333_vm3 = vweird.f32 %v806_v33  ;;  %v99_v39 = vcvt.s32.f32 %v902_v32 }
   0xc   :  { %v906_v40 = vpop.eup %807  ;;  %v114_v41 = vmul.f32 %v800_v22, %v113_v34  ;;  %v295_v42 = vsub.f32 1.0, %v294_v35  ;;  %v909_v43 = vadd.s32 %v57_v24, %v887_v6  ;;  %v58_v49 = vmul.u32 128, %v42_v25 }
   0xd   :  { %v911_v45 = vpop.eup %809  ;;  %v177_v46 = vmul.f32 %v802_v26, %v176_v37  ;;  %v330_v47 = vsub.f32 1.0, %v329_v38  ;;  %v657_v48 = vadd.f32 1.0, %v906_v40  ;;  %v769_v1 = vunpack.c.l.bf16 %v919_v54 }
   0xe   :  { %v115_v50 = vadd.f32 %v800_v22, %v114_v41  ;;  %v296_v51 = vmul.f32 %v804_v30, %v295_v42  ;;  %v658_v52 = vadd.f32 1.0, %v911_v45  ;;  %v100_v53 = vcvt.s32.f32 %v909_v43 }
   0xf   :  { %v921_v55 = vpop.eup %811  ;;  %v178_v56 = vadd.f32 %v802_v26, %v177_v46  ;;  %v331_v57 = vmul.f32 %v806_v33, %v330_v47  ;;  %813 = vrcp.f32 %v657_v48  ;;  %v924_v58 = vadd.s32 %v58_v49, %v887_v6 }
  0x10   :  { %v927_v59 = vsel %vm116_vm0, %v800_v22, %v115_v50  ;;  %v297_v60 = vadd.f32 %v804_v30, %v296_v51  ;;  %815 = vrcp.f32 %v658_v52  ;;  %v659_v61 = vadd.f32 1.0, %v921_v55 }
  0x11   :  { %v118_v62 = vmul.f32 %v927_v59, %v97_v27  ;;  %v332_v63 = vadd.f32 %v806_v33, %v331_v57  ;;  %v119_v0 = vmul.f32 %v927_v59, %v98_v36  ;;  %v936_v2 = vsel %vm179_vm1, %v802_v26, %v178_v56 }
  0x12   :  { %v939_v3 = vsel %vm298_vm2, %v804_v30, %v297_v60  ;;  %v120_v4 = vmul.f32 %v927_v59, %v99_v39  ;;  %v121_v7 = vmul.f32 %v927_v59, %v100_v53  ;;  %817 = vrcp.f32 %v659_v61 }
  0x13   :  { %v947_v8 = vfloor.f32 %v118_v62  ;;  %v950_v9 = vsel %vm333_vm3, %v806_v33, %v332_v63  ;;  %v952_v10 = vfloor.f32 %v119_v0  ;;  %819 = vpow2.f32 %v635_v44 }
  0x14   :  { %v954_v11 = vfloor.f32 %v120_v4  ;;  %v956_v12 = vfloor.f32 %v121_v7  ;;  %v101_v13 = vcvt.s32.f32 %v924_v58  ;;  %v970_v24 = vmul.f32 1.442695, %v769_v1 }
  0x15   :  { %v814_v14 = vpop.eup %813  ;;  %v146_v15 = vmul.f32 9.0, %v947_v8  ;;  %v181_v16 = vmul.f32 %v936_v2, %v947_v8  ;;  %v300_v17 = vmul.f32 %v939_v3, %v947_v8  ;;  %v147_v18 = vmul.f32 9.0, %v952_v10 }
  0x16   :  { %v816_v20 = vpop.eup %815  ;;  %v182_v21 = vmul.f32 %v936_v2, %v952_v10  ;;  %v301_v22 = vmul.f32 %v939_v3, %v952_v10  ;;  %v148_v23 = vmul.f32 9.0, %v954_v11  ;;  %v685_v29 = vmul.f32 %v814_v14, %v906_v40 }
  0x17   :  { %v974_v25 = vsub.f32 %v97_v27, %v146_v15  ;;  %v195_v26 = vfloor.f32 %v181_v16  ;;  %v314_v28 = vfloor.f32 %v300_v17  ;;  %v977_v30 = vsub.f32 %v98_v36, %v147_v18 }
  0x18   :  { %v196_v31 = vfloor.f32 %v182_v21  ;;  %v315_v33 = vfloor.f32 %v301_v22  ;;  %v980_v34 = vmul.f32 %v816_v20, %v911_v45  ;;  %v982_v35 = vpop.eup %817  ;;  %v988_v27 = vsub.f32 %v99_v39, %v148_v23 }
  0x19   :  { %v209_v37 = vmul.f32 16.0, %v195_v26  ;;  %v237_v38 = vmul.f32 %v195_v26, %v936_v2  ;;  %v335_v19 = vmul.f32 %v950_v9, %v314_v28  ;;  %v990_v41 = vpop.eup %819  ;;  %vm475_vm4 = vcmp.eq.f32.partialorder %v974_v25, 0.0 }
  0x1a   :  { %vm489_vm5 = vcmp.eq.f32.partialorder %v974_v25, 1.0  ;;  %vm545_vm6 = vcmp.eq.f32.partialorder %v974_v25, 2.0  ;;  %vm559_vm7 = vcmp.eq.f32.partialorder %v974_v25, 3.0  ;;  %vm531_vm8 = vcmp.lt.f32.partialorder %v974_v25, 2.0 }
  0x1b   :  { %v251_v36 = vfloor.f32 %v237_v38  ;;  %v349_v42 = vfloor.f32 %v335_v19  ;;  %vm1001_vm9 = vmor %vm545_vm6, %vm559_vm7  ;;  %v210_v39 = vmul.f32 16.0, %v196_v31  ;;  %v223_v44 = vsub.f32 %v947_v8, %v209_v37 }
  0x1c   :  { %v699_v46 = vsel %vm1001_vm9, %v906_v40, %v685_v29  ;;  %v238_v47 = vmul.f32 %v196_v31, %v936_v2  ;;  %v336_v48 = vmul.f32 %v950_v9, %v315_v33  ;;  %vm476_vm10 = vcmp.eq.f32.partialorder %v977_v30, 0.0 }
  0x1d   :  { %v265_v49 = vmul.f32 16.0, %v251_v36  ;;  %v363_v50 = vmul.f32 3.0, %v349_v42  ;;  %v224_v51 = vsub.f32 %v952_v10, %v210_v39  ;;  %vm490_vm11 = vcmp.eq.f32.partialorder %v977_v30, 1.0 }
  0x1e   :  { %v252_v52 = vfloor.f32 %v238_v47  ;;  %v350_v56 = vfloor.f32 %v336_v48  ;;  %vm546_vm12 = vcmp.eq.f32.partialorder %v977_v30, 2.0  ;;  %vm532_vm13 = vcmp.lt.f32.partialorder %v977_v30, 2.0 }
  0x1f   :  { %v279_v57 = vsub.f32 %v195_v26, %v265_v49  ;;  %v377_v60 = vsub.f32 %v314_v28, %v363_v50  ;;  %vm560_vm14 = vcmp.eq.f32.partialorder %v977_v30, 3.0  ;;  %v183_v63 = vmul.f32 %v936_v2, %v954_v11 }
  0x20   :  { %v266_v40 = vmul.f32 16.0, %v252_v52  ;;  %v364_v61 = vmul.f32 3.0, %v350_v56  ;;  %vm1021_vm15 = vmor %vm546_vm12, %vm560_vm14  ;;  %v302_v0 = vmul.f32 %v939_v3, %v954_v11  ;;  %v867_v7 = vmov 30.0  }
  0x21   :  { %vm391_vm0 = vcmp.eq.f32.partialorder %v377_v60, 1.0  ;;  %vm433_vm1 = vcmp.eq.f32.partialorder %v377_v60, 2.0  ;;  %v503_v1 = vsel %vm489_vm5, %v279_v57, 0.0  ;;  %v700_v4 = vsel %vm1021_vm15, %v911_v45, %v980_v34 }
  0x22   :  { %v405_v8 = vsel %vm391_vm0, 62.0, %v867_v7  ;;  %v868_v10 = vmov 61.0   ;;  %v517_v15 = vsel %vm475_vm4, %v223_v44, %v503_v1  ;;  %v280_v16 = vsub.f32 %v196_v31, %v266_v40 }
  0x23   :  { %v419_v14 = vsel %vm391_vm0, 45.0, %v868_v10  ;;  %v447_v17 = vsel %vm433_vm1, 59.0, %v405_v8  ;;  %v713_v20 = vadd.f32 %v699_v46, %v517_v15  ;;  %v378_v21 = vsub.f32 %v315_v33, %v364_v61 }
  0x24   :  { %v461_v18 = vsel %vm433_vm1, 119.0, %v419_v14  ;;  %v504_v45 = vsel %vm490_vm11, %v280_v16, 0.0  ;;  %v197_v23 = vfloor.f32 %v183_v63  ;;  %v316_v26 = vfloor.f32 %v302_v0 }
  0x25   :  { %v573_v22 = vsel %vm559_vm7, %v461_v18, 1.0  ;;  %vm392_vm2 = vcmp.eq.f32.partialorder %v378_v21, 1.0  ;;  %vm434_vm3 = vcmp.eq.f32.partialorder %v378_v21, 2.0  ;;  %v518_v29 = vsel %vm476_vm10, %v224_v51, %v504_v45 }
  0x26   :  { %v587_v28 = vsel %vm545_vm6, %v447_v17, %v573_v22  ;;  %v406_v33 = vsel %vm392_vm2, 62.0, %v867_v7  ;;  %v420_v34 = vsel %vm392_vm2, 45.0, %v868_v10  ;;  %v714_v37 = vadd.f32 %v700_v4, %v518_v29 }
  0x27   :  { %v601_v31 = vsel %vm531_vm8, 1.0, %v587_v28  ;;  %v448_v19 = vsel %vm434_vm3, 59.0, %v406_v33  ;;  %v462_v36 = vsel %vm434_vm3, 119.0, %v420_v34  ;;  %v211_v42 = vmul.f32 16.0, %v197_v23 }
  0x28   :  { %v727_v38 = vmul.f32 %v713_v20, %v601_v31  ;;  %v574_v32 = vsel %vm560_vm14, %v462_v36, 1.0  ;;  %v239_v39 = vmul.f32 %v197_v23, %v936_v2  ;;  %v337_v44 = vmul.f32 %v950_v9, %v316_v26 }
  0x29   :  { %vm477_vm4 = vcmp.eq.f32.partialorder %v988_v27, 0.0  ;;  %v588_v25 = vsel %vm546_vm12, %v448_v19, %v574_v32  ;;  %v225_v46 = vsub.f32 %v954_v11, %v211_v42  ;;  %vm491_vm5 = vcmp.eq.f32.partialorder %v988_v27, 1.0 }
  0x2a   :  { %741 = vst [vmem:[%s1671_s1] sm:$0xff] %v727_v38  ;;  %vm547_vm6 = vcmp.eq.f32.partialorder %v988_v27, 2.0  ;;  %v602_v47 = vsel %vm532_vm13, 1.0, %v588_v25  ;;  %v253_v48 = vfloor.f32 %v239_v39  ;;  %v351_v49 = vfloor.f32 %v337_v44 }
  0x2b   :  { %vm561_vm7 = vcmp.eq.f32.partialorder %v988_v27, 3.0  ;;  %v728_v50 = vmul.f32 %v714_v37, %v602_v47  ;;  %v687_v11 = vmul.f32 %v982_v35, %v921_v55  ;;  %v149_v52 = vmul.f32 9.0, %v956_v12 }
  0x2c   :  { %vm1071_vm8 = vmor %vm547_vm6, %vm561_vm7  ;;  %v184_v30 = vmul.f32 %v936_v2, %v956_v12  ;;  %v267_v56 = vmul.f32 16.0, %v253_v48  ;;  %v365_v57 = vmul.f32 3.0, %v351_v49  ;;  %v303_v60 = vmul.f32 %v939_v3, %v956_v12 }
  0x2d   :  { %v660_v40 = vadd.f32 1.0, %v990_v41  ;;  %742 = vst [vmem:[%s1671_s1 + $0x8] sm:$0xff] %v728_v50  ;;  %vm533_vm9 = vcmp.lt.f32.partialorder %v988_v27, 2.0  ;;  %v701_v35 = vsel %vm1071_vm8, %v921_v55, %v687_v11  ;;  %v1092_v61 = vsub.f32 %v100_v53, %v149_v52 }
  0x2e   :  { %v198_v62 = vfloor.f32 %v184_v30  ;;  %v281_v63 = vsub.f32 %v197_v23, %v267_v56  ;;  %v379_v0 = vsub.f32 %v316_v26, %v365_v57  ;;  %v317_v1 = vfloor.f32 %v303_v60 }
  0x2f   :  { %821 = vrcp.f32 %v660_v40  ;;  %vm478_vm10 = vcmp.eq.f32.partialorder %v1092_v61, 0.0  ;;  %v122_v14 = vmul.f32 %v927_v59, %v101_v13  ;;  %vm492_vm13 = vcmp.eq.f32.partialorder %v1092_v61, 1.0 }
  0x30   :  { %v212_v4 = vmul.f32 16.0, %v198_v62  ;;  %v240_v8 = vmul.f32 %v198_v62, %v936_v2  ;;  %vm393_vm11 = vcmp.eq.f32.partialorder %v379_v0, 1.0  ;;  %vm435_vm12 = vcmp.eq.f32.partialorder %v379_v0, 2.0 }
  0x31   :  { %v505_v43 = vsel %vm491_vm5, %v281_v63, 0.0  ;;  %v338_v53 = vmul.f32 %v950_v9, %v317_v1  ;;  %v407_v55 = vsel %vm393_vm11, 62.0, %v867_v7  ;;  %v421_v15 = vsel %vm393_vm11, 45.0, %v868_v10  ;;  %v789_v63 = vld [vmem:[%s1670_s0 + $0x18] sm:$0xff]  }
  0x32   :  { %v519_v16 = vsel %vm477_vm4, %v225_v46, %v505_v43  ;;  %v449_v17 = vsel %vm435_vm12, 59.0, %v407_v55  ;;  %v463_v18 = vsel %vm435_vm12, 119.0, %v421_v15  ;;  %v254_v21 = vfloor.f32 %v240_v8 }
  0x33   :  { %v715_v20 = vadd.f32 %v701_v35, %v519_v16  ;;  %v575_v22 = vsel %vm561_vm7, %v463_v18, 1.0  ;;  %v226_v45 = vsub.f32 %v956_v12, %v212_v4  ;;  %v352_v23 = vfloor.f32 %v338_v53 }
  0x34   :  { %vm548_vm14 = vcmp.eq.f32.partialorder %v1092_v61, 2.0  ;;  %v589_v28 = vsel %vm547_vm6, %v449_v17, %v575_v22  ;;  %v268_v29 = vmul.f32 16.0, %v254_v21  ;;  %vm562_vm15 = vcmp.eq.f32.partialorder %v1092_v61, 3.0 }
  0x35   :  { %v822_v26 = vpop.eup %821  ;;  %v1114_v31 = vfloor.f32 %v122_v14  ;;  %v603_v33 = vsel %vm533_vm9, 1.0, %v589_v28  ;;  %v366_v34 = vmul.f32 3.0, %v352_v23  ;;  %vm1122_vm0 = vmor %vm548_vm14, %vm562_vm15  ;;  %823 = vpow2.f32 %v970_v24 }
  0x36   :  { %v688_v37 = vmul.f32 %v822_v26, %v990_v41  ;;  %v729_v38 = vmul.f32 %v715_v20, %v603_v33  ;;  %v282_v19 = vsub.f32 %v198_v62, %v268_v29  ;;  %vm534_vm1 = vcmp.lt.f32.partialorder %v1092_v61, 2.0 }
  0x37   :  { %v150_v36 = vmul.f32 9.0, %v1114_v31  ;;  %v185_v27 = vmul.f32 %v936_v2, %v1114_v31  ;;  %v380_v42 = vsub.f32 %v317_v1, %v366_v34  ;;  %v304_v39 = vmul.f32 %v939_v3, %v1114_v31 }
  0x38   :  { %v702_v32 = vsel %vm1122_vm0, %v990_v41, %v688_v37  ;;  %743 = vst [vmem:[%s1671_s1 + $0x10] sm:$0xff] %v729_v38  ;;  %v506_v24 = vsel %vm492_vm13, %v282_v19, 0.0  ;;  %v43_v46 = vadd.s32 40, %v885_v5  ;;  %v770_v60 = vunpack.c.h.bf16 %v919_v54 }
  0x39   :  { %v1144_v44 = vsub.f32 %v101_v13, %v150_v36  ;;  %v199_v25 = vfloor.f32 %v185_v27  ;;  %vm394_vm2 = vcmp.eq.f32.partialorder %v380_v42, 1.0  ;;  %vm436_vm3 = vcmp.eq.f32.partialorder %v380_v42, 2.0 }
  0x3a   :  { %v520_v41 = vsel %vm478_vm10, %v226_v45, %v506_v24  ;;  %v318_v47 = vfloor.f32 %v304_v39  ;;  %v408_v48 = vsel %vm394_vm2, 62.0, %v867_v7  ;;  %v422_v49 = vsel %vm394_vm2, 45.0, %v868_v10  ;;  %v1204_v24 = vld [vmem:[%s1670_s0 + $0x20] sm:$0xff]  }
  0x3b   :  { %v716_v50 = vadd.f32 %v702_v32, %v520_v41  ;;  %v213_v51 = vmul.f32 16.0, %v199_v25  ;;  %v1151_v11 = vpop.eup %823  ;;  %v450_v58 = vsel %vm436_vm3, 59.0, %v408_v48  ;;  %v464_v13 = vsel %vm436_vm3, 119.0, %v422_v49 }
  0x3c   :  { %v241_v52 = vmul.f32 %v199_v25, %v936_v2  ;;  %v339_v30 = vmul.f32 %v950_v9, %v318_v47  ;;  %v576_v56 = vsel %vm562_vm15, %v464_v13, 1.0  ;;  %vm479_vm4 = vcmp.eq.f32.partialorder %v1144_v44, 0.0 }
  0x3d   :  { %v227_v57 = vsub.f32 %v1114_v31, %v213_v51  ;;  %v590_v40 = vsel %vm548_vm14, %v450_v58, %v576_v56  ;;  %vm493_vm5 = vcmp.eq.f32.partialorder %v1144_v44, 1.0  ;;  %vm549_vm6 = vcmp.eq.f32.partialorder %v1144_v44, 2.0 }
  0x3e   :  { %v255_v35 = vfloor.f32 %v241_v52  ;;  %v353_v62 = vfloor.f32 %v339_v30  ;;  %v604_v0 = vsel %vm534_vm1, 1.0, %v590_v40  ;;  %vm563_vm7 = vcmp.eq.f32.partialorder %v1144_v44, 3.0 }
  0x3f   :  { %v661_v54 = vadd.f32 1.0, %v1151_v11  ;;  %v730_v1 = vmul.f32 %v716_v50, %v604_v0  ;;  %v59_v14 = vmul.u32 128, %v43_v46  ;;  %v639_v43 = vmul.f32 1.442695, %v770_v60  ;;  %vm1192_vm11 = vmor %vm549_vm6, %vm563_vm7 }
  0x40   :  { %v269_v4 = vmul.f32 16.0, %v255_v35  ;;  %v367_v8 = vmul.f32 3.0, %v353_v62  ;;  %v773_v53 = vunpack.c.l.bf16 %v789_v63  ;;  %v44_v55 = vadd.s32 48, %v885_v5 }
  0x41   :  { %825 = vrcp.f32 %v661_v54  ;;  %744 = vst [vmem:[%s1671_s1 + $0x18] sm:$0xff] %v730_v1  ;;  %v88_v16 = vadd.s32 %v59_v14, %v887_v6  ;;  %v774_v17 = vunpack.c.h.bf16 %v789_v63  ;;  %v45_v21 = vadd.s32 56, %v885_v5 }
  0x42   :  { %v283_v61 = vsub.f32 %v199_v25, %v269_v4  ;;  %v381_v15 = vsub.f32 %v318_v47, %v367_v8  ;;  %827 = vpow2.f32 %v639_v43  ;;  %v60_v18 = vmul.u32 128, %v44_v55 }
  0x43   :  { %v641_v20 = vmul.f32 1.442695, %v773_v53  ;;  %v102_v45 = vcvt.s32.f32 %v88_v16  ;;  %vm535_vm10 = vcmp.lt.f32.partialorder %v1144_v44, 2.0  ;;  %v61_v36 = vmul.u32 128, %v45_v21 }
  0x44   :  { %vm395_vm8 = vcmp.eq.f32.partialorder %v381_v15, 1.0  ;;  %vm437_vm9 = vcmp.eq.f32.partialorder %v381_v15, 2.0  ;;  %v507_v22 = vsel %vm493_vm5, %v283_v61, 0.0  ;;  %v89_v28 = vadd.s32 %v60_v18, %v887_v6 }
  0x45   :  { %v409_v23 = vsel %vm395_vm8, 62.0, %v867_v7  ;;  %v423_v26 = vsel %vm395_vm8, 45.0, %v868_v10  ;;  %v521_v33 = vsel %vm479_vm4, %v227_v57, %v507_v22  ;;  %v123_v34 = vmul.f32 %v927_v59, %v102_v45 }
  0x46   :  { %v451_v29 = vsel %vm437_vm9, 59.0, %v409_v23  ;;  %v465_v31 = vsel %vm437_vm9, 119.0, %v423_v26  ;;  %v103_v19 = vcvt.s32.f32 %v89_v28  ;;  %829 = vpow2.f32 %v641_v20 }
  0x47   :  { %v826_v12 = vpop.eup %825  ;;  %v577_v37 = vsel %vm563_vm7, %v465_v31, 1.0  ;;  %v1199_v32 = vfloor.f32 %v123_v34  ;;  %v643_v39 = vmul.f32 1.442695, %v774_v17  ;;  %v1212_v47 = vadd.s32 %v61_v36, %v887_v6 }
  0x48   :  { %v591_v27 = vsel %vm549_vm6, %v451_v29, %v577_v37  ;;  %v689_v42 = vmul.f32 %v826_v12, %v1151_v11  ;;  %v1206_v25 = vpop.eup %827  ;;  %v124_v41 = vmul.f32 %v927_v59, %v103_v19  ;;  %v777_v52 = vunpack.c.l.bf16 %v1204_v24 }
  0x49   :  { %v605_v46 = vsel %vm535_vm10, 1.0, %v591_v27  ;;  %v151_v49 = vmul.f32 9.0, %v1199_v32  ;;  %v186_v50 = vmul.f32 %v936_v2, %v1199_v32  ;;  %v305_v51 = vmul.f32 %v939_v3, %v1199_v32 }
  0x4a   :  { %v703_v48 = vsel %vm1192_vm11, %v1151_v11, %v689_v42  ;;  %v662_v44 = vadd.f32 1.0, %v1206_v25  ;;  %v1223_v13 = vfloor.f32 %v124_v41  ;;  %831 = vpow2.f32 %v643_v39 }
  0x4b   :  { %v717_v58 = vadd.f32 %v703_v48, %v521_v33  ;;  %v1226_v30 = vsub.f32 %v102_v45, %v151_v49  ;;  %v200_v56 = vfloor.f32 %v186_v50  ;;  %v319_v57 = vfloor.f32 %v305_v51 }
  0x4c   :  { %v1228_v11 = vpop.eup %829  ;;  %833 = vrcp.f32 %v662_v44  ;;  %v152_v40 = vmul.f32 9.0, %v1223_v13  ;;  %v187_v35 = vmul.f32 %v936_v2, %v1223_v13  ;;  %v104_v54 = vcvt.s32.f32 %v1212_v47 }
  0x4d   :  { %v731_v60 = vmul.f32 %v717_v58, %v605_v46  ;;  %v214_v62 = vmul.f32 16.0, %v200_v56  ;;  %v242_v63 = vmul.f32 %v200_v56, %v936_v2  ;;  %v340_v0 = vmul.f32 %v950_v9, %v319_v57 }
  0x4e   :  { %vm480_vm12 = vcmp.eq.f32.partialorder %v1226_v30, 0.0  ;;  %vm494_vm13 = vcmp.eq.f32.partialorder %v1226_v30, 1.0  ;;  %vm550_vm14 = vcmp.eq.f32.partialorder %v1226_v30, 2.0  ;;  %v46_v1 = vadd.s32 64, %v885_v5 }
  0x4f   :  { %745 = vst [vmem:[%s1671_s1 + $0x20] sm:$0xff] %v731_v60  ;;  %v256_v4 = vfloor.f32 %v242_v63  ;;  %v354_v8 = vfloor.f32 %v340_v0  ;;  %vm536_vm15 = vcmp.lt.f32.partialorder %v1226_v30, 2.0  ;;  %vm564_vm0 = vcmp.eq.f32.partialorder %v1226_v30, 3.0 }
  0x50   :  { %v1245_v14 = vsub.f32 %v103_v19, %v152_v40  ;;  %v228_v43 = vsub.f32 %v1199_v32, %v214_v62  ;;  %v201_v53 = vfloor.f32 %v187_v35  ;;  %v306_v55 = vmul.f32 %v939_v3, %v1223_v13  ;;  %v1251_v15 = vpop.eup %831  ;;  %vm1261_vm2 = vmor %vm550_vm14, %vm564_vm0 }
  0x51   :  { %v663_v61 = vadd.f32 1.0, %v1228_v11  ;;  %v270_v16 = vmul.f32 16.0, %v256_v4  ;;  %v368_v17 = vmul.f32 3.0, %v354_v8  ;;  %v125_v18 = vmul.f32 %v927_v59, %v104_v54 }
  0x52   :  { %vm481_vm1 = vcmp.eq.f32.partialorder %v1245_v14, 0.0  ;;  %v834_v20 = vpop.eup %833  ;;  %v215_v22 = vmul.f32 16.0, %v201_v53  ;;  %v243_v45 = vmul.f32 %v201_v53, %v936_v2  ;;  %v320_v23 = vfloor.f32 %v306_v55 }
  0x53   :  { %vm495_vm3 = vcmp.eq.f32.partialorder %v1245_v14, 1.0  ;;  %v284_v26 = vsub.f32 %v200_v56, %v270_v16  ;;  %v382_v28 = vsub.f32 %v319_v57, %v368_v17  ;;  %v690_v29 = vmul.f32 %v834_v20, %v1206_v25 }
  0x54   :  { %vm551_vm4 = vcmp.eq.f32.partialorder %v1245_v14, 2.0  ;;  %v229_v31 = vsub.f32 %v1223_v13, %v215_v22  ;;  %v257_v33 = vfloor.f32 %v243_v45  ;;  %v341_v34 = vmul.f32 %v950_v9, %v320_v23 }
  0x55   :  { %vm565_vm5 = vcmp.eq.f32.partialorder %v1245_v14, 3.0  ;;  %vm396_vm6 = vcmp.eq.f32.partialorder %v382_v28, 1.0  ;;  %vm438_vm7 = vcmp.eq.f32.partialorder %v382_v28, 2.0  ;;  %v508_v12 = vsel %vm494_vm13, %v284_v26, 0.0 }
  0x56   :  { %v704_v37 = vsel %vm1261_vm2, %v1206_v25, %v690_v29  ;;  %v410_v38 = vsel %vm396_vm6, 62.0, %v867_v7  ;;  %v424_v19 = vsel %vm396_vm6, 45.0, %v868_v10  ;;  %v522_v36 = vsel %vm480_vm12, %v228_v43, %v508_v12  ;;  %vm1318_vm11 = vmor %vm551_vm4, %vm565_vm5 }
  0x57   :  { %v271_v27 = vmul.f32 16.0, %v257_v33  ;;  %v452_v42 = vsel %vm438_vm7, 59.0, %v410_v38  ;;  %v466_v32 = vsel %vm438_vm7, 119.0, %v424_v19  ;;  %v718_v39 = vadd.f32 %v704_v37, %v522_v36 }
  0x58   :  { %v355_v46 = vfloor.f32 %v341_v34  ;;  %vm537_vm8 = vcmp.lt.f32.partialorder %v1245_v14, 2.0  ;;  %v578_v41 = vsel %vm564_vm0, %v466_v32, 1.0  ;;  %835 = vrcp.f32 %v663_v61 }
  0x59   :  { %v285_v48 = vsub.f32 %v201_v53, %v271_v27  ;;  %v1284_v25 = vfloor.f32 %v125_v18  ;;  %v592_v49 = vsel %vm550_vm14, %v452_v42, %v578_v41  ;;  %v664_v51 = vadd.f32 1.0, %v1251_v15 }
  0x5a   :  { %v369_v50 = vmul.f32 3.0, %v355_v46  ;;  %v62_v58 = vmul.u32 128, %v46_v1  ;;  %v606_v44 = vsel %vm536_vm15, 1.0, %v592_v49  ;;  %v645_v4 = vmul.f32 1.442695, %v777_v52 }
  0x5b   :  { %v509_v13 = vsel %vm495_vm3, %v285_v48, 0.0  ;;  %v153_v56 = vmul.f32 9.0, %v1284_v25  ;;  %v188_v57 = vmul.f32 %v936_v2, %v1284_v25  ;;  %v732_v60 = vmul.f32 %v718_v39, %v606_v44 }
  0x5c   :  { %v383_v40 = vsub.f32 %v320_v23, %v369_v50  ;;  %v523_v35 = vsel %vm481_vm1, %v229_v31, %v509_v13  ;;  %v307_v62 = vmul.f32 %v939_v3, %v1284_v25  ;;  %837 = vrcp.f32 %v664_v51 }
  0x5d   :  { %v1302_v30 = vsub.f32 %v104_v54, %v153_v56  ;;  %v202_v63 = vfloor.f32 %v188_v57  ;;  %v1305_v0 = vadd.s32 %v62_v58, %v887_v6  ;;  %746 = vst [vmem:[%s1671_s1 + $0x28] sm:$0xff] %v732_v60  ;;  %839 = vpow2.f32 %v645_v4 }
  0x5e   :  { %vm397_vm9 = vcmp.eq.f32.partialorder %v383_v40, 1.0  ;;  %vm439_vm10 = vcmp.eq.f32.partialorder %v383_v40, 2.0  ;;  %v321_v1 = vfloor.f32 %v307_v62  ;;  %v836_v8 = vpop.eup %835  ;;  %v778_v27 = vunpack.c.h.bf16 %v1204_v24 }
  0x5f   :  { %v411_v47 = vsel %vm397_vm9, 62.0, %v867_v7  ;;  %v425_v54 = vsel %vm397_vm9, 45.0, %v868_v10  ;;  %v216_v53 = vmul.f32 16.0, %v202_v63  ;;  %v244_v55 = vmul.f32 %v202_v63, %v936_v2 }
  0x60   :  { %v453_v61 = vsel %vm439_vm10, 59.0, %v411_v47  ;;  %v467_v16 = vsel %vm439_vm10, 119.0, %v425_v54  ;;  %v691_v52 = vmul.f32 %v836_v8, %v1228_v11  ;;  %v342_v17 = vmul.f32 %v950_v9, %v321_v1 }
  0x61   :  { %v579_v18 = vsel %vm565_vm5, %v467_v16, 1.0  ;;  %v230_v20 = vsub.f32 %v1284_v25, %v216_v53  ;;  %v258_v21 = vfloor.f32 %v244_v55  ;;  %vm482_vm12 = vcmp.eq.f32.partialorder %v1302_v30, 0.0 }
  0x62   :  { %v593_v22 = vsel %vm551_vm4, %v453_v61, %v579_v18  ;;  %v705_v45 = vsel %vm1318_vm11, %v1228_v11, %v691_v52  ;;  %v356_v23 = vfloor.f32 %v342_v17  ;;  %vm496_vm13 = vcmp.eq.f32.partialorder %v1302_v30, 1.0  ;;  %v838_v26 = vpop.eup %837  ;;  %v1344_v11 = vld [vmem:[%s1670_s0 + $0x28] sm:$0xff]  }
  0x63   :  { %v607_v28 = vsel %vm537_vm8, 1.0, %v593_v22  ;;  %v719_v29 = vadd.f32 %v705_v45, %v523_v35  ;;  %v272_v31 = vmul.f32 16.0, %v258_v21  ;;  %vm538_vm14 = vcmp.lt.f32.partialorder %v1302_v30, 2.0  ;;  %v1375_v56 = vpop.eup %839 }
  0x64   :  { %v370_v33 = vmul.f32 3.0, %v356_v23  ;;  %vm552_vm15 = vcmp.eq.f32.partialorder %v1302_v30, 2.0  ;;  %vm566_vm0 = vcmp.eq.f32.partialorder %v1302_v30, 3.0  ;;  %v692_v34 = vmul.f32 %v838_v26, %v1251_v15 }
  0x65   :  { %v733_v12 = vmul.f32 %v719_v29, %v607_v28  ;;  %v286_v37 = vsub.f32 %v202_v63, %v272_v31  ;;  %vm1350_vm1 = vmor %vm552_vm15, %vm566_vm0  ;;  %v105_v38 = vcvt.s32.f32 %v1305_v0  ;;  %v47_v42 = vadd.s32 72, %v885_v5 }
  0x66   :  { %v384_v19 = vsub.f32 %v321_v1, %v370_v33  ;;  %v706_v36 = vsel %vm1350_vm1, %v1251_v15, %v692_v34  ;;  %v781_v46 = vunpack.c.l.bf16 %v1344_v11  ;;  %v48_v41 = vadd.s32 80, %v885_v5 }
  0x67   :  { %747 = vst [vmem:[%s1671_s1 + $0x30] sm:$0xff] %v733_v12  ;;  %v510_v32 = vsel %vm496_vm13, %v286_v37, 0.0  ;;  %v126_v39 = vmul.f32 %v927_v59, %v105_v38  ;;  %v63_v15 = vmul.u32 128, %v47_v42  ;;  %v647_v13 = vmul.f32 1.442695, %v778_v27 }
  0x68   :  { %vm398_vm2 = vcmp.eq.f32.partialorder %v384_v19, 1.0  ;;  %vm440_vm3 = vcmp.eq.f32.partialorder %v384_v19, 2.0  ;;  %v524_v24 = vsel %vm482_vm12, %v230_v20, %v510_v32  ;;  %v665_v63 = vadd.f32 1.0, %v1375_v56 }
  0x69   :  { %v412_v48 = vsel %vm398_vm2, 62.0, %v867_v7  ;;  %v426_v25 = vsel %vm398_vm2, 45.0, %v868_v10  ;;  %v720_v49 = vadd.f32 %v706_v36, %v524_v24  ;;  %v1372_v50 = vfloor.f32 %v126_v39 }
  0x6a   :  { %v454_v51 = vsel %vm440_vm3, 59.0, %v412_v48  ;;  %v468_v58 = vsel %vm440_vm3, 119.0, %v426_v25  ;;  %v92_v44 = vadd.s32 %v63_v15, %v887_v6  ;;  %841 = vpow2.f32 %v647_v13 }
  0x6b   :  { %v580_v57 = vsel %vm566_vm0, %v468_v58, 1.0  ;;  %v154_v60 = vmul.f32 9.0, %v1372_v50  ;;  %v189_v40 = vmul.f32 %v936_v2, %v1372_v50  ;;  %v308_v35 = vmul.f32 %v939_v3, %v1372_v50 }
  0x6c   :  { %v594_v62 = vsel %vm552_vm15, %v454_v51, %v580_v57  ;;  %v106_v0 = vcvt.s32.f32 %v92_v44  ;;  %843 = vrcp.f32 %v665_v63  ;;  %v64_v53 = vmul.u32 128, %v48_v41 }
  0x6d   :  { %v608_v1 = vsel %vm538_vm14, 1.0, %v594_v62  ;;  %v1389_v4 = vsub.f32 %v105_v38, %v154_v60  ;;  %v203_v8 = vfloor.f32 %v189_v40  ;;  %v322_v47 = vfloor.f32 %v308_v35 }
  0x6e   :  { %v734_v54 = vmul.f32 %v720_v49, %v608_v1  ;;  %v127_v43 = vmul.f32 %v927_v59, %v106_v0  ;;  %v1408_v21 = vadd.s32 %v64_v53, %v887_v6  ;;  %v649_v22 = vmul.f32 1.442695, %v781_v46 }
  0x6f   :  { %v217_v55 = vmul.f32 16.0, %v203_v8  ;;  %v245_v61 = vmul.f32 %v203_v8, %v936_v2  ;;  %v343_v16 = vmul.f32 %v950_v9, %v322_v47  ;;  %vm483_vm4 = vcmp.eq.f32.partialorder %v1389_v4, 0.0 }
  0x70   :  { %748 = vst [vmem:[%s1671_s1 + $0x38] sm:$0xff] %v734_v54  ;;  %vm497_vm5 = vcmp.eq.f32.partialorder %v1389_v4, 1.0  ;;  %vm553_vm6 = vcmp.eq.f32.partialorder %v1389_v4, 2.0  ;;  %vm539_vm7 = vcmp.lt.f32.partialorder %v1389_v4, 2.0  ;;  %vm567_vm8 = vcmp.eq.f32.partialorder %v1389_v4, 3.0  ;;  %v1404_v18 = vpop.eup %841 }
  0x71   :  { %v259_v30 = vfloor.f32 %v245_v61  ;;  %v357_v52 = vfloor.f32 %v343_v16  ;;  %v1402_v17 = vfloor.f32 %v127_v43  ;;  %v231_v20 = vsub.f32 %v1372_v50, %v217_v55  ;;  %vm1418_vm9 = vmor %vm553_vm6, %vm567_vm8 }
  0x72   :  { %v782_v45 = vunpack.c.h.bf16 %v1344_v11  ;;  %v844_v31 = vpop.eup %843  ;;  %v666_v11 = vadd.f32 1.0, %v1404_v18  ;;  %v107_v12 = vcvt.s32.f32 %v1408_v21  ;;  %845 = vpow2.f32 %v649_v22 }
  0x73   :  { %v273_v23 = vmul.f32 16.0, %v259_v30  ;;  %v371_v26 = vmul.f32 3.0, %v357_v52  ;;  %v155_v28 = vmul.f32 9.0, %v1402_v17  ;;  %v190_v29 = vmul.f32 %v936_v2, %v1402_v17 }
  0x74   :  { %v309_v34 = vmul.f32 %v939_v3, %v1402_v17  ;;  %v693_v38 = vmul.f32 %v844_v31, %v1375_v56  ;;  %847 = vrcp.f32 %v666_v11  ;;  %v128_v42 = vmul.f32 %v927_v59, %v107_v12 }
  0x75   :  { %v287_v37 = vsub.f32 %v203_v8, %v273_v23  ;;  %v385_v14 = vsub.f32 %v322_v47, %v371_v26  ;;  %v1427_v19 = vsub.f32 %v106_v0, %v155_v28  ;;  %v204_v36 = vfloor.f32 %v190_v29 }
  0x76   :  { %v323_v27 = vfloor.f32 %v309_v34  ;;  %v707_v39 = vsel %vm1418_vm9, %v1375_v56, %v693_v38  ;;  %v49_v56 = vadd.s32 88, %v885_v5  ;;  %v1465_v8 = vfloor.f32 %v128_v42 }
  0x77   :  { %vm399_vm10 = vcmp.eq.f32.partialorder %v385_v14, 1.0  ;;  %vm441_vm11 = vcmp.eq.f32.partialorder %v385_v14, 2.0  ;;  %v511_v32 = vsel %vm497_vm5, %v287_v37, 0.0  ;;  %v218_v15 = vmul.f32 16.0, %v204_v36 }
  0x78   :  { %v413_v46 = vsel %vm399_vm10, 62.0, %v867_v7  ;;  %v427_v41 = vsel %vm399_vm10, 45.0, %v868_v10  ;;  %v525_v24 = vsel %vm483_vm4, %v231_v20, %v511_v32  ;;  %v246_v50 = vmul.f32 %v204_v36, %v936_v2  ;;  %v1440_v51 = vpop.eup %845  ;;  %v1503_v32 = vld [vmem:[%s1670_s0 + $0x30] sm:$0xff]  }
  0x79   :  { %v455_v48 = vsel %vm441_vm11, 59.0, %v413_v46  ;;  %v469_v25 = vsel %vm441_vm11, 119.0, %v427_v41  ;;  %v721_v49 = vadd.f32 %v707_v39, %v525_v24  ;;  %v232_v44 = vsub.f32 %v1402_v17, %v218_v15 }
  0x7a   :  { %v581_v58 = vsel %vm567_vm8, %v469_v25, 1.0  ;;  %v344_v13 = vmul.f32 %v950_v9, %v323_v27  ;;  %v260_v60 = vfloor.f32 %v246_v50  ;;  %vm484_vm12 = vcmp.eq.f32.partialorder %v1427_v19, 0.0  ;;  %v848_v40 = vpop.eup %847 }
  0x7b   :  { %v595_v57 = vsel %vm553_vm6, %v455_v48, %v581_v58  ;;  %vm498_vm13 = vcmp.eq.f32.partialorder %v1427_v19, 1.0  ;;  %vm540_vm14 = vcmp.lt.f32.partialorder %v1427_v19, 2.0  ;;  %vm554_vm15 = vcmp.eq.f32.partialorder %v1427_v19, 2.0 }
  0x7c   :  { %v609_v35 = vsel %vm539_vm7, 1.0, %v595_v57  ;;  %v358_v62 = vfloor.f32 %v344_v13  ;;  %vm568_vm0 = vcmp.eq.f32.partialorder %v1427_v19, 3.0  ;;  %v274_v0 = vmul.f32 16.0, %v260_v60 }
  0x7d   :  { %v735_v63 = vmul.f32 %v721_v49, %v609_v35  ;;  %vm1460_vm1 = vmor %vm554_vm15, %vm568_vm0  ;;  %v694_v4 = vmul.f32 %v848_v40, %v1404_v18  ;;  %v667_v54 = vadd.f32 1.0, %v1440_v51  ;;  %v65_v43 = vmul.u32 128, %v49_v56 }
  0x7e   :  { %v372_v47 = vmul.f32 3.0, %v358_v62  ;;  %v651_v53 = vmul.f32 1.442695, %v782_v45  ;;  %v288_v55 = vsub.f32 %v204_v36, %v274_v0  ;;  %v156_v16 = vmul.f32 9.0, %v1465_v8 }
  0x7f   :  { %749 = vst [vmem:[%s1671_s1 + $0x40] sm:$0xff] %v735_v63  ;;  %v708_v61 = vsel %vm1460_vm1, %v1404_v18, %v694_v4  ;;  %v191_v30 = vmul.f32 %v936_v2, %v1465_v8  ;;  %v310_v17 = vmul.f32 %v939_v3, %v1465_v8  ;;  %849 = vrcp.f32 %v667_v54 }
  0x80   :  { %v386_v52 = vsub.f32 %v323_v27, %v372_v47  ;;  %v1480_v20 = vadd.s32 %v65_v43, %v887_v6  ;;  %v512_v21 = vsel %vm498_vm13, %v288_v55, 0.0  ;;  %v1484_v22 = vsub.f32 %v107_v12, %v156_v16 }
  0x81   :  { %v205_v45 = vfloor.f32 %v191_v30  ;;  %851 = vpow2.f32 %v651_v53  ;;  %v526_v18 = vsel %vm484_vm12, %v232_v44, %v512_v21  ;;  %v324_v23 = vfloor.f32 %v310_v17 }
  0x82   :  { %vm400_vm2 = vcmp.eq.f32.partialorder %v386_v52, 1.0  ;;  %vm442_vm3 = vcmp.eq.f32.partialorder %v386_v52, 2.0  ;;  %v722_v29 = vadd.f32 %v708_v61, %v526_v18  ;;  %vm485_vm4 = vcmp.eq.f32.partialorder %v1484_v22, 0.0 }
  0x83   :  { %v414_v26 = vsel %vm400_vm2, 62.0, %v867_v7  ;;  %v428_v28 = vsel %vm400_vm2, 45.0, %v868_v10  ;;  %v219_v31 = vmul.f32 16.0, %v205_v45  ;;  %v247_v11 = vmul.f32 %v205_v45, %v936_v2 }
  0x84   :  { %v456_v33 = vsel %vm442_vm3, 59.0, %v414_v26  ;;  %v470_v34 = vsel %vm442_vm3, 119.0, %v428_v28  ;;  %v345_v12 = vmul.f32 %v950_v9, %v324_v23  ;;  %vm499_vm5 = vcmp.eq.f32.partialorder %v1484_v22, 1.0 }
  0x85   :  { %v582_v37 = vsel %vm568_vm0, %v470_v34, 1.0  ;;  %v233_v14 = vsub.f32 %v1465_v8, %v219_v31  ;;  %v850_v38 = vpop.eup %849  ;;  %v261_v27 = vfloor.f32 %v247_v11  ;;  %vm541_vm6 = vcmp.lt.f32.partialorder %v1484_v22, 2.0 }
  0x86   :  { %v596_v36 = vsel %vm554_vm15, %v456_v33, %v582_v37  ;;  %v359_v42 = vfloor.f32 %v345_v12  ;;  %vm555_vm7 = vcmp.eq.f32.partialorder %v1484_v22, 2.0  ;;  %vm569_vm8 = vcmp.eq.f32.partialorder %v1484_v22, 3.0 }
  0x87   :  { %v1505_v39 = vpop.eup %851  ;;  %v610_v46 = vsel %vm540_vm14, 1.0, %v596_v36  ;;  %v695_v41 = vmul.f32 %v850_v38, %v1440_v51  ;;  %v275_v15 = vmul.f32 16.0, %v261_v27  ;;  %vm1516_vm9 = vmor %vm555_vm7, %vm569_vm8  ;;  %v108_v19 = vcvt.s32.f32 %v1480_v20 }
  0x88   :  { %v736_v24 = vmul.f32 %v722_v29, %v610_v46  ;;  %v373_v48 = vmul.f32 3.0, %v359_v42  ;;  %v668_v50 = vadd.f32 1.0, %v1505_v39  ;;  %v785_v58 = vunpack.c.l.bf16 %v1503_v32 }
  0x89   :  { %v709_v49 = vsel %vm1516_vm9, %v1440_v51, %v695_v41  ;;  %v50_v44 = vadd.s32 96, %v885_v5  ;;  %v289_v13 = vsub.f32 %v205_v45, %v275_v15  ;;  %v129_v57 = vmul.f32 %v927_v59, %v108_v19 }
  0x8a   :  { %750 = vst [vmem:[%s1671_s1 + $0x48] sm:$0xff] %v736_v24  ;;  %v387_v56 = vsub.f32 %v324_v23, %v373_v48  ;;  %v786_v60 = vunpack.c.h.bf16 %v1503_v32  ;;  %853 = vrcp.f32 %v668_v50  ;;  %v653_v35 = vmul.f32 1.442695, %v785_v58 }
  0x8b   :  { %v66_v40 = vmul.u32 128, %v50_v44  ;;  %v51_v51 = vadd.s32 104, %v885_v5  ;;  %v513_v62 = vsel %vm499_vm5, %v289_v13, 0.0  ;;  %v1535_v63 = vfloor.f32 %v129_v57 }
  0x8c   :  { %vm401_vm10 = vcmp.eq.f32.partialorder %v387_v56, 1.0  ;;  %vm443_vm11 = vcmp.eq.f32.partialorder %v387_v56, 2.0  ;;  %v527_v4 = vsel %vm485_vm4, %v233_v14, %v513_v62  ;;  %855 = vpow2.f32 %v653_v35 }
  0x8d   :  { %v415_v0 = vsel %vm401_vm10, 62.0, %v867_v7  ;;  %v429_v1 = vsel %vm401_vm10, 45.0, %v868_v10  ;;  %v95_v8 = vadd.s32 %v66_v40, %v887_v6  ;;  %v723_v43 = vadd.f32 %v709_v49, %v527_v4 }
  0x8e   :  { %v457_v47 = vsel %vm443_vm11, 59.0, %v415_v0  ;;  %v471_v54 = vsel %vm443_vm11, 119.0, %v429_v1  ;;  %v157_v5 = vmul.f32 9.0, %v1535_v63  ;;  %v192_v55 = vmul.f32 %v936_v2, %v1535_v63 }
  0x8f   :  { %v583_v53 = vsel %vm569_vm8, %v471_v54, 1.0  ;;  %v311_v61 = vmul.f32 %v939_v3, %v1535_v63  ;;  %v109_v16 = vcvt.s32.f32 %v95_v8  ;;  %v67_v17 = vmul.u32 128, %v51_v51 }
  0x90   :  { %v597_v30 = vsel %vm555_vm7, %v457_v47, %v583_v53  ;;  %v1551_v52 = vsub.f32 %v108_v19, %v157_v5  ;;  %v854_v20 = vpop.eup %853  ;;  %v206_v45 = vfloor.f32 %v192_v55  ;;  %v655_v37 = vmul.f32 1.442695, %v786_v60 }
  0x91   :  { %v611_v21 = vsel %vm541_vm6, 1.0, %v597_v30  ;;  %v325_v18 = vfloor.f32 %v311_v61  ;;  %v130_v23 = vmul.f32 %v927_v59, %v109_v16  ;;  %v1568_v33 = vadd.s32 %v67_v17, %v887_v6 }
  0x92   :  { %v737_v26 = vmul.f32 %v723_v43, %v611_v21  ;;  %vm486_vm12 = vcmp.eq.f32.partialorder %v1551_v52, 0.0  ;;  %v220_v28 = vmul.f32 16.0, %v206_v45  ;;  %v248_v29 = vmul.f32 %v206_v45, %v936_v2  ;;  %v1572_v14 = vpop.eup %855 }
  0x93   :  { %v346_v31 = vmul.f32 %v950_v9, %v325_v18  ;;  %vm556_vm13 = vcmp.eq.f32.partialorder %v1551_v52, 2.0  ;;  %vm500_vm14 = vcmp.eq.f32.partialorder %v1551_v52, 1.0  ;;  %vm570_vm15 = vcmp.eq.f32.partialorder %v1551_v52, 3.0 }
  0x94   :  { %751 = vst [vmem:[%s1671_s1 + $0x50] sm:$0xff] %v737_v26  ;;  %v1565_v22 = vfloor.f32 %v130_v23  ;;  %v262_v34 = vfloor.f32 %v248_v29  ;;  %vm542_vm0 = vcmp.lt.f32.partialorder %v1551_v52, 2.0  ;;  %v696_v12 = vmul.f32 %v854_v20, %v1505_v39  ;;  %vm1579_vm1 = vmor %vm556_vm13, %vm570_vm15 }
  0x95   :  { %v360_v11 = vfloor.f32 %v346_v31  ;;  %v234_v38 = vsub.f32 %v1535_v63, %v220_v28  ;;  %v669_v41 = vadd.f32 1.0, %v1572_v14  ;;  %v110_v24 = vcvt.s32.f32 %v1568_v33 }
  0x96   :  { %v158_v6 = vmul.f32 9.0, %v1565_v22  ;;  %v193_v27 = vmul.f32 %v936_v2, %v1565_v22  ;;  %v312_v42 = vmul.f32 %v939_v3, %v1565_v22  ;;  %v276_v32 = vmul.f32 16.0, %v262_v34 }
  0x97   :  { %v374_v46 = vmul.f32 3.0, %v360_v11  ;;  %857 = vpow2.f32 %v655_v37  ;;  %v710_v50 = vsel %vm1579_vm1, %v1505_v39, %v696_v12  ;;  %v131_v56 = vmul.f32 %v927_v59, %v110_v24 }
  0x98   :  { %v1590_v15 = vsub.f32 %v109_v16, %v158_v6  ;;  %v207_v48 = vfloor.f32 %v193_v27  ;;  %v326_v25 = vfloor.f32 %v312_v42  ;;  %v290_v19 = vsub.f32 %v206_v45, %v276_v32 }
  0x99   :  { %v388_v49 = vsub.f32 %v325_v18, %v374_v46  ;;  %859 = vrcp.f32 %v669_v41  ;;  %v145_v43 = vfloor.f32 %v131_v56 }
  0x9a   :  { %v221_v58 = vmul.f32 16.0, %v207_v48  ;;  %v249_v44 = vmul.f32 %v207_v48, %v936_v2  ;;  %v347_v13 = vmul.f32 %v950_v9, %v326_v25  ;;  %v514_v57 = vsel %vm500_vm14, %v290_v19, 0.0 }
  0x9b   :  { %vm402_vm2 = vcmp.eq.f32.partialorder %v388_v49, 1.0  ;;  %vm444_vm3 = vcmp.eq.f32.partialorder %v388_v49, 2.0  ;;  %vm487_vm4 = vcmp.eq.f32.partialorder %v1590_v15, 0.0  ;;  %v528_v39 = vsel %vm486_vm12, %v234_v38, %v514_v57 }
  0x9c   :  { %v416_v60 = vsel %vm402_vm2, 62.0, %v867_v7  ;;  %v430_v40 = vsel %vm402_vm2, 45.0, %v868_v10  ;;  %vm501_vm5 = vcmp.eq.f32.partialorder %v1590_v15, 1.0  ;;  %v724_v62 = vadd.f32 %v710_v50, %v528_v39 }
  0x9d   :  { %v458_v35 = vsel %vm444_vm3, 59.0, %v416_v60  ;;  %v472_v51 = vsel %vm444_vm3, 119.0, %v430_v40  ;;  %v263_v59 = vfloor.f32 %v249_v44  ;;  %v1606_v63 = vpop.eup %857  ;;  %v235_v1 = vsub.f32 %v1565_v22, %v221_v58 }
  0x9e   :  { %v584_v0 = vsel %vm570_vm15, %v472_v51, 1.0  ;;  %v361_v4 = vfloor.f32 %v347_v13  ;;  %vm557_vm6 = vcmp.eq.f32.partialorder %v1590_v15, 2.0  ;;  %vm571_vm7 = vcmp.eq.f32.partialorder %v1590_v15, 3.0 }
  0x9f   :  { %v860_v8 = vpop.eup %859  ;;  %v598_v47 = vsel %vm556_vm13, %v458_v35, %v584_v0  ;;  %v277_v54 = vmul.f32 16.0, %v263_v59  ;;  %vm1621_vm8 = vmor %vm557_vm6, %vm571_vm7  ;;  %v670_v16 = vadd.f32 1.0, %v1606_v63  ;;  %v159_v20 = vmul.f32 9.0, %v145_v43 }
  0xa0   :  { %v612_v5 = vsel %vm542_vm0, 1.0, %v598_v47  ;;  %v375_v53 = vmul.f32 3.0, %v361_v4  ;;  %v697_v61 = vmul.f32 %v860_v8, %v1572_v14  ;;  %v194_v21 = vmul.f32 %v936_v2, %v145_v43 }
  0xa1   :  { %v738_v30 = vmul.f32 %v724_v62, %v612_v5  ;;  %v291_v17 = vsub.f32 %v207_v48, %v277_v54  ;;  %v313_v18 = vmul.f32 %v939_v3, %v145_v43  ;;  %861 = vrcp.f32 %v670_v16 }
  0xa2   :  { %v389_v52 = vsub.f32 %v326_v25, %v375_v53  ;;  %v711_v45 = vsel %vm1621_vm8, %v1572_v14, %v697_v61  ;;  %vm543_vm9 = vcmp.lt.f32.partialorder %v1590_v15, 2.0  ;;  %v208_v26 = vfloor.f32 %v194_v21 }
  0xa3   :  { %752 = vst [vmem:[%s1671_s1 + $0x58] sm:$0xff] %v738_v30  ;;  %v515_v23 = vsel %vm501_vm5, %v291_v17, 0.0  ;;  %v327_v29 = vfloor.f32 %v313_v18  ;;  %v173_v33 = vsub.f32 %v110_v24, %v159_v20 }
  0xa4   :  { %vm403_vm10 = vcmp.eq.f32.partialorder %v389_v52, 1.0  ;;  %vm445_vm11 = vcmp.eq.f32.partialorder %v389_v52, 2.0  ;;  %v529_v28 = vsel %vm487_vm4, %v235_v1, %v515_v23  ;;  %v250_v12 = vmul.f32 %v208_v26, %v936_v2 }
  0xa5   :  { %v417_v31 = vsel %vm403_vm10, 62.0, %v867_v7  ;;  %v431_v3 = vsel %vm403_vm10, 45.0, %v868_v10  ;;  %v725_v22 = vadd.f32 %v711_v45, %v529_v28  ;;  %v348_v37 = vmul.f32 %v950_v9, %v327_v29 }
  0xa6   :  { %v459_v34 = vsel %vm445_vm11, 59.0, %v417_v31  ;;  %v473_v11 = vsel %vm445_vm11, 119.0, %v431_v3  ;;  %v222_v38 = vmul.f32 16.0, %v208_v26  ;;  %v264_v27 = vfloor.f32 %v250_v12 }
  0xa7   :  { %v585_v14 = vsel %vm571_vm7, %v473_v11, 1.0  ;;  %v862_v36 = vpop.eup %861  ;;  %v362_v42 = vfloor.f32 %v348_v37  ;;  %vm558_vm12 = vcmp.eq.f32.partialorder %v173_v33, 2.0  ;;  %vm572_vm13 = vcmp.eq.f32.partialorder %v173_v33, 3.0 }
  0xa8   :  { %v599_v6 = vsel %vm557_vm6, %v459_v34, %v585_v14  ;;  %v698_v46 = vmul.f32 %v862_v36, %v1606_v63  ;;  %v278_v41 = vmul.f32 16.0, %v264_v27  ;;  %vm1653_vm14 = vmor %vm558_vm12, %vm572_vm13  ;;  %v236_v48 = vsub.f32 %v145_v43, %v222_v38 }
  0xa9   :  { %v613_v32 = vsel %vm543_vm9, 1.0, %v599_v6  ;;  %v376_v9 = vmul.f32 3.0, %v362_v42  ;;  %vm502_vm15 = vcmp.eq.f32.partialorder %v173_v33, 1.0  ;;  %vm488_vm0 = vcmp.eq.f32.partialorder %v173_v33, 0.0 }
  0xaa   :  { %v739_v2 = vmul.f32 %v725_v22, %v613_v32  ;;  %v292_v15 = vsub.f32 %v208_v26, %v278_v41  ;;  %v712_v19 = vsel %vm1653_vm14, %v1606_v63, %v698_v46  ;;  %vm544_vm3 = vcmp.lt.f32.partialorder %v173_v33, 2.0 }
  0xab   :  { %v390_v25 = vsub.f32 %v327_v29, %v376_v9 }
  0xac   :  { %753 = vst [vmem:[%s1671_s1 + $0x60] sm:$0xff] %v739_v2  ;;  %v516_v49 = vsel %vm502_vm15, %v292_v15, 0.0 }
  0xad   :  { %vm404_vm1 = vcmp.eq.f32.partialorder %v390_v25, 1.0  ;;  %vm446_vm2 = vcmp.eq.f32.partialorder %v390_v25, 2.0  ;;  %v530_v44 = vsel %vm488_vm0, %v236_v48, %v516_v49 }
  0xae   :  { %v418_v50 = vsel %vm404_vm1, 62.0, %v867_v7  ;;  %v432_v58 = vsel %vm404_vm1, 45.0, %v868_v10  ;;  %v726_v57 = vadd.f32 %v712_v19, %v530_v44 }
  0xaf   :  { %v460_v13 = vsel %vm446_vm2, 59.0, %v418_v50  ;;  %v474_v56 = vsel %vm446_vm2, 119.0, %v432_v58 }
  0xb0   :  { %v586_v60 = vsel %vm572_vm13, %v474_v56, 1.0 }
  0xb1   :  { %v600_v40 = vsel %vm558_vm12, %v460_v13, %v586_v60 }
  0xb2   :  { %v614_v39 = vsel %vm544_vm3, 1.0, %v600_v40 }
  0xb3   :  { %v740_v35 = vmul.f32 %v726_v57, %v614_v39 }
  0xb5   :  { %754 = vst [vmem:[%s1671_s1 + $0x68] sm:$0xff] %v740_v35 }

</bundles_post_ra>
